<compile_context>
chip_gen: v7x
topology: tpu7x:2x2x1
jax: 0.10.0
libtpu: 0.0.40
codegen_flags: <defaults>
</compile_context>

<pallas_src>
import jax
import jax.numpy as jnp
from jax.experimental import pallas as pl
from jax.experimental.pallas import tpu as pltpu


# ----------------------------------------------------------------------------
# Kernel 1: HBM row-gather of embeddings + mean-pool + encoder + mean/logvar +
#           reparam + decoder trunk.  Single grid step, everything V-free.
# ----------------------------------------------------------------------------
def encoder_kernel(ids_smem, emb_hbm, eps_ref, w_enc_ref, b_enc_ref,
                   w_mu_ref, b_mu_ref, w_lv_ref, b_lv_ref,
                   w_dec_ref, b_dec_ref,
                   pack_ref,
                   gather_buf, gather_sem):
    B, L = eps_ref.shape
    NT, E = gather_buf.shape
    S = NT // B
    V = emb_hbm.shape[0]
    R = w_dec_ref.shape[1]

    # --- nn.Embedding lookup: one small HBM->VMEM DMA per token row.  The
    # table never enters VMEM wholesale; ids come from SMEM (scalar
    # prefetch).  Static Python loops -> fully unrolled, issue-all/wait-all.
    copies = []
    for b in range(B):
        for s in range(S):
            tok = jnp.clip(ids_smem[b * S + s], 0, V - 1)   # OOB-safe gather
            cp = pltpu.make_async_copy(
                emb_hbm.at[pl.ds(tok, 1), :],               # [1, E] HBM row
                gather_buf.at[pl.ds(s * B + b, 1), :],       # laid out [S, B, E]
                gather_sem)
            cp.start()
            copies.append(cp)
    for cp in copies:
        cp.wait()

    # --- mean-pool over S (contiguous [B, E] blocks, static offsets).
    pooled = gather_buf[0:B, :]
    for s in range(1, S):
        pooled = pooled + gather_buf[s * B:(s + 1) * B, :]
    pooled = pooled * (1.0 / S)                              # [B, E]

    # --- Encoder head (stand-in for the undefined CNN Encoder).
    hid = jnp.tanh(
        jnp.dot(pooled, w_enc_ref[...],
                preferred_element_type=jnp.float32) + b_enc_ref[...])    # [B, H]

    # --- mean_creater / logvar_creater.
    mean = jnp.dot(hid, w_mu_ref[...],
                   preferred_element_type=jnp.float32) + b_mu_ref[...]   # [B, L]
    logvar = jnp.dot(hid, w_lv_ref[...],
                     preferred_element_type=jnp.float32) + b_lv_ref[...]  # [B, L]

    # --- _dist_sample: z = eps * exp(0.5 * logvar) + mean.
    latent = eps_ref[...] * jnp.exp(0.5 * logvar) + mean                  # [B, L]

    # --- Decoder trunk (stand-in for the undefined RNN Decoder).
    dec_h = jnp.tanh(
        jnp.dot(latent, w_dec_ref[...],
                preferred_element_type=jnp.float32) + b_dec_ref[...])     # [B, R]

    # --- single lane-dense packed store: [mean | logvar | latent | dec_h | 0pad].
    pieces = [mean, logvar, latent, dec_h]
    pad = pack_ref.shape[1] - (3 * L + R)
    if pad:
        pieces.append(jnp.zeros((B, pad), jnp.float32))
    pack_ref[...] = jnp.concatenate(pieces, axis=1)


# ----------------------------------------------------------------------------
# Kernel 2: vocab-tiled decoder heads.  grid=(V // tile_v,), vocab axis is
# "parallel" (megacore-shardable on v7x); bf16 weight slabs stream through
# double-buffered VMEM with f32 MXU accumulation.
# ----------------------------------------------------------------------------
def heads_kernel(dech_ref, latent_ref, w_out_ref, b_out_ref,
                 w_aux_ref, b_aux_ref, logits_ref, aux_ref):
    dech_bf = dech_ref[...].astype(jnp.bfloat16)
    lat_bf = latent_ref[...].astype(jnp.bfloat16)
    logits_ref[...] = (jnp.dot(dech_bf, w_out_ref[...],
                               preferred_element_type=jnp.float32)
                       + b_out_ref[...])
    aux_ref[...] = (jnp.dot(lat_bf, w_aux_ref[...],
                            preferred_element_type=jnp.float32)
                    + b_aux_ref[...])


# ----------------------------------------------------------------------------
# Helpers
# ----------------------------------------------------------------------------
def _pick_tile_v(V, B, R, L, budget_bytes=24 << 20):
    """Largest multiple-of-128 divisor of V whose double-buffered streamed
    footprint fits `budget_bytes` (safe even on v7x's 64 MiB VMEM), while
    keeping >= 2 tiles so the 'parallel' vocab axis can split across two TCs."""
    assert V % 128 == 0, "vocab_size must be a multiple of 128"
    # per vocab column, double-buffered: bf16 weights + f32 biases + f32 outputs
    per_col = 2 * ((R + L) * 2 + 2 * 4 + 2 * B * 4)
    cap = max(128, (budget_bytes // per_col) // 128 * 128)
    best, t = 128, 128
    while t <= min(V, cap):
        if V % t == 0:
            best = t
        t += 128
    if best == V and V >= 256 and (V // 2) % 128 == 0:
        best = V // 2
    return best


# ----------------------------------------------------------------------------
# Wrapper
# ----------------------------------------------------------------------------
def vae_forward(x, eps, params, *, tile_v=None):
    """x: [B, S] int32 token ids, eps: [B, L] f32, params: dict of arrays."""
    B, S = x.shape
    V, E = params["emb_tab"].shape
    H = params["w_enc"].shape[1]
    L = params["w_mu"].shape[1]
    R = params["w_dec"].shape[1]

    out_w = ((3 * L + R + 127) // 128) * 128      # lane-dense packed width

    ids = x.reshape(-1).astype(jnp.int32)          # 1-D -> no 2-D SMEM padding

    # ---------------- encoder call ----------------
    enc_inputs = [params["emb_tab"], eps, params["w_enc"], params["b_enc"],
                  params["w_mu"], params["b_mu"], params["w_lv"], params["b_lv"],
                  params["w_dec"], params["b_dec"]]

    def full_spec(shape):
        nd = len(shape)
        # index_map gets (grid idx, scalar-prefetch ref)
        return pl.BlockSpec(shape, lambda i, ids_ref, _nd=nd: (0,) * _nd)

    enc_in_specs = ([pl.BlockSpec(memory_space=pl.ANY)]        # emb table stays in HBM
                    + [full_spec(a.shape) for a in enc_inputs[1:]])

    enc_bytes = 4 * (B * S * E + B * L + E * H + H + 2 * (H * L + L)
                     + L * R + R + B * out_w) + 4 * B * S

    packed = pl.pallas_call(
        encoder_kernel,
        out_shape=jax.ShapeDtypeStruct((B, out_w), jnp.float32),
        grid_spec=pltpu.PrefetchScalarGridSpec(
            num_scalar_prefetch=1,
            grid=(1,),
            in_specs=enc_in_specs,
            out_specs=full_spec((B, out_w)),
            scratch_shapes=[pltpu.VMEM((B * S, E), jnp.float32),
                            pltpu.SemaphoreType.DMA]),
        compiler_params=pltpu.CompilerParams(
            dimension_semantics=("arbitrary",)),
        cost_estimate=pl.CostEstimate(
            flops=2 * B * (S * E + E * H + 2 * H * L + L * R),
            transcendentals=B * (H + L + R),
            bytes_accessed=enc_bytes),
    )(ids, *enc_inputs)

    mean = packed[:, 0:L]
    logvar = packed[:, L:2 * L]
    latent = packed[:, 2 * L:3 * L]
    dec_h = packed[:, 3 * L:3 * L + R]

    # ---------------- vocab-tiled heads call ----------------
    if tile_v is None:
        tile_v = _pick_tile_v(V, B, R, L)
    assert V % tile_v == 0
    assert tile_v == V or tile_v % 128 == 0
    n_vt = V // tile_v

    heads_footprint = 2 * ((R + L) * tile_v * 2      # bf16 weight tiles (2x buffered)
                           + 2 * tile_v * 4          # f32 bias tiles
                           + 2 * B * tile_v * 4      # f32 output tiles
                           + B * (R + L) * 4)        # f32 activations
    heads_vmem_limit = int(min(heads_footprint + (16 << 20), 64 << 20))

    heads_bytes = (2 * (R + L) * V          # bf16 weights
                   + 4 * 2 * V              # f32 biases
                   + 4 * 2 * B * V          # f32 outputs
                   + 4 * B * (R + L))       # f32 activations

    logits, aux_logits = pl.pallas_call(
        heads_kernel,
        out_shape=(jax.ShapeDtypeStruct((B, V), jnp.float32),   # logits
                   jax.ShapeDtypeStruct((B, V), jnp.float32)),  # aux_logits
        grid=(n_vt,),
        in_specs=[
            pl.BlockSpec((B, R), lambda j: (0, 0)),
            pl.BlockSpec((B, L), lambda j: (0, 0)),
            pl.BlockSpec((R, tile_v), lambda j: (0, j)),
            pl.BlockSpec((1, tile_v), lambda j: (0, j)),
            pl.BlockSpec((L, tile_v), lambda j: (0, j)),
            pl.BlockSpec((1, tile_v), lambda j: (0, j)),
        ],
        out_specs=(pl.BlockSpec((B, tile_v), lambda j: (0, j)),
                   pl.BlockSpec((B, tile_v), lambda j: (0, j))),
        compiler_params=pltpu.CompilerParams(
            dimension_semantics=("parallel",),
            vmem_limit_bytes=heads_vmem_limit),
        cost_estimate=pl.CostEstimate(
            flops=2 * B * V * (R + L),
            transcendentals=0,
            bytes_accessed=heads_bytes),
    )(dec_h, latent, params["w_out"], params["b_out"],
      params["w_aux"], params["b_aux"])

    return logits, aux_logits, mean, logvar


# ----------------------------------------------------------------------------
# Pure-JAX reference (same stand-in architecture) for a correctness check.
# ----------------------------------------------------------------------------
def vae_reference(x, eps, params):
    emb = params["emb_tab"][x]                                  # [B, S, E]
    pooled = jnp.mean(emb, axis=1)                              # [B, E]
    hid = jnp.tanh(pooled @ params["w_enc"] + params["b_enc"])
    mean = hid @ params["w_mu"] + params["b_mu"]
    logvar = hid @ params["w_lv"] + params["b_lv"]
    latent = eps * jnp.exp(0.5 * logvar) + mean
    dec_h = jnp.tanh(latent @ params["w_dec"] + params["b_dec"])
    logits = jnp.dot(dec_h.astype(jnp.bfloat16), params["w_out"],
                     preferred_element_type=jnp.float32) + params["b_out"]
    aux = jnp.dot(latent.astype(jnp.bfloat16), params["w_aux"],
                  preferred_element_type=jnp.float32) + params["b_aux"]
    return logits, aux, mean, logvar


def init_params(key, vocab_size, emb_size, hid_size, latent_size,
                rnn_size, padding_idx):
    ks = jax.random.split(key, 8)
    scale = 0.02
    emb_tab = scale * jax.random.normal(ks[0], (vocab_size, emb_size), jnp.float32)
    # nn.Embedding(padding_idx=...) zeroes that row at init.
    emb_tab = emb_tab.at[padding_idx].set(0.0)
    return {
        "emb_tab": emb_tab,
        "w_enc": scale * jax.random.normal(ks[1], (emb_size, hid_size), jnp.float32),
        "b_enc": jnp.zeros((1, hid_size), jnp.float32),
        "w_mu": scale * jax.random.normal(ks[2], (hid_size, latent_size), jnp.float32),
        "b_mu": jnp.zeros((1, latent_size), jnp.float32),
        "w_lv": scale * jax.random.normal(ks[3], (hid_size, latent_size), jnp.float32),
        "b_lv": jnp.zeros((1, latent_size), jnp.float32),
        "w_dec": scale * jax.random.normal(ks[4], (latent_size, rnn_size), jnp.float32),
        "b_dec": jnp.zeros((1, rnn_size), jnp.float32),
        # Vocab-sized heads stored bf16: memory-bound stream halved; f32 MXU acc.
        "w_out": (scale * jax.random.normal(ks[5], (rnn_size, vocab_size),
                                            jnp.float32)).astype(jnp.bfloat16),
        "b_out": jnp.zeros((1, vocab_size), jnp.float32),
        "w_aux": (scale * jax.random.normal(ks[6], (latent_size, vocab_size),
                                            jnp.float32)).astype(jnp.bfloat16),
        "b_aux": jnp.zeros((1, vocab_size), jnp.float32),
    }


if __name__ == "__main__":
    # Small TPU-friendly shapes; vocab chosen so the vocab-tiled grid
    # (2 tiles of 256 lanes) is actually exercised.
    vocab_size, emb_size, hid_size, latent_size = 512, 32, 32, 16
    rnn_size, padding_idx = 32, 0
    B, S = 8, 8

    key = jax.random.PRNGKey(0)
    k_par, k_tok, k_eps = jax.random.split(key, 3)

    params = init_params(k_par, vocab_size, emb_size, hid_size,
                         latent_size, rnn_size, padding_idx)
    x = jax.random.randint(k_tok, (B, S), 0, vocab_size, dtype=jnp.int32)
    eps = jax.random.normal(k_eps, (B, latent_size), jnp.float32)

    logits, aux_logits, mean, logvar = jax.block_until_ready(
        vae_forward(x, eps, params))

    assert logits.shape == (B, vocab_size)
    assert aux_logits.shape == (B, vocab_size)
    assert mean.shape == (B, latent_size)
    assert logvar.shape == (B, latent_size)
    assert jnp.all(jnp.isfinite(logits))

    r_logits, r_aux, r_mean, r_logvar = vae_reference(x, eps, params)
    assert jnp.max(jnp.abs(mean - r_mean)) < 1e-3
    assert jnp.max(jnp.abs(logvar - r_logvar)) < 1e-3
    assert jnp.max(jnp.abs(logits - r_logits)) < 2e-3
    assert jnp.max(jnp.abs(aux_logits - r_aux)) < 2e-3

    print("KERNEL_OK")
</pallas_src>

<mosaic_0001>
module attributes {stable_mosaic.version = 11 : i64} {
  func.func @encoder_kernel(%arg0: i32, %arg1: memref<64xi32, #tpu.memory_space<smem>>, %arg2: memref<512x32xf32, #tpu.memory_space<any>>, %arg3: memref<8x16xf32, #tpu.memory_space<vmem>>, %arg4: memref<32x32xf32, #tpu.memory_space<vmem>>, %arg5: memref<1x32xf32, #tpu.memory_space<vmem>>, %arg6: memref<32x16xf32, #tpu.memory_space<vmem>>, %arg7: memref<1x16xf32, #tpu.memory_space<vmem>>, %arg8: memref<32x16xf32, #tpu.memory_space<vmem>>, %arg9: memref<1x16xf32, #tpu.memory_space<vmem>>, %arg10: memref<16x32xf32, #tpu.memory_space<vmem>>, %arg11: memref<1x32xf32, #tpu.memory_space<vmem>>, %arg12: memref<8x128xf32, #tpu.memory_space<vmem>>, %arg13: memref<64x32xf32, #tpu.memory_space<vmem>>, %arg14: memref<!tpu.dma_semaphore, #tpu.memory_space<semaphore_mem>>) attributes {dimension_semantics = [#tpu.dimension_semantics<arbitrary>], iteration_bounds = array<i64: 1>, scalar_prefetch = 1 : i64, scratch_operands = 2 : i64, tpu.core_type = #tpu.core_type<tc>, window_params = [{}, {pipeline_mode = #tpu.pipeline_mode<synchronous>, transform_indices = @transform_1, window_bounds = array<i64: 8, 16>}, {pipeline_mode = #tpu.pipeline_mode<synchronous>, transform_indices = @transform_2, window_bounds = array<i64: 32, 32>}, {pipeline_mode = #tpu.pipeline_mode<synchronous>, transform_indices = @transform_3, window_bounds = array<i64: 1, 32>}, {pipeline_mode = #tpu.pipeline_mode<synchronous>, transform_indices = @transform_4, window_bounds = array<i64: 32, 16>}, {pipeline_mode = #tpu.pipeline_mode<synchronous>, transform_indices = @transform_5, window_bounds = array<i64: 1, 16>}, {pipeline_mode = #tpu.pipeline_mode<synchronous>, transform_indices = @transform_6, window_bounds = array<i64: 32, 16>}, {pipeline_mode = #tpu.pipeline_mode<synchronous>, transform_indices = @transform_7, window_bounds = array<i64: 1, 16>}, {pipeline_mode = #tpu.pipeline_mode<synchronous>, transform_indices = @transform_8, window_bounds = array<i64: 16, 32>}, {pipeline_mode = #tpu.pipeline_mode<synchronous>, transform_indices = @transform_9, window_bounds = array<i64: 1, 32>}, {pipeline_mode = #tpu.pipeline_mode<synchronous>, transform_indices = @transform_10, window_bounds = array<i64: 8, 128>}]} {
    %c0 = arith.constant 0 : index
    %0 = memref.load %arg1[%c0] : memref<64xi32, #tpu.memory_space<smem>>
    %c0_i32 = arith.constant 0 : i32
    %c511_i32 = arith.constant 511 : i32
    %1 = arith.maxsi %c0_i32, %0 : i32
    %2 = arith.minsi %c511_i32, %1 : i32
    %c0_i32_0 = arith.constant 0 : i32
    %3 = tpu.memref_slice %arg2[%2, %c0_i32_0] : memref<512x32xf32, #tpu.memory_space<any>> -> memref<1x32xf32, #tpu.memory_space<any>>
    %c0_i32_1 = arith.constant 0 : i32
    %c0_i32_2 = arith.constant 0 : i32
    %4 = tpu.memref_slice %arg13[%c0_i32_1, %c0_i32_2] : memref<64x32xf32, #tpu.memory_space<vmem>> -> memref<1x32xf32, #tpu.memory_space<vmem>>
    tpu.enqueue_dma source(%3 : memref<1x32xf32, #tpu.memory_space<any>>) target(%4 : memref<1x32xf32, #tpu.memory_space<vmem>>) target_semaphore(%arg14 : memref<!tpu.dma_semaphore, #tpu.memory_space<semaphore_mem>>)
    %c1 = arith.constant 1 : index
    %5 = memref.load %arg1[%c1] : memref<64xi32, #tpu.memory_space<smem>>
    %c0_i32_3 = arith.constant 0 : i32
    %c511_i32_4 = arith.constant 511 : i32
    %6 = arith.maxsi %c0_i32_3, %5 : i32
    %7 = arith.minsi %c511_i32_4, %6 : i32
    %c0_i32_5 = arith.constant 0 : i32
    %8 = tpu.memref_slice %arg2[%7, %c0_i32_5] : memref<512x32xf32, #tpu.memory_space<any>> -> memref<1x32xf32, #tpu.memory_space<any>>
    %c8_i32 = arith.constant 8 : i32
    %c0_i32_6 = arith.constant 0 : i32
    %9 = tpu.memref_slice %arg13[%c8_i32, %c0_i32_6] : memref<64x32xf32, #tpu.memory_space<vmem>> -> memref<1x32xf32, #tpu.memory_space<vmem>>
    tpu.enqueue_dma source(%8 : memref<1x32xf32, #tpu.memory_space<any>>) target(%9 : memref<1x32xf32, #tpu.memory_space<vmem>>) target_semaphore(%arg14 : memref<!tpu.dma_semaphore, #tpu.memory_space<semaphore_mem>>)
    %c2 = arith.constant 2 : index
    %10 = memref.load %arg1[%c2] : memref<64xi32, #tpu.memory_space<smem>>
    %c0_i32_7 = arith.constant 0 : i32
    %c511_i32_8 = arith.constant 511 : i32
    %11 = arith.maxsi %c0_i32_7, %10 : i32
    %12 = arith.minsi %c511_i32_8, %11 : i32
    %c0_i32_9 = arith.constant 0 : i32
    %13 = tpu.memref_slice %arg2[%12, %c0_i32_9] : memref<512x32xf32, #tpu.memory_space<any>> -> memref<1x32xf32, #tpu.memory_space<any>>
    %c16_i32 = arith.constant 16 : i32
    %c0_i32_10 = arith.constant 0 : i32
    %14 = tpu.memref_slice %arg13[%c16_i32, %c0_i32_10] : memref<64x32xf32, #tpu.memory_space<vmem>> -> memref<1x32xf32, #tpu.memory_space<vmem>>
    tpu.enqueue_dma source(%13 : memref<1x32xf32, #tpu.memory_space<any>>) target(%14 : memref<1x32xf32, #tpu.memory_space<vmem>>) target_semaphore(%arg14 : memref<!tpu.dma_semaphore, #tpu.memory_space<semaphore_mem>>)
    %c3 = arith.constant 3 : index
    %15 = memref.load %arg1[%c3] : memref<64xi32, #tpu.memory_space<smem>>
    %c0_i32_11 = arith.constant 0 : i32
    %c511_i32_12 = arith.constant 511 : i32
    %16 = arith.maxsi %c0_i32_11, %15 : i32
    %17 = arith.minsi %c511_i32_12, %16 : i32
    %c0_i32_13 = arith.constant 0 : i32
    %18 = tpu.memref_slice %arg2[%17, %c0_i32_13] : memref<512x32xf32, #tpu.memory_space<any>> -> memref<1x32xf32, #tpu.memory_space<any>>
    %c24_i32 = arith.constant 24 : i32
    %c0_i32_14 = arith.constant 0 : i32
    %19 = tpu.memref_slice %arg13[%c24_i32, %c0_i32_14] : memref<64x32xf32, #tpu.memory_space<vmem>> -> memref<1x32xf32, #tpu.memory_space<vmem>>
    tpu.enqueue_dma source(%18 : memref<1x32xf32, #tpu.memory_space<any>>) target(%19 : memref<1x32xf32, #tpu.memory_space<vmem>>) target_semaphore(%arg14 : memref<!tpu.dma_semaphore, #tpu.memory_space<semaphore_mem>>)
    %c4 = arith.constant 4 : index
    %20 = memref.load %arg1[%c4] : memref<64xi32, #tpu.memory_space<smem>>
    %c0_i32_15 = arith.constant 0 : i32
    %c511_i32_16 = arith.constant 511 : i32
    %21 = arith.maxsi %c0_i32_15, %20 : i32
    %22 = arith.minsi %c511_i32_16, %21 : i32
    %c0_i32_17 = arith.constant 0 : i32
    %23 = tpu.memref_slice %arg2[%22, %c0_i32_17] : memref<512x32xf32, #tpu.memory_space<any>> -> memref<1x32xf32, #tpu.memory_space<any>>
    %c32_i32 = arith.constant 32 : i32
    %c0_i32_18 = arith.constant 0 : i32
    %24 = tpu.memref_slice %arg13[%c32_i32, %c0_i32_18] : memref<64x32xf32, #tpu.memory_space<vmem>> -> memref<1x32xf32, #tpu.memory_space<vmem>>
    tpu.enqueue_dma source(%23 : memref<1x32xf32, #tpu.memory_space<any>>) target(%24 : memref<1x32xf32, #tpu.memory_space<vmem>>) target_semaphore(%arg14 : memref<!tpu.dma_semaphore, #tpu.memory_space<semaphore_mem>>)
    %c5 = arith.constant 5 : index
    %25 = memref.load %arg1[%c5] : memref<64xi32, #tpu.memory_space<smem>>
    %c0_i32_19 = arith.constant 0 : i32
    %c511_i32_20 = arith.constant 511 : i32
    %26 = arith.maxsi %c0_i32_19, %25 : i32
    %27 = arith.minsi %c511_i32_20, %26 : i32
    %c0_i32_21 = arith.constant 0 : i32
    %28 = tpu.memref_slice %arg2[%27, %c0_i32_21] : memref<512x32xf32, #tpu.memory_space<any>> -> memref<1x32xf32, #tpu.memory_space<any>>
    %c40_i32 = arith.constant 40 : i32
    %c0_i32_22 = arith.constant 0 : i32
    %29 = tpu.memref_slice %arg13[%c40_i32, %c0_i32_22] : memref<64x32xf32, #tpu.memory_space<vmem>> -> memref<1x32xf32, #tpu.memory_space<vmem>>
    tpu.enqueue_dma source(%28 : memref<1x32xf32, #tpu.memory_space<any>>) target(%29 : memref<1x32xf32, #tpu.memory_space<vmem>>) target_semaphore(%arg14 : memref<!tpu.dma_semaphore, #tpu.memory_space<semaphore_mem>>)
    %c6 = arith.constant 6 : index
    %30 = memref.load %arg1[%c6] : memref<64xi32, #tpu.memory_space<smem>>
    %c0_i32_23 = arith.constant 0 : i32
    %c511_i32_24 = arith.constant 511 : i32
    %31 = arith.maxsi %c0_i32_23, %30 : i32
    %32 = arith.minsi %c511_i32_24, %31 : i32
    %c0_i32_25 = arith.constant 0 : i32
    %33 = tpu.memref_slice %arg2[%32, %c0_i32_25] : memref<512x32xf32, #tpu.memory_space<any>> -> memref<1x32xf32, #tpu.memory_space<any>>
    %c48_i32 = arith.constant 48 : i32
    %c0_i32_26 = arith.constant 0 : i32
    %34 = tpu.memref_slice %arg13[%c48_i32, %c0_i32_26] : memref<64x32xf32, #tpu.memory_space<vmem>> -> memref<1x32xf32, #tpu.memory_space<vmem>>
    tpu.enqueue_dma source(%33 : memref<1x32xf32, #tpu.memory_space<any>>) target(%34 : memref<1x32xf32, #tpu.memory_space<vmem>>) target_semaphore(%arg14 : memref<!tpu.dma_semaphore, #tpu.memory_space<semaphore_mem>>)
    %c7 = arith.constant 7 : index
    %35 = memref.load %arg1[%c7] : memref<64xi32, #tpu.memory_space<smem>>
    %c0_i32_27 = arith.constant 0 : i32
    %c511_i32_28 = arith.constant 511 : i32
    %36 = arith.maxsi %c0_i32_27, %35 : i32
    %37 = arith.minsi %c511_i32_28, %36 : i32
    %c0_i32_29 = arith.constant 0 : i32
    %38 = tpu.memref_slice %arg2[%37, %c0_i32_29] : memref<512x32xf32, #tpu.memory_space<any>> -> memref<1x32xf32, #tpu.memory_space<any>>
    %c56_i32 = arith.constant 56 : i32
    %c0_i32_30 = arith.constant 0 : i32
    %39 = tpu.memref_slice %arg13[%c56_i32, %c0_i32_30] : memref<64x32xf32, #tpu.memory_space<vmem>> -> memref<1x32xf32, #tpu.memory_space<vmem>>
    tpu.enqueue_dma source(%38 : memref<1x32xf32, #tpu.memory_space<any>>) target(%39 : memref<1x32xf32, #tpu.memory_space<vmem>>) target_semaphore(%arg14 : memref<!tpu.dma_semaphore, #tpu.memory_space<semaphore_mem>>)
    %c8 = arith.constant 8 : index
    %40 = memref.load %arg1[%c8] : memref<64xi32, #tpu.memory_space<smem>>
    %c0_i32_31 = arith.constant 0 : i32
    %c511_i32_32 = arith.constant 511 : i32
    %41 = arith.maxsi %c0_i32_31, %40 : i32
    %42 = arith.minsi %c511_i32_32, %41 : i32
    %c0_i32_33 = arith.constant 0 : i32
    %43 = tpu.memref_slice %arg2[%42, %c0_i32_33] : memref<512x32xf32, #tpu.memory_space<any>> -> memref<1x32xf32, #tpu.memory_space<any>>
    %c1_i32 = arith.constant 1 : i32
    %c0_i32_34 = arith.constant 0 : i32
    %44 = tpu.memref_slice %arg13[%c1_i32, %c0_i32_34] : memref<64x32xf32, #tpu.memory_space<vmem>> -> memref<1x32xf32, #tpu.memory_space<vmem>>
    tpu.enqueue_dma source(%43 : memref<1x32xf32, #tpu.memory_space<any>>) target(%44 : memref<1x32xf32, #tpu.memory_space<vmem>>) target_semaphore(%arg14 : memref<!tpu.dma_semaphore, #tpu.memory_space<semaphore_mem>>)
    %c9 = arith.constant 9 : index
    %45 = memref.load %arg1[%c9] : memref<64xi32, #tpu.memory_space<smem>>
    %c0_i32_35 = arith.constant 0 : i32
    %c511_i32_36 = arith.constant 511 : i32
    %46 = arith.maxsi %c0_i32_35, %45 : i32
    %47 = arith.minsi %c511_i32_36, %46 : i32
    %c0_i32_37 = arith.constant 0 : i32
    %48 = tpu.memref_slice %arg2[%47, %c0_i32_37] : memref<512x32xf32, #tpu.memory_space<any>> -> memref<1x32xf32, #tpu.memory_space<any>>
    %c9_i32 = arith.constant 9 : i32
    %c0_i32_38 = arith.constant 0 : i32
    %49 = tpu.memref_slice %arg13[%c9_i32, %c0_i32_38] : memref<64x32xf32, #tpu.memory_space<vmem>> -> memref<1x32xf32, #tpu.memory_space<vmem>>
    tpu.enqueue_dma source(%48 : memref<1x32xf32, #tpu.memory_space<any>>) target(%49 : memref<1x32xf32, #tpu.memory_space<vmem>>) target_semaphore(%arg14 : memref<!tpu.dma_semaphore, #tpu.memory_space<semaphore_mem>>)
    %c10 = arith.constant 10 : index
    %50 = memref.load %arg1[%c10] : memref<64xi32, #tpu.memory_space<smem>>
    %c0_i32_39 = arith.constant 0 : i32
    %c511_i32_40 = arith.constant 511 : i32
    %51 = arith.maxsi %c0_i32_39, %50 : i32
    %52 = arith.minsi %c511_i32_40, %51 : i32
    %c0_i32_41 = arith.constant 0 : i32
    %53 = tpu.memref_slice %arg2[%52, %c0_i32_41] : memref<512x32xf32, #tpu.memory_space<any>> -> memref<1x32xf32, #tpu.memory_space<any>>
    %c17_i32 = arith.constant 17 : i32
    %c0_i32_42 = arith.constant 0 : i32
    %54 = tpu.memref_slice %arg13[%c17_i32, %c0_i32_42] : memref<64x32xf32, #tpu.memory_space<vmem>> -> memref<1x32xf32, #tpu.memory_space<vmem>>
    tpu.enqueue_dma source(%53 : memref<1x32xf32, #tpu.memory_space<any>>) target(%54 : memref<1x32xf32, #tpu.memory_space<vmem>>) target_semaphore(%arg14 : memref<!tpu.dma_semaphore, #tpu.memory_space<semaphore_mem>>)
    %c11 = arith.constant 11 : index
    %55 = memref.load %arg1[%c11] : memref<64xi32, #tpu.memory_space<smem>>
    %c0_i32_43 = arith.constant 0 : i32
    %c511_i32_44 = arith.constant 511 : i32
    %56 = arith.maxsi %c0_i32_43, %55 : i32
    %57 = arith.minsi %c511_i32_44, %56 : i32
    %c0_i32_45 = arith.constant 0 : i32
    %58 = tpu.memref_slice %arg2[%57, %c0_i32_45] : memref<512x32xf32, #tpu.memory_space<any>> -> memref<1x32xf32, #tpu.memory_space<any>>
    %c25_i32 = arith.constant 25 : i32
    %c0_i32_46 = arith.constant 0 : i32
    %59 = tpu.memref_slice %arg13[%c25_i32, %c0_i32_46] : memref<64x32xf32, #tpu.memory_space<vmem>> -> memref<1x32xf32, #tpu.memory_space<vmem>>
    tpu.enqueue_dma source(%58 : memref<1x32xf32, #tpu.memory_space<any>>) target(%59 : memref<1x32xf32, #tpu.memory_space<vmem>>) target_semaphore(%arg14 : memref<!tpu.dma_semaphore, #tpu.memory_space<semaphore_mem>>)
    %c12 = arith.constant 12 : index
    %60 = memref.load %arg1[%c12] : memref<64xi32, #tpu.memory_space<smem>>
    %c0_i32_47 = arith.constant 0 : i32
    %c511_i32_48 = arith.constant 511 : i32
    %61 = arith.maxsi %c0_i32_47, %60 : i32
    %62 = arith.minsi %c511_i32_48, %61 : i32
    %c0_i32_49 = arith.constant 0 : i32
    %63 = tpu.memref_slice %arg2[%62, %c0_i32_49] : memref<512x32xf32, #tpu.memory_space<any>> -> memref<1x32xf32, #tpu.memory_space<any>>
    %c33_i32 = arith.constant 33 : i32
    %c0_i32_50 = arith.constant 0 : i32
    %64 = tpu.memref_slice %arg13[%c33_i32, %c0_i32_50] : memref<64x32xf32, #tpu.memory_space<vmem>> -> memref<1x32xf32, #tpu.memory_space<vmem>>
    tpu.enqueue_dma source(%63 : memref<1x32xf32, #tpu.memory_space<any>>) target(%64 : memref<1x32xf32, #tpu.memory_space<vmem>>) target_semaphore(%arg14 : memref<!tpu.dma_semaphore, #tpu.memory_space<semaphore_mem>>)
    %c13 = arith.constant 13 : index
    %65 = memref.load %arg1[%c13] : memref<64xi32, #tpu.memory_space<smem>>
    %c0_i32_51 = arith.constant 0 : i32
    %c511_i32_52 = arith.constant 511 : i32
    %66 = arith.maxsi %c0_i32_51, %65 : i32
    %67 = arith.minsi %c511_i32_52, %66 : i32
    %c0_i32_53 = arith.constant 0 : i32
    %68 = tpu.memref_slice %arg2[%67, %c0_i32_53] : memref<512x32xf32, #tpu.memory_space<any>> -> memref<1x32xf32, #tpu.memory_space<any>>
    %c41_i32 = arith.constant 41 : i32
    %c0_i32_54 = arith.constant 0 : i32
    %69 = tpu.memref_slice %arg13[%c41_i32, %c0_i32_54] : memref<64x32xf32, #tpu.memory_space<vmem>> -> memref<1x32xf32, #tpu.memory_space<vmem>>
    tpu.enqueue_dma source(%68 : memref<1x32xf32, #tpu.memory_space<any>>) target(%69 : memref<1x32xf32, #tpu.memory_space<vmem>>) target_semaphore(%arg14 : memref<!tpu.dma_semaphore, #tpu.memory_space<semaphore_mem>>)
    %c14 = arith.constant 14 : index
    %70 = memref.load %arg1[%c14] : memref<64xi32, #tpu.memory_space<smem>>
    %c0_i32_55 = arith.constant 0 : i32
    %c511_i32_56 = arith.constant 511 : i32
    %71 = arith.maxsi %c0_i32_55, %70 : i32
    %72 = arith.minsi %c511_i32_56, %71 : i32
    %c0_i32_57 = arith.constant 0 : i32
    %73 = tpu.memref_slice %arg2[%72, %c0_i32_57] : memref<512x32xf32, #tpu.memory_space<any>> -> memref<1x32xf32, #tpu.memory_space<any>>
    %c49_i32 = arith.constant 49 : i32
    %c0_i32_58 = arith.constant 0 : i32
    %74 = tpu.memref_slice %arg13[%c49_i32, %c0_i32_58] : memref<64x32xf32, #tpu.memory_space<vmem>> -> memref<1x32xf32, #tpu.memory_space<vmem>>
    tpu.enqueue_dma source(%73 : memref<1x32xf32, #tpu.memory_space<any>>) target(%74 : memref<1x32xf32, #tpu.memory_space<vmem>>) target_semaphore(%arg14 : memref<!tpu.dma_semaphore, #tpu.memory_space<semaphore_mem>>)
    %c15 = arith.constant 15 : index
    %75 = memref.load %arg1[%c15] : memref<64xi32, #tpu.memory_space<smem>>
    %c0_i32_59 = arith.constant 0 : i32
    %c511_i32_60 = arith.constant 511 : i32
    %76 = arith.maxsi %c0_i32_59, %75 : i32
    %77 = arith.minsi %c511_i32_60, %76 : i32
    %c0_i32_61 = arith.constant 0 : i32
    %78 = tpu.memref_slice %arg2[%77, %c0_i32_61] : memref<512x32xf32, #tpu.memory_space<any>> -> memref<1x32xf32, #tpu.memory_space<any>>
    %c57_i32 = arith.constant 57 : i32
    %c0_i32_62 = arith.constant 0 : i32
    %79 = tpu.memref_slice %arg13[%c57_i32, %c0_i32_62] : memref<64x32xf32, #tpu.memory_space<vmem>> -> memref<1x32xf32, #tpu.memory_space<vmem>>
    tpu.enqueue_dma source(%78 : memref<1x32xf32, #tpu.memory_space<any>>) target(%79 : memref<1x32xf32, #tpu.memory_space<vmem>>) target_semaphore(%arg14 : memref<!tpu.dma_semaphore, #tpu.memory_space<semaphore_mem>>)
    %c16 = arith.constant 16 : index
    %80 = memref.load %arg1[%c16] : memref<64xi32, #tpu.memory_space<smem>>
    %c0_i32_63 = arith.constant 0 : i32
    %c511_i32_64 = arith.constant 511 : i32
    %81 = arith.maxsi %c0_i32_63, %80 : i32
    %82 = arith.minsi %c511_i32_64, %81 : i32
    %c0_i32_65 = arith.constant 0 : i32
    %83 = tpu.memref_slice %arg2[%82, %c0_i32_65] : memref<512x32xf32, #tpu.memory_space<any>> -> memref<1x32xf32, #tpu.memory_space<any>>
    %c2_i32 = arith.constant 2 : i32
    %c0_i32_66 = arith.constant 0 : i32
    %84 = tpu.memref_slice %arg13[%c2_i32, %c0_i32_66] : memref<64x32xf32, #tpu.memory_space<vmem>> -> memref<1x32xf32, #tpu.memory_space<vmem>>
    tpu.enqueue_dma source(%83 : memref<1x32xf32, #tpu.memory_space<any>>) target(%84 : memref<1x32xf32, #tpu.memory_space<vmem>>) target_semaphore(%arg14 : memref<!tpu.dma_semaphore, #tpu.memory_space<semaphore_mem>>)
    %c17 = arith.constant 17 : index
    %85 = memref.load %arg1[%c17] : memref<64xi32, #tpu.memory_space<smem>>
    %c0_i32_67 = arith.constant 0 : i32
    %c511_i32_68 = arith.constant 511 : i32
    %86 = arith.maxsi %c0_i32_67, %85 : i32
    %87 = arith.minsi %c511_i32_68, %86 : i32
    %c0_i32_69 = arith.constant 0 : i32
    %88 = tpu.memref_slice %arg2[%87, %c0_i32_69] : memref<512x32xf32, #tpu.memory_space<any>> -> memref<1x32xf32, #tpu.memory_space<any>>
    %c10_i32 = arith.constant 10 : i32
    %c0_i32_70 = arith.constant 0 : i32
    %89 = tpu.memref_slice %arg13[%c10_i32, %c0_i32_70] : memref<64x32xf32, #tpu.memory_space<vmem>> -> memref<1x32xf32, #tpu.memory_space<vmem>>
    tpu.enqueue_dma source(%88 : memref<1x32xf32, #tpu.memory_space<any>>) target(%89 : memref<1x32xf32, #tpu.memory_space<vmem>>) target_semaphore(%arg14 : memref<!tpu.dma_semaphore, #tpu.memory_space<semaphore_mem>>)
    %c18 = arith.constant 18 : index
    %90 = memref.load %arg1[%c18] : memref<64xi32, #tpu.memory_space<smem>>
    %c0_i32_71 = arith.constant 0 : i32
    %c511_i32_72 = arith.constant 511 : i32
    %91 = arith.maxsi %c0_i32_71, %90 : i32
    %92 = arith.minsi %c511_i32_72, %91 : i32
    %c0_i32_73 = arith.constant 0 : i32
    %93 = tpu.memref_slice %arg2[%92, %c0_i32_73] : memref<512x32xf32, #tpu.memory_space<any>> -> memref<1x32xf32, #tpu.memory_space<any>>
    %c18_i32 = arith.constant 18 : i32
    %c0_i32_74 = arith.constant 0 : i32
    %94 = tpu.memref_slice %arg13[%c18_i32, %c0_i32_74] : memref<64x32xf32, #tpu.memory_space<vmem>> -> memref<1x32xf32, #tpu.memory_space<vmem>>
    tpu.enqueue_dma source(%93 : memref<1x32xf32, #tpu.memory_space<any>>) target(%94 : memref<1x32xf32, #tpu.memory_space<vmem>>) target_semaphore(%arg14 : memref<!tpu.dma_semaphore, #tpu.memory_space<semaphore_mem>>)
    %c19 = arith.constant 19 : index
    %95 = memref.load %arg1[%c19] : memref<64xi32, #tpu.memory_space<smem>>
    %c0_i32_75 = arith.constant 0 : i32
    %c511_i32_76 = arith.constant 511 : i32
    %96 = arith.maxsi %c0_i32_75, %95 : i32
    %97 = arith.minsi %c511_i32_76, %96 : i32
    %c0_i32_77 = arith.constant 0 : i32
    %98 = tpu.memref_slice %arg2[%97, %c0_i32_77] : memref<512x32xf32, #tpu.memory_space<any>> -> memref<1x32xf32, #tpu.memory_space<any>>
    %c26_i32 = arith.constant 26 : i32
    %c0_i32_78 = arith.constant 0 : i32
    %99 = tpu.memref_slice %arg13[%c26_i32, %c0_i32_78] : memref<64x32xf32, #tpu.memory_space<vmem>> -> memref<1x32xf32, #tpu.memory_space<vmem>>
    tpu.enqueue_dma source(%98 : memref<1x32xf32, #tpu.memory_space<any>>) target(%99 : memref<1x32xf32, #tpu.memory_space<vmem>>) target_semaphore(%arg14 : memref<!tpu.dma_semaphore, #tpu.memory_space<semaphore_mem>>)
    %c20 = arith.constant 20 : index
    %100 = memref.load %arg1[%c20] : memref<64xi32, #tpu.memory_space<smem>>
    %c0_i32_79 = arith.constant 0 : i32
    %c511_i32_80 = arith.constant 511 : i32
    %101 = arith.maxsi %c0_i32_79, %100 : i32
    %102 = arith.minsi %c511_i32_80, %101 : i32
    %c0_i32_81 = arith.constant 0 : i32
    %103 = tpu.memref_slice %arg2[%102, %c0_i32_81] : memref<512x32xf32, #tpu.memory_space<any>> -> memref<1x32xf32, #tpu.memory_space<any>>
    %c34_i32 = arith.constant 34 : i32
    %c0_i32_82 = arith.constant 0 : i32
    %104 = tpu.memref_slice %arg13[%c34_i32, %c0_i32_82] : memref<64x32xf32, #tpu.memory_space<vmem>> -> memref<1x32xf32, #tpu.memory_space<vmem>>
    tpu.enqueue_dma source(%103 : memref<1x32xf32, #tpu.memory_space<any>>) target(%104 : memref<1x32xf32, #tpu.memory_space<vmem>>) target_semaphore(%arg14 : memref<!tpu.dma_semaphore, #tpu.memory_space<semaphore_mem>>)
    %c21 = arith.constant 21 : index
    %105 = memref.load %arg1[%c21] : memref<64xi32, #tpu.memory_space<smem>>
    %c0_i32_83 = arith.constant 0 : i32
    %c511_i32_84 = arith.constant 511 : i32
    %106 = arith.maxsi %c0_i32_83, %105 : i32
    %107 = arith.minsi %c511_i32_84, %106 : i32
    %c0_i32_85 = arith.constant 0 : i32
    %108 = tpu.memref_slice %arg2[%107, %c0_i32_85] : memref<512x32xf32, #tpu.memory_space<any>> -> memref<1x32xf32, #tpu.memory_space<any>>
    %c42_i32 = arith.constant 42 : i32
    %c0_i32_86 = arith.constant 0 : i32
    %109 = tpu.memref_slice %arg13[%c42_i32, %c0_i32_86] : memref<64x32xf32, #tpu.memory_space<vmem>> -> memref<1x32xf32, #tpu.memory_space<vmem>>
    tpu.enqueue_dma source(%108 : memref<1x32xf32, #tpu.memory_space<any>>) target(%109 : memref<1x32xf32, #tpu.memory_space<vmem>>) target_semaphore(%arg14 : memref<!tpu.dma_semaphore, #tpu.memory_space<semaphore_mem>>)
    %c22 = arith.constant 22 : index
    %110 = memref.load %arg1[%c22] : memref<64xi32, #tpu.memory_space<smem>>
    %c0_i32_87 = arith.constant 0 : i32
    %c511_i32_88 = arith.constant 511 : i32
    %111 = arith.maxsi %c0_i32_87, %110 : i32
    %112 = arith.minsi %c511_i32_88, %111 : i32
    %c0_i32_89 = arith.constant 0 : i32
    %113 = tpu.memref_slice %arg2[%112, %c0_i32_89] : memref<512x32xf32, #tpu.memory_space<any>> -> memref<1x32xf32, #tpu.memory_space<any>>
    %c50_i32 = arith.constant 50 : i32
    %c0_i32_90 = arith.constant 0 : i32
    %114 = tpu.memref_slice %arg13[%c50_i32, %c0_i32_90] : memref<64x32xf32, #tpu.memory_space<vmem>> -> memref<1x32xf32, #tpu.memory_space<vmem>>
    tpu.enqueue_dma source(%113 : memref<1x32xf32, #tpu.memory_space<any>>) target(%114 : memref<1x32xf32, #tpu.memory_space<vmem>>) target_semaphore(%arg14 : memref<!tpu.dma_semaphore, #tpu.memory_space<semaphore_mem>>)
    %c23 = arith.constant 23 : index
    %115 = memref.load %arg1[%c23] : memref<64xi32, #tpu.memory_space<smem>>
    %c0_i32_91 = arith.constant 0 : i32
    %c511_i32_92 = arith.constant 511 : i32
    %116 = arith.maxsi %c0_i32_91, %115 : i32
    %117 = arith.minsi %c511_i32_92, %116 : i32
    %c0_i32_93 = arith.constant 0 : i32
    %118 = tpu.memref_slice %arg2[%117, %c0_i32_93] : memref<512x32xf32, #tpu.memory_space<any>> -> memref<1x32xf32, #tpu.memory_space<any>>
    %c58_i32 = arith.constant 58 : i32
    %c0_i32_94 = arith.constant 0 : i32
    %119 = tpu.memref_slice %arg13[%c58_i32, %c0_i32_94] : memref<64x32xf32, #tpu.memory_space<vmem>> -> memref<1x32xf32, #tpu.memory_space<vmem>>
    tpu.enqueue_dma source(%118 : memref<1x32xf32, #tpu.memory_space<any>>) target(%119 : memref<1x32xf32, #tpu.memory_space<vmem>>) target_semaphore(%arg14 : memref<!tpu.dma_semaphore, #tpu.memory_space<semaphore_mem>>)
    %c24 = arith.constant 24 : index
    %120 = memref.load %arg1[%c24] : memref<64xi32, #tpu.memory_space<smem>>
    %c0_i32_95 = arith.constant 0 : i32
    %c511_i32_96 = arith.constant 511 : i32
    %121 = arith.maxsi %c0_i32_95, %120 : i32
    %122 = arith.minsi %c511_i32_96, %121 : i32
    %c0_i32_97 = arith.constant 0 : i32
    %123 = tpu.memref_slice %arg2[%122, %c0_i32_97] : memref<512x32xf32, #tpu.memory_space<any>> -> memref<1x32xf32, #tpu.memory_space<any>>
    %c3_i32 = arith.constant 3 : i32
    %c0_i32_98 = arith.constant 0 : i32
    %124 = tpu.memref_slice %arg13[%c3_i32, %c0_i32_98] : memref<64x32xf32, #tpu.memory_space<vmem>> -> memref<1x32xf32, #tpu.memory_space<vmem>>
    tpu.enqueue_dma source(%123 : memref<1x32xf32, #tpu.memory_space<any>>) target(%124 : memref<1x32xf32, #tpu.memory_space<vmem>>) target_semaphore(%arg14 : memref<!tpu.dma_semaphore, #tpu.memory_space<semaphore_mem>>)
    %c25 = arith.constant 25 : index
    %125 = memref.load %arg1[%c25] : memref<64xi32, #tpu.memory_space<smem>>
    %c0_i32_99 = arith.constant 0 : i32
    %c511_i32_100 = arith.constant 511 : i32
    %126 = arith.maxsi %c0_i32_99, %125 : i32
    %127 = arith.minsi %c511_i32_100, %126 : i32
    %c0_i32_101 = arith.constant 0 : i32
    %128 = tpu.memref_slice %arg2[%127, %c0_i32_101] : memref<512x32xf32, #tpu.memory_space<any>> -> memref<1x32xf32, #tpu.memory_space<any>>
    %c11_i32 = arith.constant 11 : i32
    %c0_i32_102 = arith.constant 0 : i32
    %129 = tpu.memref_slice %arg13[%c11_i32, %c0_i32_102] : memref<64x32xf32, #tpu.memory_space<vmem>> -> memref<1x32xf32, #tpu.memory_space<vmem>>
    tpu.enqueue_dma source(%128 : memref<1x32xf32, #tpu.memory_space<any>>) target(%129 : memref<1x32xf32, #tpu.memory_space<vmem>>) target_semaphore(%arg14 : memref<!tpu.dma_semaphore, #tpu.memory_space<semaphore_mem>>)
    %c26 = arith.constant 26 : index
    %130 = memref.load %arg1[%c26] : memref<64xi32, #tpu.memory_space<smem>>
    %c0_i32_103 = arith.constant 0 : i32
    %c511_i32_104 = arith.constant 511 : i32
    %131 = arith.maxsi %c0_i32_103, %130 : i32
    %132 = arith.minsi %c511_i32_104, %131 : i32
    %c0_i32_105 = arith.constant 0 : i32
    %133 = tpu.memref_slice %arg2[%132, %c0_i32_105] : memref<512x32xf32, #tpu.memory_space<any>> -> memref<1x32xf32, #tpu.memory_space<any>>
    %c19_i32 = arith.constant 19 : i32
    %c0_i32_106 = arith.constant 0 : i32
    %134 = tpu.memref_slice %arg13[%c19_i32, %c0_i32_106] : memref<64x32xf32, #tpu.memory_space<vmem>> -> memref<1x32xf32, #tpu.memory_space<vmem>>
    tpu.enqueue_dma source(%133 : memref<1x32xf32, #tpu.memory_space<any>>) target(%134 : memref<1x32xf32, #tpu.memory_space<vmem>>) target_semaphore(%arg14 : memref<!tpu.dma_semaphore, #tpu.memory_space<semaphore_mem>>)
    %c27 = arith.constant 27 : index
    %135 = memref.load %arg1[%c27] : memref<64xi32, #tpu.memory_space<smem>>
    %c0_i32_107 = arith.constant 0 : i32
    %c511_i32_108 = arith.constant 511 : i32
    %136 = arith.maxsi %c0_i32_107, %135 : i32
    %137 = arith.minsi %c511_i32_108, %136 : i32
    %c0_i32_109 = arith.constant 0 : i32
    %138 = tpu.memref_slice %arg2[%137, %c0_i32_109] : memref<512x32xf32, #tpu.memory_space<any>> -> memref<1x32xf32, #tpu.memory_space<any>>
    %c27_i32 = arith.constant 27 : i32
    %c0_i32_110 = arith.constant 0 : i32
    %139 = tpu.memref_slice %arg13[%c27_i32, %c0_i32_110] : memref<64x32xf32, #tpu.memory_space<vmem>> -> memref<1x32xf32, #tpu.memory_space<vmem>>
    tpu.enqueue_dma source(%138 : memref<1x32xf32, #tpu.memory_space<any>>) target(%139 : memref<1x32xf32, #tpu.memory_space<vmem>>) target_semaphore(%arg14 : memref<!tpu.dma_semaphore, #tpu.memory_space<semaphore_mem>>)
    %c28 = arith.constant 28 : index
    %140 = memref.load %arg1[%c28] : memref<64xi32, #tpu.memory_space<smem>>
    %c0_i32_111 = arith.constant 0 : i32
    %c511_i32_112 = arith.constant 511 : i32
    %141 = arith.maxsi %c0_i32_111, %140 : i32
    %142 = arith.minsi %c511_i32_112, %141 : i32
    %c0_i32_113 = arith.constant 0 : i32
    %143 = tpu.memref_slice %arg2[%142, %c0_i32_113] : memref<512x32xf32, #tpu.memory_space<any>> -> memref<1x32xf32, #tpu.memory_space<any>>
    %c35_i32 = arith.constant 35 : i32
    %c0_i32_114 = arith.constant 0 : i32
    %144 = tpu.memref_slice %arg13[%c35_i32, %c0_i32_114] : memref<64x32xf32, #tpu.memory_space<vmem>> -> memref<1x32xf32, #tpu.memory_space<vmem>>
    tpu.enqueue_dma source(%143 : memref<1x32xf32, #tpu.memory_space<any>>) target(%144 : memref<1x32xf32, #tpu.memory_space<vmem>>) target_semaphore(%arg14 : memref<!tpu.dma_semaphore, #tpu.memory_space<semaphore_mem>>)
    %c29 = arith.constant 29 : index
    %145 = memref.load %arg1[%c29] : memref<64xi32, #tpu.memory_space<smem>>
    %c0_i32_115 = arith.constant 0 : i32
    %c511_i32_116 = arith.constant 511 : i32
    %146 = arith.maxsi %c0_i32_115, %145 : i32
    %147 = arith.minsi %c511_i32_116, %146 : i32
    %c0_i32_117 = arith.constant 0 : i32
    %148 = tpu.memref_slice %arg2[%147, %c0_i32_117] : memref<512x32xf32, #tpu.memory_space<any>> -> memref<1x32xf32, #tpu.memory_space<any>>
    %c43_i32 = arith.constant 43 : i32
    %c0_i32_118 = arith.constant 0 : i32
    %149 = tpu.memref_slice %arg13[%c43_i32, %c0_i32_118] : memref<64x32xf32, #tpu.memory_space<vmem>> -> memref<1x32xf32, #tpu.memory_space<vmem>>
    tpu.enqueue_dma source(%148 : memref<1x32xf32, #tpu.memory_space<any>>) target(%149 : memref<1x32xf32, #tpu.memory_space<vmem>>) target_semaphore(%arg14 : memref<!tpu.dma_semaphore, #tpu.memory_space<semaphore_mem>>)
    %c30 = arith.constant 30 : index
    %150 = memref.load %arg1[%c30] : memref<64xi32, #tpu.memory_space<smem>>
    %c0_i32_119 = arith.constant 0 : i32
    %c511_i32_120 = arith.constant 511 : i32
    %151 = arith.maxsi %c0_i32_119, %150 : i32
    %152 = arith.minsi %c511_i32_120, %151 : i32
    %c0_i32_121 = arith.constant 0 : i32
    %153 = tpu.memref_slice %arg2[%152, %c0_i32_121] : memref<512x32xf32, #tpu.memory_space<any>> -> memref<1x32xf32, #tpu.memory_space<any>>
    %c51_i32 = arith.constant 51 : i32
    %c0_i32_122 = arith.constant 0 : i32
    %154 = tpu.memref_slice %arg13[%c51_i32, %c0_i32_122] : memref<64x32xf32, #tpu.memory_space<vmem>> -> memref<1x32xf32, #tpu.memory_space<vmem>>
    tpu.enqueue_dma source(%153 : memref<1x32xf32, #tpu.memory_space<any>>) target(%154 : memref<1x32xf32, #tpu.memory_space<vmem>>) target_semaphore(%arg14 : memref<!tpu.dma_semaphore, #tpu.memory_space<semaphore_mem>>)
    %c31 = arith.constant 31 : index
    %155 = memref.load %arg1[%c31] : memref<64xi32, #tpu.memory_space<smem>>
    %c0_i32_123 = arith.constant 0 : i32
    %c511_i32_124 = arith.constant 511 : i32
    %156 = arith.maxsi %c0_i32_123, %155 : i32
    %157 = arith.minsi %c511_i32_124, %156 : i32
    %c0_i32_125 = arith.constant 0 : i32
    %158 = tpu.memref_slice %arg2[%157, %c0_i32_125] : memref<512x32xf32, #tpu.memory_space<any>> -> memref<1x32xf32, #tpu.memory_space<any>>
    %c59_i32 = arith.constant 59 : i32
    %c0_i32_126 = arith.constant 0 : i32
    %159 = tpu.memref_slice %arg13[%c59_i32, %c0_i32_126] : memref<64x32xf32, #tpu.memory_space<vmem>> -> memref<1x32xf32, #tpu.memory_space<vmem>>
    tpu.enqueue_dma source(%158 : memref<1x32xf32, #tpu.memory_space<any>>) target(%159 : memref<1x32xf32, #tpu.memory_space<vmem>>) target_semaphore(%arg14 : memref<!tpu.dma_semaphore, #tpu.memory_space<semaphore_mem>>)
    %c32 = arith.constant 32 : index
    %160 = memref.load %arg1[%c32] : memref<64xi32, #tpu.memory_space<smem>>
    %c0_i32_127 = arith.constant 0 : i32
    %c511_i32_128 = arith.constant 511 : i32
    %161 = arith.maxsi %c0_i32_127, %160 : i32
    %162 = arith.minsi %c511_i32_128, %161 : i32
    %c0_i32_129 = arith.constant 0 : i32
    %163 = tpu.memref_slice %arg2[%162, %c0_i32_129] : memref<512x32xf32, #tpu.memory_space<any>> -> memref<1x32xf32, #tpu.memory_space<any>>
    %c4_i32 = arith.constant 4 : i32
    %c0_i32_130 = arith.constant 0 : i32
    %164 = tpu.memref_slice %arg13[%c4_i32, %c0_i32_130] : memref<64x32xf32, #tpu.memory_space<vmem>> -> memref<1x32xf32, #tpu.memory_space<vmem>>
    tpu.enqueue_dma source(%163 : memref<1x32xf32, #tpu.memory_space<any>>) target(%164 : memref<1x32xf32, #tpu.memory_space<vmem>>) target_semaphore(%arg14 : memref<!tpu.dma_semaphore, #tpu.memory_space<semaphore_mem>>)
    %c33 = arith.constant 33 : index
    %165 = memref.load %arg1[%c33] : memref<64xi32, #tpu.memory_space<smem>>
    %c0_i32_131 = arith.constant 0 : i32
    %c511_i32_132 = arith.constant 511 : i32
    %166 = arith.maxsi %c0_i32_131, %165 : i32
    %167 = arith.minsi %c511_i32_132, %166 : i32
    %c0_i32_133 = arith.constant 0 : i32
    %168 = tpu.memref_slice %arg2[%167, %c0_i32_133] : memref<512x32xf32, #tpu.memory_space<any>> -> memref<1x32xf32, #tpu.memory_space<any>>
    %c12_i32 = arith.constant 12 : i32
    %c0_i32_134 = arith.constant 0 : i32
    %169 = tpu.memref_slice %arg13[%c12_i32, %c0_i32_134] : memref<64x32xf32, #tpu.memory_space<vmem>> -> memref<1x32xf32, #tpu.memory_space<vmem>>
    tpu.enqueue_dma source(%168 : memref<1x32xf32, #tpu.memory_space<any>>) target(%169 : memref<1x32xf32, #tpu.memory_space<vmem>>) target_semaphore(%arg14 : memref<!tpu.dma_semaphore, #tpu.memory_space<semaphore_mem>>)
    %c34 = arith.constant 34 : index
    %170 = memref.load %arg1[%c34] : memref<64xi32, #tpu.memory_space<smem>>
    %c0_i32_135 = arith.constant 0 : i32
    %c511_i32_136 = arith.constant 511 : i32
    %171 = arith.maxsi %c0_i32_135, %170 : i32
    %172 = arith.minsi %c511_i32_136, %171 : i32
    %c0_i32_137 = arith.constant 0 : i32
    %173 = tpu.memref_slice %arg2[%172, %c0_i32_137] : memref<512x32xf32, #tpu.memory_space<any>> -> memref<1x32xf32, #tpu.memory_space<any>>
    %c20_i32 = arith.constant 20 : i32
    %c0_i32_138 = arith.constant 0 : i32
    %174 = tpu.memref_slice %arg13[%c20_i32, %c0_i32_138] : memref<64x32xf32, #tpu.memory_space<vmem>> -> memref<1x32xf32, #tpu.memory_space<vmem>>
    tpu.enqueue_dma source(%173 : memref<1x32xf32, #tpu.memory_space<any>>) target(%174 : memref<1x32xf32, #tpu.memory_space<vmem>>) target_semaphore(%arg14 : memref<!tpu.dma_semaphore, #tpu.memory_space<semaphore_mem>>)
    %c35 = arith.constant 35 : index
    %175 = memref.load %arg1[%c35] : memref<64xi32, #tpu.memory_space<smem>>
    %c0_i32_139 = arith.constant 0 : i32
    %c511_i32_140 = arith.constant 511 : i32
    %176 = arith.maxsi %c0_i32_139, %175 : i32
    %177 = arith.minsi %c511_i32_140, %176 : i32
    %c0_i32_141 = arith.constant 0 : i32
    %178 = tpu.memref_slice %arg2[%177, %c0_i32_141] : memref<512x32xf32, #tpu.memory_space<any>> -> memref<1x32xf32, #tpu.memory_space<any>>
    %c28_i32 = arith.constant 28 : i32
    %c0_i32_142 = arith.constant 0 : i32
    %179 = tpu.memref_slice %arg13[%c28_i32, %c0_i32_142] : memref<64x32xf32, #tpu.memory_space<vmem>> -> memref<1x32xf32, #tpu.memory_space<vmem>>
    tpu.enqueue_dma source(%178 : memref<1x32xf32, #tpu.memory_space<any>>) target(%179 : memref<1x32xf32, #tpu.memory_space<vmem>>) target_semaphore(%arg14 : memref<!tpu.dma_semaphore, #tpu.memory_space<semaphore_mem>>)
    %c36 = arith.constant 36 : index
    %180 = memref.load %arg1[%c36] : memref<64xi32, #tpu.memory_space<smem>>
    %c0_i32_143 = arith.constant 0 : i32
    %c511_i32_144 = arith.constant 511 : i32
    %181 = arith.maxsi %c0_i32_143, %180 : i32
    %182 = arith.minsi %c511_i32_144, %181 : i32
    %c0_i32_145 = arith.constant 0 : i32
    %183 = tpu.memref_slice %arg2[%182, %c0_i32_145] : memref<512x32xf32, #tpu.memory_space<any>> -> memref<1x32xf32, #tpu.memory_space<any>>
    %c36_i32 = arith.constant 36 : i32
    %c0_i32_146 = arith.constant 0 : i32
    %184 = tpu.memref_slice %arg13[%c36_i32, %c0_i32_146] : memref<64x32xf32, #tpu.memory_space<vmem>> -> memref<1x32xf32, #tpu.memory_space<vmem>>
    tpu.enqueue_dma source(%183 : memref<1x32xf32, #tpu.memory_space<any>>) target(%184 : memref<1x32xf32, #tpu.memory_space<vmem>>) target_semaphore(%arg14 : memref<!tpu.dma_semaphore, #tpu.memory_space<semaphore_mem>>)
    %c37 = arith.constant 37 : index
    %185 = memref.load %arg1[%c37] : memref<64xi32, #tpu.memory_space<smem>>
    %c0_i32_147 = arith.constant 0 : i32
    %c511_i32_148 = arith.constant 511 : i32
    %186 = arith.maxsi %c0_i32_147, %185 : i32
    %187 = arith.minsi %c511_i32_148, %186 : i32
    %c0_i32_149 = arith.constant 0 : i32
    %188 = tpu.memref_slice %arg2[%187, %c0_i32_149] : memref<512x32xf32, #tpu.memory_space<any>> -> memref<1x32xf32, #tpu.memory_space<any>>
    %c44_i32 = arith.constant 44 : i32
    %c0_i32_150 = arith.constant 0 : i32
    %189 = tpu.memref_slice %arg13[%c44_i32, %c0_i32_150] : memref<64x32xf32, #tpu.memory_space<vmem>> -> memref<1x32xf32, #tpu.memory_space<vmem>>
    tpu.enqueue_dma source(%188 : memref<1x32xf32, #tpu.memory_space<any>>) target(%189 : memref<1x32xf32, #tpu.memory_space<vmem>>) target_semaphore(%arg14 : memref<!tpu.dma_semaphore, #tpu.memory_space<semaphore_mem>>)
    %c38 = arith.constant 38 : index
    %190 = memref.load %arg1[%c38] : memref<64xi32, #tpu.memory_space<smem>>
    %c0_i32_151 = arith.constant 0 : i32
    %c511_i32_152 = arith.constant 511 : i32
    %191 = arith.maxsi %c0_i32_151, %190 : i32
    %192 = arith.minsi %c511_i32_152, %191 : i32
    %c0_i32_153 = arith.constant 0 : i32
    %193 = tpu.memref_slice %arg2[%192, %c0_i32_153] : memref<512x32xf32, #tpu.memory_space<any>> -> memref<1x32xf32, #tpu.memory_space<any>>
    %c52_i32 = arith.constant 52 : i32
    %c0_i32_154 = arith.constant 0 : i32
    %194 = tpu.memref_slice %arg13[%c52_i32, %c0_i32_154] : memref<64x32xf32, #tpu.memory_space<vmem>> -> memref<1x32xf32, #tpu.memory_space<vmem>>
    tpu.enqueue_dma source(%193 : memref<1x32xf32, #tpu.memory_space<any>>) target(%194 : memref<1x32xf32, #tpu.memory_space<vmem>>) target_semaphore(%arg14 : memref<!tpu.dma_semaphore, #tpu.memory_space<semaphore_mem>>)
    %c39 = arith.constant 39 : index
    %195 = memref.load %arg1[%c39] : memref<64xi32, #tpu.memory_space<smem>>
    %c0_i32_155 = arith.constant 0 : i32
    %c511_i32_156 = arith.constant 511 : i32
    %196 = arith.maxsi %c0_i32_155, %195 : i32
    %197 = arith.minsi %c511_i32_156, %196 : i32
    %c0_i32_157 = arith.constant 0 : i32
    %198 = tpu.memref_slice %arg2[%197, %c0_i32_157] : memref<512x32xf32, #tpu.memory_space<any>> -> memref<1x32xf32, #tpu.memory_space<any>>
    %c60_i32 = arith.constant 60 : i32
    %c0_i32_158 = arith.constant 0 : i32
    %199 = tpu.memref_slice %arg13[%c60_i32, %c0_i32_158] : memref<64x32xf32, #tpu.memory_space<vmem>> -> memref<1x32xf32, #tpu.memory_space<vmem>>
    tpu.enqueue_dma source(%198 : memref<1x32xf32, #tpu.memory_space<any>>) target(%199 : memref<1x32xf32, #tpu.memory_space<vmem>>) target_semaphore(%arg14 : memref<!tpu.dma_semaphore, #tpu.memory_space<semaphore_mem>>)
    %c40 = arith.constant 40 : index
    %200 = memref.load %arg1[%c40] : memref<64xi32, #tpu.memory_space<smem>>
    %c0_i32_159 = arith.constant 0 : i32
    %c511_i32_160 = arith.constant 511 : i32
    %201 = arith.maxsi %c0_i32_159, %200 : i32
    %202 = arith.minsi %c511_i32_160, %201 : i32
    %c0_i32_161 = arith.constant 0 : i32
    %203 = tpu.memref_slice %arg2[%202, %c0_i32_161] : memref<512x32xf32, #tpu.memory_space<any>> -> memref<1x32xf32, #tpu.memory_space<any>>
    %c5_i32 = arith.constant 5 : i32
    %c0_i32_162 = arith.constant 0 : i32
    %204 = tpu.memref_slice %arg13[%c5_i32, %c0_i32_162] : memref<64x32xf32, #tpu.memory_space<vmem>> -> memref<1x32xf32, #tpu.memory_space<vmem>>
    tpu.enqueue_dma source(%203 : memref<1x32xf32, #tpu.memory_space<any>>) target(%204 : memref<1x32xf32, #tpu.memory_space<vmem>>) target_semaphore(%arg14 : memref<!tpu.dma_semaphore, #tpu.memory_space<semaphore_mem>>)
    %c41 = arith.constant 41 : index
    %205 = memref.load %arg1[%c41] : memref<64xi32, #tpu.memory_space<smem>>
    %c0_i32_163 = arith.constant 0 : i32
    %c511_i32_164 = arith.constant 511 : i32
    %206 = arith.maxsi %c0_i32_163, %205 : i32
    %207 = arith.minsi %c511_i32_164, %206 : i32
    %c0_i32_165 = arith.constant 0 : i32
    %208 = tpu.memref_slice %arg2[%207, %c0_i32_165] : memref<512x32xf32, #tpu.memory_space<any>> -> memref<1x32xf32, #tpu.memory_space<any>>
    %c13_i32 = arith.constant 13 : i32
    %c0_i32_166 = arith.constant 0 : i32
    %209 = tpu.memref_slice %arg13[%c13_i32, %c0_i32_166] : memref<64x32xf32, #tpu.memory_space<vmem>> -> memref<1x32xf32, #tpu.memory_space<vmem>>
    tpu.enqueue_dma source(%208 : memref<1x32xf32, #tpu.memory_space<any>>) target(%209 : memref<1x32xf32, #tpu.memory_space<vmem>>) target_semaphore(%arg14 : memref<!tpu.dma_semaphore, #tpu.memory_space<semaphore_mem>>)
    %c42 = arith.constant 42 : index
    %210 = memref.load %arg1[%c42] : memref<64xi32, #tpu.memory_space<smem>>
    %c0_i32_167 = arith.constant 0 : i32
    %c511_i32_168 = arith.constant 511 : i32
    %211 = arith.maxsi %c0_i32_167, %210 : i32
    %212 = arith.minsi %c511_i32_168, %211 : i32
    %c0_i32_169 = arith.constant 0 : i32
    %213 = tpu.memref_slice %arg2[%212, %c0_i32_169] : memref<512x32xf32, #tpu.memory_space<any>> -> memref<1x32xf32, #tpu.memory_space<any>>
    %c21_i32 = arith.constant 21 : i32
    %c0_i32_170 = arith.constant 0 : i32
    %214 = tpu.memref_slice %arg13[%c21_i32, %c0_i32_170] : memref<64x32xf32, #tpu.memory_space<vmem>> -> memref<1x32xf32, #tpu.memory_space<vmem>>
    tpu.enqueue_dma source(%213 : memref<1x32xf32, #tpu.memory_space<any>>) target(%214 : memref<1x32xf32, #tpu.memory_space<vmem>>) target_semaphore(%arg14 : memref<!tpu.dma_semaphore, #tpu.memory_space<semaphore_mem>>)
    %c43 = arith.constant 43 : index
    %215 = memref.load %arg1[%c43] : memref<64xi32, #tpu.memory_space<smem>>
    %c0_i32_171 = arith.constant 0 : i32
    %c511_i32_172 = arith.constant 511 : i32
    %216 = arith.maxsi %c0_i32_171, %215 : i32
    %217 = arith.minsi %c511_i32_172, %216 : i32
    %c0_i32_173 = arith.constant 0 : i32
    %218 = tpu.memref_slice %arg2[%217, %c0_i32_173] : memref<512x32xf32, #tpu.memory_space<any>> -> memref<1x32xf32, #tpu.memory_space<any>>
    %c29_i32 = arith.constant 29 : i32
    %c0_i32_174 = arith.constant 0 : i32
    %219 = tpu.memref_slice %arg13[%c29_i32, %c0_i32_174] : memref<64x32xf32, #tpu.memory_space<vmem>> -> memref<1x32xf32, #tpu.memory_space<vmem>>
    tpu.enqueue_dma source(%218 : memref<1x32xf32, #tpu.memory_space<any>>) target(%219 : memref<1x32xf32, #tpu.memory_space<vmem>>) target_semaphore(%arg14 : memref<!tpu.dma_semaphore, #tpu.memory_space<semaphore_mem>>)
    %c44 = arith.constant 44 : index
    %220 = memref.load %arg1[%c44] : memref<64xi32, #tpu.memory_space<smem>>
    %c0_i32_175 = arith.constant 0 : i32
    %c511_i32_176 = arith.constant 511 : i32
    %221 = arith.maxsi %c0_i32_175, %220 : i32
    %222 = arith.minsi %c511_i32_176, %221 : i32
    %c0_i32_177 = arith.constant 0 : i32
    %223 = tpu.memref_slice %arg2[%222, %c0_i32_177] : memref<512x32xf32, #tpu.memory_space<any>> -> memref<1x32xf32, #tpu.memory_space<any>>
    %c37_i32 = arith.constant 37 : i32
    %c0_i32_178 = arith.constant 0 : i32
    %224 = tpu.memref_slice %arg13[%c37_i32, %c0_i32_178] : memref<64x32xf32, #tpu.memory_space<vmem>> -> memref<1x32xf32, #tpu.memory_space<vmem>>
    tpu.enqueue_dma source(%223 : memref<1x32xf32, #tpu.memory_space<any>>) target(%224 : memref<1x32xf32, #tpu.memory_space<vmem>>) target_semaphore(%arg14 : memref<!tpu.dma_semaphore, #tpu.memory_space<semaphore_mem>>)
    %c45 = arith.constant 45 : index
    %225 = memref.load %arg1[%c45] : memref<64xi32, #tpu.memory_space<smem>>
    %c0_i32_179 = arith.constant 0 : i32
    %c511_i32_180 = arith.constant 511 : i32
    %226 = arith.maxsi %c0_i32_179, %225 : i32
    %227 = arith.minsi %c511_i32_180, %226 : i32
    %c0_i32_181 = arith.constant 0 : i32
    %228 = tpu.memref_slice %arg2[%227, %c0_i32_181] : memref<512x32xf32, #tpu.memory_space<any>> -> memref<1x32xf32, #tpu.memory_space<any>>
    %c45_i32 = arith.constant 45 : i32
    %c0_i32_182 = arith.constant 0 : i32
    %229 = tpu.memref_slice %arg13[%c45_i32, %c0_i32_182] : memref<64x32xf32, #tpu.memory_space<vmem>> -> memref<1x32xf32, #tpu.memory_space<vmem>>
    tpu.enqueue_dma source(%228 : memref<1x32xf32, #tpu.memory_space<any>>) target(%229 : memref<1x32xf32, #tpu.memory_space<vmem>>) target_semaphore(%arg14 : memref<!tpu.dma_semaphore, #tpu.memory_space<semaphore_mem>>)
    %c46 = arith.constant 46 : index
    %230 = memref.load %arg1[%c46] : memref<64xi32, #tpu.memory_space<smem>>
    %c0_i32_183 = arith.constant 0 : i32
    %c511_i32_184 = arith.constant 511 : i32
    %231 = arith.maxsi %c0_i32_183, %230 : i32
    %232 = arith.minsi %c511_i32_184, %231 : i32
    %c0_i32_185 = arith.constant 0 : i32
    %233 = tpu.memref_slice %arg2[%232, %c0_i32_185] : memref<512x32xf32, #tpu.memory_space<any>> -> memref<1x32xf32, #tpu.memory_space<any>>
    %c53_i32 = arith.constant 53 : i32
    %c0_i32_186 = arith.constant 0 : i32
    %234 = tpu.memref_slice %arg13[%c53_i32, %c0_i32_186] : memref<64x32xf32, #tpu.memory_space<vmem>> -> memref<1x32xf32, #tpu.memory_space<vmem>>
    tpu.enqueue_dma source(%233 : memref<1x32xf32, #tpu.memory_space<any>>) target(%234 : memref<1x32xf32, #tpu.memory_space<vmem>>) target_semaphore(%arg14 : memref<!tpu.dma_semaphore, #tpu.memory_space<semaphore_mem>>)
    %c47 = arith.constant 47 : index
    %235 = memref.load %arg1[%c47] : memref<64xi32, #tpu.memory_space<smem>>
    %c0_i32_187 = arith.constant 0 : i32
    %c511_i32_188 = arith.constant 511 : i32
    %236 = arith.maxsi %c0_i32_187, %235 : i32
    %237 = arith.minsi %c511_i32_188, %236 : i32
    %c0_i32_189 = arith.constant 0 : i32
    %238 = tpu.memref_slice %arg2[%237, %c0_i32_189] : memref<512x32xf32, #tpu.memory_space<any>> -> memref<1x32xf32, #tpu.memory_space<any>>
    %c61_i32 = arith.constant 61 : i32
    %c0_i32_190 = arith.constant 0 : i32
    %239 = tpu.memref_slice %arg13[%c61_i32, %c0_i32_190] : memref<64x32xf32, #tpu.memory_space<vmem>> -> memref<1x32xf32, #tpu.memory_space<vmem>>
    tpu.enqueue_dma source(%238 : memref<1x32xf32, #tpu.memory_space<any>>) target(%239 : memref<1x32xf32, #tpu.memory_space<vmem>>) target_semaphore(%arg14 : memref<!tpu.dma_semaphore, #tpu.memory_space<semaphore_mem>>)
    %c48 = arith.constant 48 : index
    %240 = memref.load %arg1[%c48] : memref<64xi32, #tpu.memory_space<smem>>
    %c0_i32_191 = arith.constant 0 : i32
    %c511_i32_192 = arith.constant 511 : i32
    %241 = arith.maxsi %c0_i32_191, %240 : i32
    %242 = arith.minsi %c511_i32_192, %241 : i32
    %c0_i32_193 = arith.constant 0 : i32
    %243 = tpu.memref_slice %arg2[%242, %c0_i32_193] : memref<512x32xf32, #tpu.memory_space<any>> -> memref<1x32xf32, #tpu.memory_space<any>>
    %c6_i32 = arith.constant 6 : i32
    %c0_i32_194 = arith.constant 0 : i32
    %244 = tpu.memref_slice %arg13[%c6_i32, %c0_i32_194] : memref<64x32xf32, #tpu.memory_space<vmem>> -> memref<1x32xf32, #tpu.memory_space<vmem>>
    tpu.enqueue_dma source(%243 : memref<1x32xf32, #tpu.memory_space<any>>) target(%244 : memref<1x32xf32, #tpu.memory_space<vmem>>) target_semaphore(%arg14 : memref<!tpu.dma_semaphore, #tpu.memory_space<semaphore_mem>>)
    %c49 = arith.constant 49 : index
    %245 = memref.load %arg1[%c49] : memref<64xi32, #tpu.memory_space<smem>>
    %c0_i32_195 = arith.constant 0 : i32
    %c511_i32_196 = arith.constant 511 : i32
    %246 = arith.maxsi %c0_i32_195, %245 : i32
    %247 = arith.minsi %c511_i32_196, %246 : i32
    %c0_i32_197 = arith.constant 0 : i32
    %248 = tpu.memref_slice %arg2[%247, %c0_i32_197] : memref<512x32xf32, #tpu.memory_space<any>> -> memref<1x32xf32, #tpu.memory_space<any>>
    %c14_i32 = arith.constant 14 : i32
    %c0_i32_198 = arith.constant 0 : i32
    %249 = tpu.memref_slice %arg13[%c14_i32, %c0_i32_198] : memref<64x32xf32, #tpu.memory_space<vmem>> -> memref<1x32xf32, #tpu.memory_space<vmem>>
    tpu.enqueue_dma source(%248 : memref<1x32xf32, #tpu.memory_space<any>>) target(%249 : memref<1x32xf32, #tpu.memory_space<vmem>>) target_semaphore(%arg14 : memref<!tpu.dma_semaphore, #tpu.memory_space<semaphore_mem>>)
    %c50 = arith.constant 50 : index
    %250 = memref.load %arg1[%c50] : memref<64xi32, #tpu.memory_space<smem>>
    %c0_i32_199 = arith.constant 0 : i32
    %c511_i32_200 = arith.constant 511 : i32
    %251 = arith.maxsi %c0_i32_199, %250 : i32
    %252 = arith.minsi %c511_i32_200, %251 : i32
    %c0_i32_201 = arith.constant 0 : i32
    %253 = tpu.memref_slice %arg2[%252, %c0_i32_201] : memref<512x32xf32, #tpu.memory_space<any>> -> memref<1x32xf32, #tpu.memory_space<any>>
    %c22_i32 = arith.constant 22 : i32
    %c0_i32_202 = arith.constant 0 : i32
    %254 = tpu.memref_slice %arg13[%c22_i32, %c0_i32_202] : memref<64x32xf32, #tpu.memory_space<vmem>> -> memref<1x32xf32, #tpu.memory_space<vmem>>
    tpu.enqueue_dma source(%253 : memref<1x32xf32, #tpu.memory_space<any>>) target(%254 : memref<1x32xf32, #tpu.memory_space<vmem>>) target_semaphore(%arg14 : memref<!tpu.dma_semaphore, #tpu.memory_space<semaphore_mem>>)
    %c51 = arith.constant 51 : index
    %255 = memref.load %arg1[%c51] : memref<64xi32, #tpu.memory_space<smem>>
    %c0_i32_203 = arith.constant 0 : i32
    %c511_i32_204 = arith.constant 511 : i32
    %256 = arith.maxsi %c0_i32_203, %255 : i32
    %257 = arith.minsi %c511_i32_204, %256 : i32
    %c0_i32_205 = arith.constant 0 : i32
    %258 = tpu.memref_slice %arg2[%257, %c0_i32_205] : memref<512x32xf32, #tpu.memory_space<any>> -> memref<1x32xf32, #tpu.memory_space<any>>
    %c30_i32 = arith.constant 30 : i32
    %c0_i32_206 = arith.constant 0 : i32
    %259 = tpu.memref_slice %arg13[%c30_i32, %c0_i32_206] : memref<64x32xf32, #tpu.memory_space<vmem>> -> memref<1x32xf32, #tpu.memory_space<vmem>>
    tpu.enqueue_dma source(%258 : memref<1x32xf32, #tpu.memory_space<any>>) target(%259 : memref<1x32xf32, #tpu.memory_space<vmem>>) target_semaphore(%arg14 : memref<!tpu.dma_semaphore, #tpu.memory_space<semaphore_mem>>)
    %c52 = arith.constant 52 : index
    %260 = memref.load %arg1[%c52] : memref<64xi32, #tpu.memory_space<smem>>
    %c0_i32_207 = arith.constant 0 : i32
    %c511_i32_208 = arith.constant 511 : i32
    %261 = arith.maxsi %c0_i32_207, %260 : i32
    %262 = arith.minsi %c511_i32_208, %261 : i32
    %c0_i32_209 = arith.constant 0 : i32
    %263 = tpu.memref_slice %arg2[%262, %c0_i32_209] : memref<512x32xf32, #tpu.memory_space<any>> -> memref<1x32xf32, #tpu.memory_space<any>>
    %c38_i32 = arith.constant 38 : i32
    %c0_i32_210 = arith.constant 0 : i32
    %264 = tpu.memref_slice %arg13[%c38_i32, %c0_i32_210] : memref<64x32xf32, #tpu.memory_space<vmem>> -> memref<1x32xf32, #tpu.memory_space<vmem>>
    tpu.enqueue_dma source(%263 : memref<1x32xf32, #tpu.memory_space<any>>) target(%264 : memref<1x32xf32, #tpu.memory_space<vmem>>) target_semaphore(%arg14 : memref<!tpu.dma_semaphore, #tpu.memory_space<semaphore_mem>>)
    %c53 = arith.constant 53 : index
    %265 = memref.load %arg1[%c53] : memref<64xi32, #tpu.memory_space<smem>>
    %c0_i32_211 = arith.constant 0 : i32
    %c511_i32_212 = arith.constant 511 : i32
    %266 = arith.maxsi %c0_i32_211, %265 : i32
    %267 = arith.minsi %c511_i32_212, %266 : i32
    %c0_i32_213 = arith.constant 0 : i32
    %268 = tpu.memref_slice %arg2[%267, %c0_i32_213] : memref<512x32xf32, #tpu.memory_space<any>> -> memref<1x32xf32, #tpu.memory_space<any>>
    %c46_i32 = arith.constant 46 : i32
    %c0_i32_214 = arith.constant 0 : i32
    %269 = tpu.memref_slice %arg13[%c46_i32, %c0_i32_214] : memref<64x32xf32, #tpu.memory_space<vmem>> -> memref<1x32xf32, #tpu.memory_space<vmem>>
    tpu.enqueue_dma source(%268 : memref<1x32xf32, #tpu.memory_space<any>>) target(%269 : memref<1x32xf32, #tpu.memory_space<vmem>>) target_semaphore(%arg14 : memref<!tpu.dma_semaphore, #tpu.memory_space<semaphore_mem>>)
    %c54 = arith.constant 54 : index
    %270 = memref.load %arg1[%c54] : memref<64xi32, #tpu.memory_space<smem>>
    %c0_i32_215 = arith.constant 0 : i32
    %c511_i32_216 = arith.constant 511 : i32
    %271 = arith.maxsi %c0_i32_215, %270 : i32
    %272 = arith.minsi %c511_i32_216, %271 : i32
    %c0_i32_217 = arith.constant 0 : i32
    %273 = tpu.memref_slice %arg2[%272, %c0_i32_217] : memref<512x32xf32, #tpu.memory_space<any>> -> memref<1x32xf32, #tpu.memory_space<any>>
    %c54_i32 = arith.constant 54 : i32
    %c0_i32_218 = arith.constant 0 : i32
    %274 = tpu.memref_slice %arg13[%c54_i32, %c0_i32_218] : memref<64x32xf32, #tpu.memory_space<vmem>> -> memref<1x32xf32, #tpu.memory_space<vmem>>
    tpu.enqueue_dma source(%273 : memref<1x32xf32, #tpu.memory_space<any>>) target(%274 : memref<1x32xf32, #tpu.memory_space<vmem>>) target_semaphore(%arg14 : memref<!tpu.dma_semaphore, #tpu.memory_space<semaphore_mem>>)
    %c55 = arith.constant 55 : index
    %275 = memref.load %arg1[%c55] : memref<64xi32, #tpu.memory_space<smem>>
    %c0_i32_219 = arith.constant 0 : i32
    %c511_i32_220 = arith.constant 511 : i32
    %276 = arith.maxsi %c0_i32_219, %275 : i32
    %277 = arith.minsi %c511_i32_220, %276 : i32
    %c0_i32_221 = arith.constant 0 : i32
    %278 = tpu.memref_slice %arg2[%277, %c0_i32_221] : memref<512x32xf32, #tpu.memory_space<any>> -> memref<1x32xf32, #tpu.memory_space<any>>
    %c62_i32 = arith.constant 62 : i32
    %c0_i32_222 = arith.constant 0 : i32
    %279 = tpu.memref_slice %arg13[%c62_i32, %c0_i32_222] : memref<64x32xf32, #tpu.memory_space<vmem>> -> memref<1x32xf32, #tpu.memory_space<vmem>>
    tpu.enqueue_dma source(%278 : memref<1x32xf32, #tpu.memory_space<any>>) target(%279 : memref<1x32xf32, #tpu.memory_space<vmem>>) target_semaphore(%arg14 : memref<!tpu.dma_semaphore, #tpu.memory_space<semaphore_mem>>)
    %c56 = arith.constant 56 : index
    %280 = memref.load %arg1[%c56] : memref<64xi32, #tpu.memory_space<smem>>
    %c0_i32_223 = arith.constant 0 : i32
    %c511_i32_224 = arith.constant 511 : i32
    %281 = arith.maxsi %c0_i32_223, %280 : i32
    %282 = arith.minsi %c511_i32_224, %281 : i32
    %c0_i32_225 = arith.constant 0 : i32
    %283 = tpu.memref_slice %arg2[%282, %c0_i32_225] : memref<512x32xf32, #tpu.memory_space<any>> -> memref<1x32xf32, #tpu.memory_space<any>>
    %c7_i32 = arith.constant 7 : i32
    %c0_i32_226 = arith.constant 0 : i32
    %284 = tpu.memref_slice %arg13[%c7_i32, %c0_i32_226] : memref<64x32xf32, #tpu.memory_space<vmem>> -> memref<1x32xf32, #tpu.memory_space<vmem>>
    tpu.enqueue_dma source(%283 : memref<1x32xf32, #tpu.memory_space<any>>) target(%284 : memref<1x32xf32, #tpu.memory_space<vmem>>) target_semaphore(%arg14 : memref<!tpu.dma_semaphore, #tpu.memory_space<semaphore_mem>>)
    %c57 = arith.constant 57 : index
    %285 = memref.load %arg1[%c57] : memref<64xi32, #tpu.memory_space<smem>>
    %c0_i32_227 = arith.constant 0 : i32
    %c511_i32_228 = arith.constant 511 : i32
    %286 = arith.maxsi %c0_i32_227, %285 : i32
    %287 = arith.minsi %c511_i32_228, %286 : i32
    %c0_i32_229 = arith.constant 0 : i32
    %288 = tpu.memref_slice %arg2[%287, %c0_i32_229] : memref<512x32xf32, #tpu.memory_space<any>> -> memref<1x32xf32, #tpu.memory_space<any>>
    %c15_i32 = arith.constant 15 : i32
    %c0_i32_230 = arith.constant 0 : i32
    %289 = tpu.memref_slice %arg13[%c15_i32, %c0_i32_230] : memref<64x32xf32, #tpu.memory_space<vmem>> -> memref<1x32xf32, #tpu.memory_space<vmem>>
    tpu.enqueue_dma source(%288 : memref<1x32xf32, #tpu.memory_space<any>>) target(%289 : memref<1x32xf32, #tpu.memory_space<vmem>>) target_semaphore(%arg14 : memref<!tpu.dma_semaphore, #tpu.memory_space<semaphore_mem>>)
    %c58 = arith.constant 58 : index
    %290 = memref.load %arg1[%c58] : memref<64xi32, #tpu.memory_space<smem>>
    %c0_i32_231 = arith.constant 0 : i32
    %c511_i32_232 = arith.constant 511 : i32
    %291 = arith.maxsi %c0_i32_231, %290 : i32
    %292 = arith.minsi %c511_i32_232, %291 : i32
    %c0_i32_233 = arith.constant 0 : i32
    %293 = tpu.memref_slice %arg2[%292, %c0_i32_233] : memref<512x32xf32, #tpu.memory_space<any>> -> memref<1x32xf32, #tpu.memory_space<any>>
    %c23_i32 = arith.constant 23 : i32
    %c0_i32_234 = arith.constant 0 : i32
    %294 = tpu.memref_slice %arg13[%c23_i32, %c0_i32_234] : memref<64x32xf32, #tpu.memory_space<vmem>> -> memref<1x32xf32, #tpu.memory_space<vmem>>
    tpu.enqueue_dma source(%293 : memref<1x32xf32, #tpu.memory_space<any>>) target(%294 : memref<1x32xf32, #tpu.memory_space<vmem>>) target_semaphore(%arg14 : memref<!tpu.dma_semaphore, #tpu.memory_space<semaphore_mem>>)
    %c59 = arith.constant 59 : index
    %295 = memref.load %arg1[%c59] : memref<64xi32, #tpu.memory_space<smem>>
    %c0_i32_235 = arith.constant 0 : i32
    %c511_i32_236 = arith.constant 511 : i32
    %296 = arith.maxsi %c0_i32_235, %295 : i32
    %297 = arith.minsi %c511_i32_236, %296 : i32
    %c0_i32_237 = arith.constant 0 : i32
    %298 = tpu.memref_slice %arg2[%297, %c0_i32_237] : memref<512x32xf32, #tpu.memory_space<any>> -> memref<1x32xf32, #tpu.memory_space<any>>
    %c31_i32 = arith.constant 31 : i32
    %c0_i32_238 = arith.constant 0 : i32
    %299 = tpu.memref_slice %arg13[%c31_i32, %c0_i32_238] : memref<64x32xf32, #tpu.memory_space<vmem>> -> memref<1x32xf32, #tpu.memory_space<vmem>>
    tpu.enqueue_dma source(%298 : memref<1x32xf32, #tpu.memory_space<any>>) target(%299 : memref<1x32xf32, #tpu.memory_space<vmem>>) target_semaphore(%arg14 : memref<!tpu.dma_semaphore, #tpu.memory_space<semaphore_mem>>)
    %c60 = arith.constant 60 : index
    %300 = memref.load %arg1[%c60] : memref<64xi32, #tpu.memory_space<smem>>
    %c0_i32_239 = arith.constant 0 : i32
    %c511_i32_240 = arith.constant 511 : i32
    %301 = arith.maxsi %c0_i32_239, %300 : i32
    %302 = arith.minsi %c511_i32_240, %301 : i32
    %c0_i32_241 = arith.constant 0 : i32
    %303 = tpu.memref_slice %arg2[%302, %c0_i32_241] : memref<512x32xf32, #tpu.memory_space<any>> -> memref<1x32xf32, #tpu.memory_space<any>>
    %c39_i32 = arith.constant 39 : i32
    %c0_i32_242 = arith.constant 0 : i32
    %304 = tpu.memref_slice %arg13[%c39_i32, %c0_i32_242] : memref<64x32xf32, #tpu.memory_space<vmem>> -> memref<1x32xf32, #tpu.memory_space<vmem>>
    tpu.enqueue_dma source(%303 : memref<1x32xf32, #tpu.memory_space<any>>) target(%304 : memref<1x32xf32, #tpu.memory_space<vmem>>) target_semaphore(%arg14 : memref<!tpu.dma_semaphore, #tpu.memory_space<semaphore_mem>>)
    %c61 = arith.constant 61 : index
    %305 = memref.load %arg1[%c61] : memref<64xi32, #tpu.memory_space<smem>>
    %c0_i32_243 = arith.constant 0 : i32
    %c511_i32_244 = arith.constant 511 : i32
    %306 = arith.maxsi %c0_i32_243, %305 : i32
    %307 = arith.minsi %c511_i32_244, %306 : i32
    %c0_i32_245 = arith.constant 0 : i32
    %308 = tpu.memref_slice %arg2[%307, %c0_i32_245] : memref<512x32xf32, #tpu.memory_space<any>> -> memref<1x32xf32, #tpu.memory_space<any>>
    %c47_i32 = arith.constant 47 : i32
    %c0_i32_246 = arith.constant 0 : i32
    %309 = tpu.memref_slice %arg13[%c47_i32, %c0_i32_246] : memref<64x32xf32, #tpu.memory_space<vmem>> -> memref<1x32xf32, #tpu.memory_space<vmem>>
    tpu.enqueue_dma source(%308 : memref<1x32xf32, #tpu.memory_space<any>>) target(%309 : memref<1x32xf32, #tpu.memory_space<vmem>>) target_semaphore(%arg14 : memref<!tpu.dma_semaphore, #tpu.memory_space<semaphore_mem>>)
    %c62 = arith.constant 62 : index
    %310 = memref.load %arg1[%c62] : memref<64xi32, #tpu.memory_space<smem>>
    %c0_i32_247 = arith.constant 0 : i32
    %c511_i32_248 = arith.constant 511 : i32
    %311 = arith.maxsi %c0_i32_247, %310 : i32
    %312 = arith.minsi %c511_i32_248, %311 : i32
    %c0_i32_249 = arith.constant 0 : i32
    %313 = tpu.memref_slice %arg2[%312, %c0_i32_249] : memref<512x32xf32, #tpu.memory_space<any>> -> memref<1x32xf32, #tpu.memory_space<any>>
    %c55_i32 = arith.constant 55 : i32
    %c0_i32_250 = arith.constant 0 : i32
    %314 = tpu.memref_slice %arg13[%c55_i32, %c0_i32_250] : memref<64x32xf32, #tpu.memory_space<vmem>> -> memref<1x32xf32, #tpu.memory_space<vmem>>
    tpu.enqueue_dma source(%313 : memref<1x32xf32, #tpu.memory_space<any>>) target(%314 : memref<1x32xf32, #tpu.memory_space<vmem>>) target_semaphore(%arg14 : memref<!tpu.dma_semaphore, #tpu.memory_space<semaphore_mem>>)
    %c63 = arith.constant 63 : index
    %315 = memref.load %arg1[%c63] : memref<64xi32, #tpu.memory_space<smem>>
    %c0_i32_251 = arith.constant 0 : i32
    %c511_i32_252 = arith.constant 511 : i32
    %316 = arith.maxsi %c0_i32_251, %315 : i32
    %317 = arith.minsi %c511_i32_252, %316 : i32
    %c0_i32_253 = arith.constant 0 : i32
    %318 = tpu.memref_slice %arg2[%317, %c0_i32_253] : memref<512x32xf32, #tpu.memory_space<any>> -> memref<1x32xf32, #tpu.memory_space<any>>
    %c63_i32 = arith.constant 63 : i32
    %c0_i32_254 = arith.constant 0 : i32
    %319 = tpu.memref_slice %arg13[%c63_i32, %c0_i32_254] : memref<64x32xf32, #tpu.memory_space<vmem>> -> memref<1x32xf32, #tpu.memory_space<vmem>>
    tpu.enqueue_dma source(%318 : memref<1x32xf32, #tpu.memory_space<any>>) target(%319 : memref<1x32xf32, #tpu.memory_space<vmem>>) target_semaphore(%arg14 : memref<!tpu.dma_semaphore, #tpu.memory_space<semaphore_mem>>)
    %c0_i32_255 = arith.constant 0 : i32
    %320 = tpu.memref_slice %arg2[%2, %c0_i32_255] : memref<512x32xf32, #tpu.memory_space<any>> -> memref<1x32xf32, #tpu.memory_space<any>>
    %c0_i32_256 = arith.constant 0 : i32
    %c0_i32_257 = arith.constant 0 : i32
    %321 = tpu.memref_slice %arg13[%c0_i32_256, %c0_i32_257] : memref<64x32xf32, #tpu.memory_space<vmem>> -> memref<1x32xf32, #tpu.memory_space<vmem>>
    tpu.wait_dma2 semaphore(%arg14 : memref<!tpu.dma_semaphore, #tpu.memory_space<semaphore_mem>>) src(%320 : memref<1x32xf32, #tpu.memory_space<any>>) dst(%321 : memref<1x32xf32, #tpu.memory_space<vmem>>)
    %c0_i32_258 = arith.constant 0 : i32
    %322 = tpu.memref_slice %arg2[%7, %c0_i32_258] : memref<512x32xf32, #tpu.memory_space<any>> -> memref<1x32xf32, #tpu.memory_space<any>>
    %c8_i32_259 = arith.constant 8 : i32
    %c0_i32_260 = arith.constant 0 : i32
    %323 = tpu.memref_slice %arg13[%c8_i32_259, %c0_i32_260] : memref<64x32xf32, #tpu.memory_space<vmem>> -> memref<1x32xf32, #tpu.memory_space<vmem>>
    tpu.wait_dma2 semaphore(%arg14 : memref<!tpu.dma_semaphore, #tpu.memory_space<semaphore_mem>>) src(%322 : memref<1x32xf32, #tpu.memory_space<any>>) dst(%323 : memref<1x32xf32, #tpu.memory_space<vmem>>)
    %c0_i32_261 = arith.constant 0 : i32
    %324 = tpu.memref_slice %arg2[%12, %c0_i32_261] : memref<512x32xf32, #tpu.memory_space<any>> -> memref<1x32xf32, #tpu.memory_space<any>>
    %c16_i32_262 = arith.constant 16 : i32
    %c0_i32_263 = arith.constant 0 : i32
    %325 = tpu.memref_slice %arg13[%c16_i32_262, %c0_i32_263] : memref<64x32xf32, #tpu.memory_space<vmem>> -> memref<1x32xf32, #tpu.memory_space<vmem>>
    tpu.wait_dma2 semaphore(%arg14 : memref<!tpu.dma_semaphore, #tpu.memory_space<semaphore_mem>>) src(%324 : memref<1x32xf32, #tpu.memory_space<any>>) dst(%325 : memref<1x32xf32, #tpu.memory_space<vmem>>)
    %c0_i32_264 = arith.constant 0 : i32
    %326 = tpu.memref_slice %arg2[%17, %c0_i32_264] : memref<512x32xf32, #tpu.memory_space<any>> -> memref<1x32xf32, #tpu.memory_space<any>>
    %c24_i32_265 = arith.constant 24 : i32
    %c0_i32_266 = arith.constant 0 : i32
    %327 = tpu.memref_slice %arg13[%c24_i32_265, %c0_i32_266] : memref<64x32xf32, #tpu.memory_space<vmem>> -> memref<1x32xf32, #tpu.memory_space<vmem>>
    tpu.wait_dma2 semaphore(%arg14 : memref<!tpu.dma_semaphore, #tpu.memory_space<semaphore_mem>>) src(%326 : memref<1x32xf32, #tpu.memory_space<any>>) dst(%327 : memref<1x32xf32, #tpu.memory_space<vmem>>)
    %c0_i32_267 = arith.constant 0 : i32
    %328 = tpu.memref_slice %arg2[%22, %c0_i32_267] : memref<512x32xf32, #tpu.memory_space<any>> -> memref<1x32xf32, #tpu.memory_space<any>>
    %c32_i32_268 = arith.constant 32 : i32
    %c0_i32_269 = arith.constant 0 : i32
    %329 = tpu.memref_slice %arg13[%c32_i32_268, %c0_i32_269] : memref<64x32xf32, #tpu.memory_space<vmem>> -> memref<1x32xf32, #tpu.memory_space<vmem>>
    tpu.wait_dma2 semaphore(%arg14 : memref<!tpu.dma_semaphore, #tpu.memory_space<semaphore_mem>>) src(%328 : memref<1x32xf32, #tpu.memory_space<any>>) dst(%329 : memref<1x32xf32, #tpu.memory_space<vmem>>)
    %c0_i32_270 = arith.constant 0 : i32
    %330 = tpu.memref_slice %arg2[%27, %c0_i32_270] : memref<512x32xf32, #tpu.memory_space<any>> -> memref<1x32xf32, #tpu.memory_space<any>>
    %c40_i32_271 = arith.constant 40 : i32
    %c0_i32_272 = arith.constant 0 : i32
    %331 = tpu.memref_slice %arg13[%c40_i32_271, %c0_i32_272] : memref<64x32xf32, #tpu.memory_space<vmem>> -> memref<1x32xf32, #tpu.memory_space<vmem>>
    tpu.wait_dma2 semaphore(%arg14 : memref<!tpu.dma_semaphore, #tpu.memory_space<semaphore_mem>>) src(%330 : memref<1x32xf32, #tpu.memory_space<any>>) dst(%331 : memref<1x32xf32, #tpu.memory_space<vmem>>)
    %c0_i32_273 = arith.constant 0 : i32
    %332 = tpu.memref_slice %arg2[%32, %c0_i32_273] : memref<512x32xf32, #tpu.memory_space<any>> -> memref<1x32xf32, #tpu.memory_space<any>>
    %c48_i32_274 = arith.constant 48 : i32
    %c0_i32_275 = arith.constant 0 : i32
    %333 = tpu.memref_slice %arg13[%c48_i32_274, %c0_i32_275] : memref<64x32xf32, #tpu.memory_space<vmem>> -> memref<1x32xf32, #tpu.memory_space<vmem>>
    tpu.wait_dma2 semaphore(%arg14 : memref<!tpu.dma_semaphore, #tpu.memory_space<semaphore_mem>>) src(%332 : memref<1x32xf32, #tpu.memory_space<any>>) dst(%333 : memref<1x32xf32, #tpu.memory_space<vmem>>)
    %c0_i32_276 = arith.constant 0 : i32
    %334 = tpu.memref_slice %arg2[%37, %c0_i32_276] : memref<512x32xf32, #tpu.memory_space<any>> -> memref<1x32xf32, #tpu.memory_space<any>>
    %c56_i32_277 = arith.constant 56 : i32
    %c0_i32_278 = arith.constant 0 : i32
    %335 = tpu.memref_slice %arg13[%c56_i32_277, %c0_i32_278] : memref<64x32xf32, #tpu.memory_space<vmem>> -> memref<1x32xf32, #tpu.memory_space<vmem>>
    tpu.wait_dma2 semaphore(%arg14 : memref<!tpu.dma_semaphore, #tpu.memory_space<semaphore_mem>>) src(%334 : memref<1x32xf32, #tpu.memory_space<any>>) dst(%335 : memref<1x32xf32, #tpu.memory_space<vmem>>)
    %c0_i32_279 = arith.constant 0 : i32
    %336 = tpu.memref_slice %arg2[%42, %c0_i32_279] : memref<512x32xf32, #tpu.memory_space<any>> -> memref<1x32xf32, #tpu.memory_space<any>>
    %c1_i32_280 = arith.constant 1 : i32
    %c0_i32_281 = arith.constant 0 : i32
    %337 = tpu.memref_slice %arg13[%c1_i32_280, %c0_i32_281] : memref<64x32xf32, #tpu.memory_space<vmem>> -> memref<1x32xf32, #tpu.memory_space<vmem>>
    tpu.wait_dma2 semaphore(%arg14 : memref<!tpu.dma_semaphore, #tpu.memory_space<semaphore_mem>>) src(%336 : memref<1x32xf32, #tpu.memory_space<any>>) dst(%337 : memref<1x32xf32, #tpu.memory_space<vmem>>)
    %c0_i32_282 = arith.constant 0 : i32
    %338 = tpu.memref_slice %arg2[%47, %c0_i32_282] : memref<512x32xf32, #tpu.memory_space<any>> -> memref<1x32xf32, #tpu.memory_space<any>>
    %c9_i32_283 = arith.constant 9 : i32
    %c0_i32_284 = arith.constant 0 : i32
    %339 = tpu.memref_slice %arg13[%c9_i32_283, %c0_i32_284] : memref<64x32xf32, #tpu.memory_space<vmem>> -> memref<1x32xf32, #tpu.memory_space<vmem>>
    tpu.wait_dma2 semaphore(%arg14 : memref<!tpu.dma_semaphore, #tpu.memory_space<semaphore_mem>>) src(%338 : memref<1x32xf32, #tpu.memory_space<any>>) dst(%339 : memref<1x32xf32, #tpu.memory_space<vmem>>)
    %c0_i32_285 = arith.constant 0 : i32
    %340 = tpu.memref_slice %arg2[%52, %c0_i32_285] : memref<512x32xf32, #tpu.memory_space<any>> -> memref<1x32xf32, #tpu.memory_space<any>>
    %c17_i32_286 = arith.constant 17 : i32
    %c0_i32_287 = arith.constant 0 : i32
    %341 = tpu.memref_slice %arg13[%c17_i32_286, %c0_i32_287] : memref<64x32xf32, #tpu.memory_space<vmem>> -> memref<1x32xf32, #tpu.memory_space<vmem>>
    tpu.wait_dma2 semaphore(%arg14 : memref<!tpu.dma_semaphore, #tpu.memory_space<semaphore_mem>>) src(%340 : memref<1x32xf32, #tpu.memory_space<any>>) dst(%341 : memref<1x32xf32, #tpu.memory_space<vmem>>)
    %c0_i32_288 = arith.constant 0 : i32
    %342 = tpu.memref_slice %arg2[%57, %c0_i32_288] : memref<512x32xf32, #tpu.memory_space<any>> -> memref<1x32xf32, #tpu.memory_space<any>>
    %c25_i32_289 = arith.constant 25 : i32
    %c0_i32_290 = arith.constant 0 : i32
    %343 = tpu.memref_slice %arg13[%c25_i32_289, %c0_i32_290] : memref<64x32xf32, #tpu.memory_space<vmem>> -> memref<1x32xf32, #tpu.memory_space<vmem>>
    tpu.wait_dma2 semaphore(%arg14 : memref<!tpu.dma_semaphore, #tpu.memory_space<semaphore_mem>>) src(%342 : memref<1x32xf32, #tpu.memory_space<any>>) dst(%343 : memref<1x32xf32, #tpu.memory_space<vmem>>)
    %c0_i32_291 = arith.constant 0 : i32
    %344 = tpu.memref_slice %arg2[%62, %c0_i32_291] : memref<512x32xf32, #tpu.memory_space<any>> -> memref<1x32xf32, #tpu.memory_space<any>>
    %c33_i32_292 = arith.constant 33 : i32
    %c0_i32_293 = arith.constant 0 : i32
    %345 = tpu.memref_slice %arg13[%c33_i32_292, %c0_i32_293] : memref<64x32xf32, #tpu.memory_space<vmem>> -> memref<1x32xf32, #tpu.memory_space<vmem>>
    tpu.wait_dma2 semaphore(%arg14 : memref<!tpu.dma_semaphore, #tpu.memory_space<semaphore_mem>>) src(%344 : memref<1x32xf32, #tpu.memory_space<any>>) dst(%345 : memref<1x32xf32, #tpu.memory_space<vmem>>)
    %c0_i32_294 = arith.constant 0 : i32
    %346 = tpu.memref_slice %arg2[%67, %c0_i32_294] : memref<512x32xf32, #tpu.memory_space<any>> -> memref<1x32xf32, #tpu.memory_space<any>>
    %c41_i32_295 = arith.constant 41 : i32
    %c0_i32_296 = arith.constant 0 : i32
    %347 = tpu.memref_slice %arg13[%c41_i32_295, %c0_i32_296] : memref<64x32xf32, #tpu.memory_space<vmem>> -> memref<1x32xf32, #tpu.memory_space<vmem>>
    tpu.wait_dma2 semaphore(%arg14 : memref<!tpu.dma_semaphore, #tpu.memory_space<semaphore_mem>>) src(%346 : memref<1x32xf32, #tpu.memory_space<any>>) dst(%347 : memref<1x32xf32, #tpu.memory_space<vmem>>)
    %c0_i32_297 = arith.constant 0 : i32
    %348 = tpu.memref_slice %arg2[%72, %c0_i32_297] : memref<512x32xf32, #tpu.memory_space<any>> -> memref<1x32xf32, #tpu.memory_space<any>>
    %c49_i32_298 = arith.constant 49 : i32
    %c0_i32_299 = arith.constant 0 : i32
    %349 = tpu.memref_slice %arg13[%c49_i32_298, %c0_i32_299] : memref<64x32xf32, #tpu.memory_space<vmem>> -> memref<1x32xf32, #tpu.memory_space<vmem>>
    tpu.wait_dma2 semaphore(%arg14 : memref<!tpu.dma_semaphore, #tpu.memory_space<semaphore_mem>>) src(%348 : memref<1x32xf32, #tpu.memory_space<any>>) dst(%349 : memref<1x32xf32, #tpu.memory_space<vmem>>)
    %c0_i32_300 = arith.constant 0 : i32
    %350 = tpu.memref_slice %arg2[%77, %c0_i32_300] : memref<512x32xf32, #tpu.memory_space<any>> -> memref<1x32xf32, #tpu.memory_space<any>>
    %c57_i32_301 = arith.constant 57 : i32
    %c0_i32_302 = arith.constant 0 : i32
    %351 = tpu.memref_slice %arg13[%c57_i32_301, %c0_i32_302] : memref<64x32xf32, #tpu.memory_space<vmem>> -> memref<1x32xf32, #tpu.memory_space<vmem>>
    tpu.wait_dma2 semaphore(%arg14 : memref<!tpu.dma_semaphore, #tpu.memory_space<semaphore_mem>>) src(%350 : memref<1x32xf32, #tpu.memory_space<any>>) dst(%351 : memref<1x32xf32, #tpu.memory_space<vmem>>)
    %c0_i32_303 = arith.constant 0 : i32
    %352 = tpu.memref_slice %arg2[%82, %c0_i32_303] : memref<512x32xf32, #tpu.memory_space<any>> -> memref<1x32xf32, #tpu.memory_space<any>>
    %c2_i32_304 = arith.constant 2 : i32
    %c0_i32_305 = arith.constant 0 : i32
    %353 = tpu.memref_slice %arg13[%c2_i32_304, %c0_i32_305] : memref<64x32xf32, #tpu.memory_space<vmem>> -> memref<1x32xf32, #tpu.memory_space<vmem>>
    tpu.wait_dma2 semaphore(%arg14 : memref<!tpu.dma_semaphore, #tpu.memory_space<semaphore_mem>>) src(%352 : memref<1x32xf32, #tpu.memory_space<any>>) dst(%353 : memref<1x32xf32, #tpu.memory_space<vmem>>)
    %c0_i32_306 = arith.constant 0 : i32
    %354 = tpu.memref_slice %arg2[%87, %c0_i32_306] : memref<512x32xf32, #tpu.memory_space<any>> -> memref<1x32xf32, #tpu.memory_space<any>>
    %c10_i32_307 = arith.constant 10 : i32
    %c0_i32_308 = arith.constant 0 : i32
    %355 = tpu.memref_slice %arg13[%c10_i32_307, %c0_i32_308] : memref<64x32xf32, #tpu.memory_space<vmem>> -> memref<1x32xf32, #tpu.memory_space<vmem>>
    tpu.wait_dma2 semaphore(%arg14 : memref<!tpu.dma_semaphore, #tpu.memory_space<semaphore_mem>>) src(%354 : memref<1x32xf32, #tpu.memory_space<any>>) dst(%355 : memref<1x32xf32, #tpu.memory_space<vmem>>)
    %c0_i32_309 = arith.constant 0 : i32
    %356 = tpu.memref_slice %arg2[%92, %c0_i32_309] : memref<512x32xf32, #tpu.memory_space<any>> -> memref<1x32xf32, #tpu.memory_space<any>>
    %c18_i32_310 = arith.constant 18 : i32
    %c0_i32_311 = arith.constant 0 : i32
    %357 = tpu.memref_slice %arg13[%c18_i32_310, %c0_i32_311] : memref<64x32xf32, #tpu.memory_space<vmem>> -> memref<1x32xf32, #tpu.memory_space<vmem>>
    tpu.wait_dma2 semaphore(%arg14 : memref<!tpu.dma_semaphore, #tpu.memory_space<semaphore_mem>>) src(%356 : memref<1x32xf32, #tpu.memory_space<any>>) dst(%357 : memref<1x32xf32, #tpu.memory_space<vmem>>)
    %c0_i32_312 = arith.constant 0 : i32
    %358 = tpu.memref_slice %arg2[%97, %c0_i32_312] : memref<512x32xf32, #tpu.memory_space<any>> -> memref<1x32xf32, #tpu.memory_space<any>>
    %c26_i32_313 = arith.constant 26 : i32
    %c0_i32_314 = arith.constant 0 : i32
    %359 = tpu.memref_slice %arg13[%c26_i32_313, %c0_i32_314] : memref<64x32xf32, #tpu.memory_space<vmem>> -> memref<1x32xf32, #tpu.memory_space<vmem>>
    tpu.wait_dma2 semaphore(%arg14 : memref<!tpu.dma_semaphore, #tpu.memory_space<semaphore_mem>>) src(%358 : memref<1x32xf32, #tpu.memory_space<any>>) dst(%359 : memref<1x32xf32, #tpu.memory_space<vmem>>)
    %c0_i32_315 = arith.constant 0 : i32
    %360 = tpu.memref_slice %arg2[%102, %c0_i32_315] : memref<512x32xf32, #tpu.memory_space<any>> -> memref<1x32xf32, #tpu.memory_space<any>>
    %c34_i32_316 = arith.constant 34 : i32
    %c0_i32_317 = arith.constant 0 : i32
    %361 = tpu.memref_slice %arg13[%c34_i32_316, %c0_i32_317] : memref<64x32xf32, #tpu.memory_space<vmem>> -> memref<1x32xf32, #tpu.memory_space<vmem>>
    tpu.wait_dma2 semaphore(%arg14 : memref<!tpu.dma_semaphore, #tpu.memory_space<semaphore_mem>>) src(%360 : memref<1x32xf32, #tpu.memory_space<any>>) dst(%361 : memref<1x32xf32, #tpu.memory_space<vmem>>)
    %c0_i32_318 = arith.constant 0 : i32
    %362 = tpu.memref_slice %arg2[%107, %c0_i32_318] : memref<512x32xf32, #tpu.memory_space<any>> -> memref<1x32xf32, #tpu.memory_space<any>>
    %c42_i32_319 = arith.constant 42 : i32
    %c0_i32_320 = arith.constant 0 : i32
    %363 = tpu.memref_slice %arg13[%c42_i32_319, %c0_i32_320] : memref<64x32xf32, #tpu.memory_space<vmem>> -> memref<1x32xf32, #tpu.memory_space<vmem>>
    tpu.wait_dma2 semaphore(%arg14 : memref<!tpu.dma_semaphore, #tpu.memory_space<semaphore_mem>>) src(%362 : memref<1x32xf32, #tpu.memory_space<any>>) dst(%363 : memref<1x32xf32, #tpu.memory_space<vmem>>)
    %c0_i32_321 = arith.constant 0 : i32
    %364 = tpu.memref_slice %arg2[%112, %c0_i32_321] : memref<512x32xf32, #tpu.memory_space<any>> -> memref<1x32xf32, #tpu.memory_space<any>>
    %c50_i32_322 = arith.constant 50 : i32
    %c0_i32_323 = arith.constant 0 : i32
    %365 = tpu.memref_slice %arg13[%c50_i32_322, %c0_i32_323] : memref<64x32xf32, #tpu.memory_space<vmem>> -> memref<1x32xf32, #tpu.memory_space<vmem>>
    tpu.wait_dma2 semaphore(%arg14 : memref<!tpu.dma_semaphore, #tpu.memory_space<semaphore_mem>>) src(%364 : memref<1x32xf32, #tpu.memory_space<any>>) dst(%365 : memref<1x32xf32, #tpu.memory_space<vmem>>)
    %c0_i32_324 = arith.constant 0 : i32
    %366 = tpu.memref_slice %arg2[%117, %c0_i32_324] : memref<512x32xf32, #tpu.memory_space<any>> -> memref<1x32xf32, #tpu.memory_space<any>>
    %c58_i32_325 = arith.constant 58 : i32
    %c0_i32_326 = arith.constant 0 : i32
    %367 = tpu.memref_slice %arg13[%c58_i32_325, %c0_i32_326] : memref<64x32xf32, #tpu.memory_space<vmem>> -> memref<1x32xf32, #tpu.memory_space<vmem>>
    tpu.wait_dma2 semaphore(%arg14 : memref<!tpu.dma_semaphore, #tpu.memory_space<semaphore_mem>>) src(%366 : memref<1x32xf32, #tpu.memory_space<any>>) dst(%367 : memref<1x32xf32, #tpu.memory_space<vmem>>)
    %c0_i32_327 = arith.constant 0 : i32
    %368 = tpu.memref_slice %arg2[%122, %c0_i32_327] : memref<512x32xf32, #tpu.memory_space<any>> -> memref<1x32xf32, #tpu.memory_space<any>>
    %c3_i32_328 = arith.constant 3 : i32
    %c0_i32_329 = arith.constant 0 : i32
    %369 = tpu.memref_slice %arg13[%c3_i32_328, %c0_i32_329] : memref<64x32xf32, #tpu.memory_space<vmem>> -> memref<1x32xf32, #tpu.memory_space<vmem>>
    tpu.wait_dma2 semaphore(%arg14 : memref<!tpu.dma_semaphore, #tpu.memory_space<semaphore_mem>>) src(%368 : memref<1x32xf32, #tpu.memory_space<any>>) dst(%369 : memref<1x32xf32, #tpu.memory_space<vmem>>)
    %c0_i32_330 = arith.constant 0 : i32
    %370 = tpu.memref_slice %arg2[%127, %c0_i32_330] : memref<512x32xf32, #tpu.memory_space<any>> -> memref<1x32xf32, #tpu.memory_space<any>>
    %c11_i32_331 = arith.constant 11 : i32
    %c0_i32_332 = arith.constant 0 : i32
    %371 = tpu.memref_slice %arg13[%c11_i32_331, %c0_i32_332] : memref<64x32xf32, #tpu.memory_space<vmem>> -> memref<1x32xf32, #tpu.memory_space<vmem>>
    tpu.wait_dma2 semaphore(%arg14 : memref<!tpu.dma_semaphore, #tpu.memory_space<semaphore_mem>>) src(%370 : memref<1x32xf32, #tpu.memory_space<any>>) dst(%371 : memref<1x32xf32, #tpu.memory_space<vmem>>)
    %c0_i32_333 = arith.constant 0 : i32
    %372 = tpu.memref_slice %arg2[%132, %c0_i32_333] : memref<512x32xf32, #tpu.memory_space<any>> -> memref<1x32xf32, #tpu.memory_space<any>>
    %c19_i32_334 = arith.constant 19 : i32
    %c0_i32_335 = arith.constant 0 : i32
    %373 = tpu.memref_slice %arg13[%c19_i32_334, %c0_i32_335] : memref<64x32xf32, #tpu.memory_space<vmem>> -> memref<1x32xf32, #tpu.memory_space<vmem>>
    tpu.wait_dma2 semaphore(%arg14 : memref<!tpu.dma_semaphore, #tpu.memory_space<semaphore_mem>>) src(%372 : memref<1x32xf32, #tpu.memory_space<any>>) dst(%373 : memref<1x32xf32, #tpu.memory_space<vmem>>)
    %c0_i32_336 = arith.constant 0 : i32
    %374 = tpu.memref_slice %arg2[%137, %c0_i32_336] : memref<512x32xf32, #tpu.memory_space<any>> -> memref<1x32xf32, #tpu.memory_space<any>>
    %c27_i32_337 = arith.constant 27 : i32
    %c0_i32_338 = arith.constant 0 : i32
    %375 = tpu.memref_slice %arg13[%c27_i32_337, %c0_i32_338] : memref<64x32xf32, #tpu.memory_space<vmem>> -> memref<1x32xf32, #tpu.memory_space<vmem>>
    tpu.wait_dma2 semaphore(%arg14 : memref<!tpu.dma_semaphore, #tpu.memory_space<semaphore_mem>>) src(%374 : memref<1x32xf32, #tpu.memory_space<any>>) dst(%375 : memref<1x32xf32, #tpu.memory_space<vmem>>)
    %c0_i32_339 = arith.constant 0 : i32
    %376 = tpu.memref_slice %arg2[%142, %c0_i32_339] : memref<512x32xf32, #tpu.memory_space<any>> -> memref<1x32xf32, #tpu.memory_space<any>>
    %c35_i32_340 = arith.constant 35 : i32
    %c0_i32_341 = arith.constant 0 : i32
    %377 = tpu.memref_slice %arg13[%c35_i32_340, %c0_i32_341] : memref<64x32xf32, #tpu.memory_space<vmem>> -> memref<1x32xf32, #tpu.memory_space<vmem>>
    tpu.wait_dma2 semaphore(%arg14 : memref<!tpu.dma_semaphore, #tpu.memory_space<semaphore_mem>>) src(%376 : memref<1x32xf32, #tpu.memory_space<any>>) dst(%377 : memref<1x32xf32, #tpu.memory_space<vmem>>)
    %c0_i32_342 = arith.constant 0 : i32
    %378 = tpu.memref_slice %arg2[%147, %c0_i32_342] : memref<512x32xf32, #tpu.memory_space<any>> -> memref<1x32xf32, #tpu.memory_space<any>>
    %c43_i32_343 = arith.constant 43 : i32
    %c0_i32_344 = arith.constant 0 : i32
    %379 = tpu.memref_slice %arg13[%c43_i32_343, %c0_i32_344] : memref<64x32xf32, #tpu.memory_space<vmem>> -> memref<1x32xf32, #tpu.memory_space<vmem>>
    tpu.wait_dma2 semaphore(%arg14 : memref<!tpu.dma_semaphore, #tpu.memory_space<semaphore_mem>>) src(%378 : memref<1x32xf32, #tpu.memory_space<any>>) dst(%379 : memref<1x32xf32, #tpu.memory_space<vmem>>)
    %c0_i32_345 = arith.constant 0 : i32
    %380 = tpu.memref_slice %arg2[%152, %c0_i32_345] : memref<512x32xf32, #tpu.memory_space<any>> -> memref<1x32xf32, #tpu.memory_space<any>>
    %c51_i32_346 = arith.constant 51 : i32
    %c0_i32_347 = arith.constant 0 : i32
    %381 = tpu.memref_slice %arg13[%c51_i32_346, %c0_i32_347] : memref<64x32xf32, #tpu.memory_space<vmem>> -> memref<1x32xf32, #tpu.memory_space<vmem>>
    tpu.wait_dma2 semaphore(%arg14 : memref<!tpu.dma_semaphore, #tpu.memory_space<semaphore_mem>>) src(%380 : memref<1x32xf32, #tpu.memory_space<any>>) dst(%381 : memref<1x32xf32, #tpu.memory_space<vmem>>)
    %c0_i32_348 = arith.constant 0 : i32
    %382 = tpu.memref_slice %arg2[%157, %c0_i32_348] : memref<512x32xf32, #tpu.memory_space<any>> -> memref<1x32xf32, #tpu.memory_space<any>>
    %c59_i32_349 = arith.constant 59 : i32
    %c0_i32_350 = arith.constant 0 : i32
    %383 = tpu.memref_slice %arg13[%c59_i32_349, %c0_i32_350] : memref<64x32xf32, #tpu.memory_space<vmem>> -> memref<1x32xf32, #tpu.memory_space<vmem>>
    tpu.wait_dma2 semaphore(%arg14 : memref<!tpu.dma_semaphore, #tpu.memory_space<semaphore_mem>>) src(%382 : memref<1x32xf32, #tpu.memory_space<any>>) dst(%383 : memref<1x32xf32, #tpu.memory_space<vmem>>)
    %c0_i32_351 = arith.constant 0 : i32
    %384 = tpu.memref_slice %arg2[%162, %c0_i32_351] : memref<512x32xf32, #tpu.memory_space<any>> -> memref<1x32xf32, #tpu.memory_space<any>>
    %c4_i32_352 = arith.constant 4 : i32
    %c0_i32_353 = arith.constant 0 : i32
    %385 = tpu.memref_slice %arg13[%c4_i32_352, %c0_i32_353] : memref<64x32xf32, #tpu.memory_space<vmem>> -> memref<1x32xf32, #tpu.memory_space<vmem>>
    tpu.wait_dma2 semaphore(%arg14 : memref<!tpu.dma_semaphore, #tpu.memory_space<semaphore_mem>>) src(%384 : memref<1x32xf32, #tpu.memory_space<any>>) dst(%385 : memref<1x32xf32, #tpu.memory_space<vmem>>)
    %c0_i32_354 = arith.constant 0 : i32
    %386 = tpu.memref_slice %arg2[%167, %c0_i32_354] : memref<512x32xf32, #tpu.memory_space<any>> -> memref<1x32xf32, #tpu.memory_space<any>>
    %c12_i32_355 = arith.constant 12 : i32
    %c0_i32_356 = arith.constant 0 : i32
    %387 = tpu.memref_slice %arg13[%c12_i32_355, %c0_i32_356] : memref<64x32xf32, #tpu.memory_space<vmem>> -> memref<1x32xf32, #tpu.memory_space<vmem>>
    tpu.wait_dma2 semaphore(%arg14 : memref<!tpu.dma_semaphore, #tpu.memory_space<semaphore_mem>>) src(%386 : memref<1x32xf32, #tpu.memory_space<any>>) dst(%387 : memref<1x32xf32, #tpu.memory_space<vmem>>)
    %c0_i32_357 = arith.constant 0 : i32
    %388 = tpu.memref_slice %arg2[%172, %c0_i32_357] : memref<512x32xf32, #tpu.memory_space<any>> -> memref<1x32xf32, #tpu.memory_space<any>>
    %c20_i32_358 = arith.constant 20 : i32
    %c0_i32_359 = arith.constant 0 : i32
    %389 = tpu.memref_slice %arg13[%c20_i32_358, %c0_i32_359] : memref<64x32xf32, #tpu.memory_space<vmem>> -> memref<1x32xf32, #tpu.memory_space<vmem>>
    tpu.wait_dma2 semaphore(%arg14 : memref<!tpu.dma_semaphore, #tpu.memory_space<semaphore_mem>>) src(%388 : memref<1x32xf32, #tpu.memory_space<any>>) dst(%389 : memref<1x32xf32, #tpu.memory_space<vmem>>)
    %c0_i32_360 = arith.constant 0 : i32
    %390 = tpu.memref_slice %arg2[%177, %c0_i32_360] : memref<512x32xf32, #tpu.memory_space<any>> -> memref<1x32xf32, #tpu.memory_space<any>>
    %c28_i32_361 = arith.constant 28 : i32
    %c0_i32_362 = arith.constant 0 : i32
    %391 = tpu.memref_slice %arg13[%c28_i32_361, %c0_i32_362] : memref<64x32xf32, #tpu.memory_space<vmem>> -> memref<1x32xf32, #tpu.memory_space<vmem>>
    tpu.wait_dma2 semaphore(%arg14 : memref<!tpu.dma_semaphore, #tpu.memory_space<semaphore_mem>>) src(%390 : memref<1x32xf32, #tpu.memory_space<any>>) dst(%391 : memref<1x32xf32, #tpu.memory_space<vmem>>)
    %c0_i32_363 = arith.constant 0 : i32
    %392 = tpu.memref_slice %arg2[%182, %c0_i32_363] : memref<512x32xf32, #tpu.memory_space<any>> -> memref<1x32xf32, #tpu.memory_space<any>>
    %c36_i32_364 = arith.constant 36 : i32
    %c0_i32_365 = arith.constant 0 : i32
    %393 = tpu.memref_slice %arg13[%c36_i32_364, %c0_i32_365] : memref<64x32xf32, #tpu.memory_space<vmem>> -> memref<1x32xf32, #tpu.memory_space<vmem>>
    tpu.wait_dma2 semaphore(%arg14 : memref<!tpu.dma_semaphore, #tpu.memory_space<semaphore_mem>>) src(%392 : memref<1x32xf32, #tpu.memory_space<any>>) dst(%393 : memref<1x32xf32, #tpu.memory_space<vmem>>)
    %c0_i32_366 = arith.constant 0 : i32
    %394 = tpu.memref_slice %arg2[%187, %c0_i32_366] : memref<512x32xf32, #tpu.memory_space<any>> -> memref<1x32xf32, #tpu.memory_space<any>>
    %c44_i32_367 = arith.constant 44 : i32
    %c0_i32_368 = arith.constant 0 : i32
    %395 = tpu.memref_slice %arg13[%c44_i32_367, %c0_i32_368] : memref<64x32xf32, #tpu.memory_space<vmem>> -> memref<1x32xf32, #tpu.memory_space<vmem>>
    tpu.wait_dma2 semaphore(%arg14 : memref<!tpu.dma_semaphore, #tpu.memory_space<semaphore_mem>>) src(%394 : memref<1x32xf32, #tpu.memory_space<any>>) dst(%395 : memref<1x32xf32, #tpu.memory_space<vmem>>)
    %c0_i32_369 = arith.constant 0 : i32
    %396 = tpu.memref_slice %arg2[%192, %c0_i32_369] : memref<512x32xf32, #tpu.memory_space<any>> -> memref<1x32xf32, #tpu.memory_space<any>>
    %c52_i32_370 = arith.constant 52 : i32
    %c0_i32_371 = arith.constant 0 : i32
    %397 = tpu.memref_slice %arg13[%c52_i32_370, %c0_i32_371] : memref<64x32xf32, #tpu.memory_space<vmem>> -> memref<1x32xf32, #tpu.memory_space<vmem>>
    tpu.wait_dma2 semaphore(%arg14 : memref<!tpu.dma_semaphore, #tpu.memory_space<semaphore_mem>>) src(%396 : memref<1x32xf32, #tpu.memory_space<any>>) dst(%397 : memref<1x32xf32, #tpu.memory_space<vmem>>)
    %c0_i32_372 = arith.constant 0 : i32
    %398 = tpu.memref_slice %arg2[%197, %c0_i32_372] : memref<512x32xf32, #tpu.memory_space<any>> -> memref<1x32xf32, #tpu.memory_space<any>>
    %c60_i32_373 = arith.constant 60 : i32
    %c0_i32_374 = arith.constant 0 : i32
    %399 = tpu.memref_slice %arg13[%c60_i32_373, %c0_i32_374] : memref<64x32xf32, #tpu.memory_space<vmem>> -> memref<1x32xf32, #tpu.memory_space<vmem>>
    tpu.wait_dma2 semaphore(%arg14 : memref<!tpu.dma_semaphore, #tpu.memory_space<semaphore_mem>>) src(%398 : memref<1x32xf32, #tpu.memory_space<any>>) dst(%399 : memref<1x32xf32, #tpu.memory_space<vmem>>)
    %c0_i32_375 = arith.constant 0 : i32
    %400 = tpu.memref_slice %arg2[%202, %c0_i32_375] : memref<512x32xf32, #tpu.memory_space<any>> -> memref<1x32xf32, #tpu.memory_space<any>>
    %c5_i32_376 = arith.constant 5 : i32
    %c0_i32_377 = arith.constant 0 : i32
    %401 = tpu.memref_slice %arg13[%c5_i32_376, %c0_i32_377] : memref<64x32xf32, #tpu.memory_space<vmem>> -> memref<1x32xf32, #tpu.memory_space<vmem>>
    tpu.wait_dma2 semaphore(%arg14 : memref<!tpu.dma_semaphore, #tpu.memory_space<semaphore_mem>>) src(%400 : memref<1x32xf32, #tpu.memory_space<any>>) dst(%401 : memref<1x32xf32, #tpu.memory_space<vmem>>)
    %c0_i32_378 = arith.constant 0 : i32
    %402 = tpu.memref_slice %arg2[%207, %c0_i32_378] : memref<512x32xf32, #tpu.memory_space<any>> -> memref<1x32xf32, #tpu.memory_space<any>>
    %c13_i32_379 = arith.constant 13 : i32
    %c0_i32_380 = arith.constant 0 : i32
    %403 = tpu.memref_slice %arg13[%c13_i32_379, %c0_i32_380] : memref<64x32xf32, #tpu.memory_space<vmem>> -> memref<1x32xf32, #tpu.memory_space<vmem>>
    tpu.wait_dma2 semaphore(%arg14 : memref<!tpu.dma_semaphore, #tpu.memory_space<semaphore_mem>>) src(%402 : memref<1x32xf32, #tpu.memory_space<any>>) dst(%403 : memref<1x32xf32, #tpu.memory_space<vmem>>)
    %c0_i32_381 = arith.constant 0 : i32
    %404 = tpu.memref_slice %arg2[%212, %c0_i32_381] : memref<512x32xf32, #tpu.memory_space<any>> -> memref<1x32xf32, #tpu.memory_space<any>>
    %c21_i32_382 = arith.constant 21 : i32
    %c0_i32_383 = arith.constant 0 : i32
    %405 = tpu.memref_slice %arg13[%c21_i32_382, %c0_i32_383] : memref<64x32xf32, #tpu.memory_space<vmem>> -> memref<1x32xf32, #tpu.memory_space<vmem>>
    tpu.wait_dma2 semaphore(%arg14 : memref<!tpu.dma_semaphore, #tpu.memory_space<semaphore_mem>>) src(%404 : memref<1x32xf32, #tpu.memory_space<any>>) dst(%405 : memref<1x32xf32, #tpu.memory_space<vmem>>)
    %c0_i32_384 = arith.constant 0 : i32
    %406 = tpu.memref_slice %arg2[%217, %c0_i32_384] : memref<512x32xf32, #tpu.memory_space<any>> -> memref<1x32xf32, #tpu.memory_space<any>>
    %c29_i32_385 = arith.constant 29 : i32
    %c0_i32_386 = arith.constant 0 : i32
    %407 = tpu.memref_slice %arg13[%c29_i32_385, %c0_i32_386] : memref<64x32xf32, #tpu.memory_space<vmem>> -> memref<1x32xf32, #tpu.memory_space<vmem>>
    tpu.wait_dma2 semaphore(%arg14 : memref<!tpu.dma_semaphore, #tpu.memory_space<semaphore_mem>>) src(%406 : memref<1x32xf32, #tpu.memory_space<any>>) dst(%407 : memref<1x32xf32, #tpu.memory_space<vmem>>)
    %c0_i32_387 = arith.constant 0 : i32
    %408 = tpu.memref_slice %arg2[%222, %c0_i32_387] : memref<512x32xf32, #tpu.memory_space<any>> -> memref<1x32xf32, #tpu.memory_space<any>>
    %c37_i32_388 = arith.constant 37 : i32
    %c0_i32_389 = arith.constant 0 : i32
    %409 = tpu.memref_slice %arg13[%c37_i32_388, %c0_i32_389] : memref<64x32xf32, #tpu.memory_space<vmem>> -> memref<1x32xf32, #tpu.memory_space<vmem>>
    tpu.wait_dma2 semaphore(%arg14 : memref<!tpu.dma_semaphore, #tpu.memory_space<semaphore_mem>>) src(%408 : memref<1x32xf32, #tpu.memory_space<any>>) dst(%409 : memref<1x32xf32, #tpu.memory_space<vmem>>)
    %c0_i32_390 = arith.constant 0 : i32
    %410 = tpu.memref_slice %arg2[%227, %c0_i32_390] : memref<512x32xf32, #tpu.memory_space<any>> -> memref<1x32xf32, #tpu.memory_space<any>>
    %c45_i32_391 = arith.constant 45 : i32
    %c0_i32_392 = arith.constant 0 : i32
    %411 = tpu.memref_slice %arg13[%c45_i32_391, %c0_i32_392] : memref<64x32xf32, #tpu.memory_space<vmem>> -> memref<1x32xf32, #tpu.memory_space<vmem>>
    tpu.wait_dma2 semaphore(%arg14 : memref<!tpu.dma_semaphore, #tpu.memory_space<semaphore_mem>>) src(%410 : memref<1x32xf32, #tpu.memory_space<any>>) dst(%411 : memref<1x32xf32, #tpu.memory_space<vmem>>)
    %c0_i32_393 = arith.constant 0 : i32
    %412 = tpu.memref_slice %arg2[%232, %c0_i32_393] : memref<512x32xf32, #tpu.memory_space<any>> -> memref<1x32xf32, #tpu.memory_space<any>>
    %c53_i32_394 = arith.constant 53 : i32
    %c0_i32_395 = arith.constant 0 : i32
    %413 = tpu.memref_slice %arg13[%c53_i32_394, %c0_i32_395] : memref<64x32xf32, #tpu.memory_space<vmem>> -> memref<1x32xf32, #tpu.memory_space<vmem>>
    tpu.wait_dma2 semaphore(%arg14 : memref<!tpu.dma_semaphore, #tpu.memory_space<semaphore_mem>>) src(%412 : memref<1x32xf32, #tpu.memory_space<any>>) dst(%413 : memref<1x32xf32, #tpu.memory_space<vmem>>)
    %c0_i32_396 = arith.constant 0 : i32
    %414 = tpu.memref_slice %arg2[%237, %c0_i32_396] : memref<512x32xf32, #tpu.memory_space<any>> -> memref<1x32xf32, #tpu.memory_space<any>>
    %c61_i32_397 = arith.constant 61 : i32
    %c0_i32_398 = arith.constant 0 : i32
    %415 = tpu.memref_slice %arg13[%c61_i32_397, %c0_i32_398] : memref<64x32xf32, #tpu.memory_space<vmem>> -> memref<1x32xf32, #tpu.memory_space<vmem>>
    tpu.wait_dma2 semaphore(%arg14 : memref<!tpu.dma_semaphore, #tpu.memory_space<semaphore_mem>>) src(%414 : memref<1x32xf32, #tpu.memory_space<any>>) dst(%415 : memref<1x32xf32, #tpu.memory_space<vmem>>)
    %c0_i32_399 = arith.constant 0 : i32
    %416 = tpu.memref_slice %arg2[%242, %c0_i32_399] : memref<512x32xf32, #tpu.memory_space<any>> -> memref<1x32xf32, #tpu.memory_space<any>>
    %c6_i32_400 = arith.constant 6 : i32
    %c0_i32_401 = arith.constant 0 : i32
    %417 = tpu.memref_slice %arg13[%c6_i32_400, %c0_i32_401] : memref<64x32xf32, #tpu.memory_space<vmem>> -> memref<1x32xf32, #tpu.memory_space<vmem>>
    tpu.wait_dma2 semaphore(%arg14 : memref<!tpu.dma_semaphore, #tpu.memory_space<semaphore_mem>>) src(%416 : memref<1x32xf32, #tpu.memory_space<any>>) dst(%417 : memref<1x32xf32, #tpu.memory_space<vmem>>)
    %c0_i32_402 = arith.constant 0 : i32
    %418 = tpu.memref_slice %arg2[%247, %c0_i32_402] : memref<512x32xf32, #tpu.memory_space<any>> -> memref<1x32xf32, #tpu.memory_space<any>>
    %c14_i32_403 = arith.constant 14 : i32
    %c0_i32_404 = arith.constant 0 : i32
    %419 = tpu.memref_slice %arg13[%c14_i32_403, %c0_i32_404] : memref<64x32xf32, #tpu.memory_space<vmem>> -> memref<1x32xf32, #tpu.memory_space<vmem>>
    tpu.wait_dma2 semaphore(%arg14 : memref<!tpu.dma_semaphore, #tpu.memory_space<semaphore_mem>>) src(%418 : memref<1x32xf32, #tpu.memory_space<any>>) dst(%419 : memref<1x32xf32, #tpu.memory_space<vmem>>)
    %c0_i32_405 = arith.constant 0 : i32
    %420 = tpu.memref_slice %arg2[%252, %c0_i32_405] : memref<512x32xf32, #tpu.memory_space<any>> -> memref<1x32xf32, #tpu.memory_space<any>>
    %c22_i32_406 = arith.constant 22 : i32
    %c0_i32_407 = arith.constant 0 : i32
    %421 = tpu.memref_slice %arg13[%c22_i32_406, %c0_i32_407] : memref<64x32xf32, #tpu.memory_space<vmem>> -> memref<1x32xf32, #tpu.memory_space<vmem>>
    tpu.wait_dma2 semaphore(%arg14 : memref<!tpu.dma_semaphore, #tpu.memory_space<semaphore_mem>>) src(%420 : memref<1x32xf32, #tpu.memory_space<any>>) dst(%421 : memref<1x32xf32, #tpu.memory_space<vmem>>)
    %c0_i32_408 = arith.constant 0 : i32
    %422 = tpu.memref_slice %arg2[%257, %c0_i32_408] : memref<512x32xf32, #tpu.memory_space<any>> -> memref<1x32xf32, #tpu.memory_space<any>>
    %c30_i32_409 = arith.constant 30 : i32
    %c0_i32_410 = arith.constant 0 : i32
    %423 = tpu.memref_slice %arg13[%c30_i32_409, %c0_i32_410] : memref<64x32xf32, #tpu.memory_space<vmem>> -> memref<1x32xf32, #tpu.memory_space<vmem>>
    tpu.wait_dma2 semaphore(%arg14 : memref<!tpu.dma_semaphore, #tpu.memory_space<semaphore_mem>>) src(%422 : memref<1x32xf32, #tpu.memory_space<any>>) dst(%423 : memref<1x32xf32, #tpu.memory_space<vmem>>)
    %c0_i32_411 = arith.constant 0 : i32
    %424 = tpu.memref_slice %arg2[%262, %c0_i32_411] : memref<512x32xf32, #tpu.memory_space<any>> -> memref<1x32xf32, #tpu.memory_space<any>>
    %c38_i32_412 = arith.constant 38 : i32
    %c0_i32_413 = arith.constant 0 : i32
    %425 = tpu.memref_slice %arg13[%c38_i32_412, %c0_i32_413] : memref<64x32xf32, #tpu.memory_space<vmem>> -> memref<1x32xf32, #tpu.memory_space<vmem>>
    tpu.wait_dma2 semaphore(%arg14 : memref<!tpu.dma_semaphore, #tpu.memory_space<semaphore_mem>>) src(%424 : memref<1x32xf32, #tpu.memory_space<any>>) dst(%425 : memref<1x32xf32, #tpu.memory_space<vmem>>)
    %c0_i32_414 = arith.constant 0 : i32
    %426 = tpu.memref_slice %arg2[%267, %c0_i32_414] : memref<512x32xf32, #tpu.memory_space<any>> -> memref<1x32xf32, #tpu.memory_space<any>>
    %c46_i32_415 = arith.constant 46 : i32
    %c0_i32_416 = arith.constant 0 : i32
    %427 = tpu.memref_slice %arg13[%c46_i32_415, %c0_i32_416] : memref<64x32xf32, #tpu.memory_space<vmem>> -> memref<1x32xf32, #tpu.memory_space<vmem>>
    tpu.wait_dma2 semaphore(%arg14 : memref<!tpu.dma_semaphore, #tpu.memory_space<semaphore_mem>>) src(%426 : memref<1x32xf32, #tpu.memory_space<any>>) dst(%427 : memref<1x32xf32, #tpu.memory_space<vmem>>)
    %c0_i32_417 = arith.constant 0 : i32
    %428 = tpu.memref_slice %arg2[%272, %c0_i32_417] : memref<512x32xf32, #tpu.memory_space<any>> -> memref<1x32xf32, #tpu.memory_space<any>>
    %c54_i32_418 = arith.constant 54 : i32
    %c0_i32_419 = arith.constant 0 : i32
    %429 = tpu.memref_slice %arg13[%c54_i32_418, %c0_i32_419] : memref<64x32xf32, #tpu.memory_space<vmem>> -> memref<1x32xf32, #tpu.memory_space<vmem>>
    tpu.wait_dma2 semaphore(%arg14 : memref<!tpu.dma_semaphore, #tpu.memory_space<semaphore_mem>>) src(%428 : memref<1x32xf32, #tpu.memory_space<any>>) dst(%429 : memref<1x32xf32, #tpu.memory_space<vmem>>)
    %c0_i32_420 = arith.constant 0 : i32
    %430 = tpu.memref_slice %arg2[%277, %c0_i32_420] : memref<512x32xf32, #tpu.memory_space<any>> -> memref<1x32xf32, #tpu.memory_space<any>>
    %c62_i32_421 = arith.constant 62 : i32
    %c0_i32_422 = arith.constant 0 : i32
    %431 = tpu.memref_slice %arg13[%c62_i32_421, %c0_i32_422] : memref<64x32xf32, #tpu.memory_space<vmem>> -> memref<1x32xf32, #tpu.memory_space<vmem>>
    tpu.wait_dma2 semaphore(%arg14 : memref<!tpu.dma_semaphore, #tpu.memory_space<semaphore_mem>>) src(%430 : memref<1x32xf32, #tpu.memory_space<any>>) dst(%431 : memref<1x32xf32, #tpu.memory_space<vmem>>)
    %c0_i32_423 = arith.constant 0 : i32
    %432 = tpu.memref_slice %arg2[%282, %c0_i32_423] : memref<512x32xf32, #tpu.memory_space<any>> -> memref<1x32xf32, #tpu.memory_space<any>>
    %c7_i32_424 = arith.constant 7 : i32
    %c0_i32_425 = arith.constant 0 : i32
    %433 = tpu.memref_slice %arg13[%c7_i32_424, %c0_i32_425] : memref<64x32xf32, #tpu.memory_space<vmem>> -> memref<1x32xf32, #tpu.memory_space<vmem>>
    tpu.wait_dma2 semaphore(%arg14 : memref<!tpu.dma_semaphore, #tpu.memory_space<semaphore_mem>>) src(%432 : memref<1x32xf32, #tpu.memory_space<any>>) dst(%433 : memref<1x32xf32, #tpu.memory_space<vmem>>)
    %c0_i32_426 = arith.constant 0 : i32
    %434 = tpu.memref_slice %arg2[%287, %c0_i32_426] : memref<512x32xf32, #tpu.memory_space<any>> -> memref<1x32xf32, #tpu.memory_space<any>>
    %c15_i32_427 = arith.constant 15 : i32
    %c0_i32_428 = arith.constant 0 : i32
    %435 = tpu.memref_slice %arg13[%c15_i32_427, %c0_i32_428] : memref<64x32xf32, #tpu.memory_space<vmem>> -> memref<1x32xf32, #tpu.memory_space<vmem>>
    tpu.wait_dma2 semaphore(%arg14 : memref<!tpu.dma_semaphore, #tpu.memory_space<semaphore_mem>>) src(%434 : memref<1x32xf32, #tpu.memory_space<any>>) dst(%435 : memref<1x32xf32, #tpu.memory_space<vmem>>)
    %c0_i32_429 = arith.constant 0 : i32
    %436 = tpu.memref_slice %arg2[%292, %c0_i32_429] : memref<512x32xf32, #tpu.memory_space<any>> -> memref<1x32xf32, #tpu.memory_space<any>>
    %c23_i32_430 = arith.constant 23 : i32
    %c0_i32_431 = arith.constant 0 : i32
    %437 = tpu.memref_slice %arg13[%c23_i32_430, %c0_i32_431] : memref<64x32xf32, #tpu.memory_space<vmem>> -> memref<1x32xf32, #tpu.memory_space<vmem>>
    tpu.wait_dma2 semaphore(%arg14 : memref<!tpu.dma_semaphore, #tpu.memory_space<semaphore_mem>>) src(%436 : memref<1x32xf32, #tpu.memory_space<any>>) dst(%437 : memref<1x32xf32, #tpu.memory_space<vmem>>)
    %c0_i32_432 = arith.constant 0 : i32
    %438 = tpu.memref_slice %arg2[%297, %c0_i32_432] : memref<512x32xf32, #tpu.memory_space<any>> -> memref<1x32xf32, #tpu.memory_space<any>>
    %c31_i32_433 = arith.constant 31 : i32
    %c0_i32_434 = arith.constant 0 : i32
    %439 = tpu.memref_slice %arg13[%c31_i32_433, %c0_i32_434] : memref<64x32xf32, #tpu.memory_space<vmem>> -> memref<1x32xf32, #tpu.memory_space<vmem>>
    tpu.wait_dma2 semaphore(%arg14 : memref<!tpu.dma_semaphore, #tpu.memory_space<semaphore_mem>>) src(%438 : memref<1x32xf32, #tpu.memory_space<any>>) dst(%439 : memref<1x32xf32, #tpu.memory_space<vmem>>)
    %c0_i32_435 = arith.constant 0 : i32
    %440 = tpu.memref_slice %arg2[%302, %c0_i32_435] : memref<512x32xf32, #tpu.memory_space<any>> -> memref<1x32xf32, #tpu.memory_space<any>>
    %c39_i32_436 = arith.constant 39 : i32
    %c0_i32_437 = arith.constant 0 : i32
    %441 = tpu.memref_slice %arg13[%c39_i32_436, %c0_i32_437] : memref<64x32xf32, #tpu.memory_space<vmem>> -> memref<1x32xf32, #tpu.memory_space<vmem>>
    tpu.wait_dma2 semaphore(%arg14 : memref<!tpu.dma_semaphore, #tpu.memory_space<semaphore_mem>>) src(%440 : memref<1x32xf32, #tpu.memory_space<any>>) dst(%441 : memref<1x32xf32, #tpu.memory_space<vmem>>)
    %c0_i32_438 = arith.constant 0 : i32
    %442 = tpu.memref_slice %arg2[%307, %c0_i32_438] : memref<512x32xf32, #tpu.memory_space<any>> -> memref<1x32xf32, #tpu.memory_space<any>>
    %c47_i32_439 = arith.constant 47 : i32
    %c0_i32_440 = arith.constant 0 : i32
    %443 = tpu.memref_slice %arg13[%c47_i32_439, %c0_i32_440] : memref<64x32xf32, #tpu.memory_space<vmem>> -> memref<1x32xf32, #tpu.memory_space<vmem>>
    tpu.wait_dma2 semaphore(%arg14 : memref<!tpu.dma_semaphore, #tpu.memory_space<semaphore_mem>>) src(%442 : memref<1x32xf32, #tpu.memory_space<any>>) dst(%443 : memref<1x32xf32, #tpu.memory_space<vmem>>)
    %c0_i32_441 = arith.constant 0 : i32
    %444 = tpu.memref_slice %arg2[%312, %c0_i32_441] : memref<512x32xf32, #tpu.memory_space<any>> -> memref<1x32xf32, #tpu.memory_space<any>>
    %c55_i32_442 = arith.constant 55 : i32
    %c0_i32_443 = arith.constant 0 : i32
    %445 = tpu.memref_slice %arg13[%c55_i32_442, %c0_i32_443] : memref<64x32xf32, #tpu.memory_space<vmem>> -> memref<1x32xf32, #tpu.memory_space<vmem>>
    tpu.wait_dma2 semaphore(%arg14 : memref<!tpu.dma_semaphore, #tpu.memory_space<semaphore_mem>>) src(%444 : memref<1x32xf32, #tpu.memory_space<any>>) dst(%445 : memref<1x32xf32, #tpu.memory_space<vmem>>)
    %c0_i32_444 = arith.constant 0 : i32
    %446 = tpu.memref_slice %arg2[%317, %c0_i32_444] : memref<512x32xf32, #tpu.memory_space<any>> -> memref<1x32xf32, #tpu.memory_space<any>>
    %c63_i32_445 = arith.constant 63 : i32
    %c0_i32_446 = arith.constant 0 : i32
    %447 = tpu.memref_slice %arg13[%c63_i32_445, %c0_i32_446] : memref<64x32xf32, #tpu.memory_space<vmem>> -> memref<1x32xf32, #tpu.memory_space<vmem>>
    tpu.wait_dma2 semaphore(%arg14 : memref<!tpu.dma_semaphore, #tpu.memory_space<semaphore_mem>>) src(%446 : memref<1x32xf32, #tpu.memory_space<any>>) dst(%447 : memref<1x32xf32, #tpu.memory_space<vmem>>)
    %c0_447 = arith.constant 0 : index
    %c0_448 = arith.constant 0 : index
    %448 = vector.load %arg13[%c0_447, %c0_448] : memref<64x32xf32, #tpu.memory_space<vmem>>, vector<8x32xf32>
    %c8_449 = arith.constant 8 : index
    %c0_450 = arith.constant 0 : index
    %449 = vector.load %arg13[%c8_449, %c0_450] : memref<64x32xf32, #tpu.memory_space<vmem>>, vector<8x32xf32>
    %450 = arith.addf %448, %449 : vector<8x32xf32>
    %c16_451 = arith.constant 16 : index
    %c0_452 = arith.constant 0 : index
    %451 = vector.load %arg13[%c16_451, %c0_452] : memref<64x32xf32, #tpu.memory_space<vmem>>, vector<8x32xf32>
    %452 = arith.addf %450, %451 : vector<8x32xf32>
    %c24_453 = arith.constant 24 : index
    %c0_454 = arith.constant 0 : index
    %453 = vector.load %arg13[%c24_453, %c0_454] : memref<64x32xf32, #tpu.memory_space<vmem>>, vector<8x32xf32>
    %454 = arith.addf %452, %453 : vector<8x32xf32>
    %c32_455 = arith.constant 32 : index
    %c0_456 = arith.constant 0 : index
    %455 = vector.load %arg13[%c32_455, %c0_456] : memref<64x32xf32, #tpu.memory_space<vmem>>, vector<8x32xf32>
    %456 = arith.addf %454, %455 : vector<8x32xf32>
    %c40_457 = arith.constant 40 : index
    %c0_458 = arith.constant 0 : index
    %457 = vector.load %arg13[%c40_457, %c0_458] : memref<64x32xf32, #tpu.memory_space<vmem>>, vector<8x32xf32>
    %458 = arith.addf %456, %457 : vector<8x32xf32>
    %c48_459 = arith.constant 48 : index
    %c0_460 = arith.constant 0 : index
    %459 = vector.load %arg13[%c48_459, %c0_460] : memref<64x32xf32, #tpu.memory_space<vmem>>, vector<8x32xf32>
    %460 = arith.addf %458, %459 : vector<8x32xf32>
    %c56_461 = arith.constant 56 : index
    %c0_462 = arith.constant 0 : index
    %461 = vector.load %arg13[%c56_461, %c0_462] : memref<64x32xf32, #tpu.memory_space<vmem>>, vector<8x32xf32>
    %462 = arith.addf %460, %461 : vector<8x32xf32>
    %cst = arith.constant 1.250000e-01 : f32
    %463 = vector.broadcast %cst : f32 to vector<8x32xf32>
    %464 = arith.mulf %462, %463 : vector<8x32xf32>
    %c0_463 = arith.constant 0 : index
    %c0_464 = arith.constant 0 : index
    %465 = vector.load %arg4[%c0_463, %c0_464] : memref<32x32xf32, #tpu.memory_space<vmem>>, vector<32x32xf32>
    %cst_465 = arith.constant dense<0.000000e+00> : vector<8x32xf32>
    %466 = tpu.matmul %464, %465, %cst_465 {dimension_numbers = #tpu.dot_dimension_numbers<[1], [0], [0], [1], [0, 0, 1, 1], [], []>} : vector<8x32xf32>, vector<32x32xf32>, vector<8x32xf32> -> vector<8x32xf32>
    %c0_466 = arith.constant 0 : index
    %c0_467 = arith.constant 0 : index
    %467 = vector.load %arg5[%c0_466, %c0_467] : memref<1x32xf32, #tpu.memory_space<vmem>>, vector<1x32xf32>
    %468 = vector.broadcast %467 : vector<1x32xf32> to vector<8x32xf32>
    %469 = arith.addf %466, %468 : vector<8x32xf32>
    %470 = math.tanh %469 : vector<8x32xf32>
    %c0_468 = arith.constant 0 : index
    %c0_469 = arith.constant 0 : index
    %471 = vector.load %arg6[%c0_468, %c0_469] : memref<32x16xf32, #tpu.memory_space<vmem>>, vector<32x16xf32>
    %cst_470 = arith.constant dense<0.000000e+00> : vector<8x16xf32>
    %472 = tpu.matmul %470, %471, %cst_470 {dimension_numbers = #tpu.dot_dimension_numbers<[1], [0], [0], [1], [0, 0, 1, 1], [], []>} : vector<8x32xf32>, vector<32x16xf32>, vector<8x16xf32> -> vector<8x16xf32>
    %c0_471 = arith.constant 0 : index
    %c0_472 = arith.constant 0 : index
    %473 = vector.load %arg7[%c0_471, %c0_472] : memref<1x16xf32, #tpu.memory_space<vmem>>, vector<1x16xf32>
    %474 = vector.broadcast %473 : vector<1x16xf32> to vector<8x16xf32>
    %475 = arith.addf %472, %474 : vector<8x16xf32>
    %c0_473 = arith.constant 0 : index
    %c0_474 = arith.constant 0 : index
    %476 = vector.load %arg8[%c0_473, %c0_474] : memref<32x16xf32, #tpu.memory_space<vmem>>, vector<32x16xf32>
    %cst_475 = arith.constant dense<0.000000e+00> : vector<8x16xf32>
    %477 = tpu.matmul %470, %476, %cst_475 {dimension_numbers = #tpu.dot_dimension_numbers<[1], [0], [0], [1], [0, 0, 1, 1], [], []>} : vector<8x32xf32>, vector<32x16xf32>, vector<8x16xf32> -> vector<8x16xf32>
    %c0_476 = arith.constant 0 : index
    %c0_477 = arith.constant 0 : index
    %478 = vector.load %arg9[%c0_476, %c0_477] : memref<1x16xf32, #tpu.memory_space<vmem>>, vector<1x16xf32>
    %479 = vector.broadcast %478 : vector<1x16xf32> to vector<8x16xf32>
    %480 = arith.addf %477, %479 : vector<8x16xf32>
    %c0_478 = arith.constant 0 : index
    %c0_479 = arith.constant 0 : index
    %481 = vector.load %arg3[%c0_478, %c0_479] : memref<8x16xf32, #tpu.memory_space<vmem>>, vector<8x16xf32>
    %cst_480 = arith.constant 5.000000e-01 : f32
    %482 = vector.broadcast %cst_480 : f32 to vector<8x16xf32>
    %483 = arith.mulf %482, %480 : vector<8x16xf32>
    %484 = math.exp %483 : vector<8x16xf32>
    %485 = arith.mulf %481, %484 : vector<8x16xf32>
    %486 = arith.addf %485, %475 : vector<8x16xf32>
    %c0_481 = arith.constant 0 : index
    %c0_482 = arith.constant 0 : index
    %487 = vector.load %arg10[%c0_481, %c0_482] : memref<16x32xf32, #tpu.memory_space<vmem>>, vector<16x32xf32>
    %cst_483 = arith.constant dense<0.000000e+00> : vector<8x32xf32>
    %488 = tpu.matmul %486, %487, %cst_483 {dimension_numbers = #tpu.dot_dimension_numbers<[1], [0], [0], [1], [0, 0, 1, 1], [], []>} : vector<8x16xf32>, vector<16x32xf32>, vector<8x32xf32> -> vector<8x32xf32>
    %c0_484 = arith.constant 0 : index
    %c0_485 = arith.constant 0 : index
    %489 = vector.load %arg11[%c0_484, %c0_485] : memref<1x32xf32, #tpu.memory_space<vmem>>, vector<1x32xf32>
    %490 = vector.broadcast %489 : vector<1x32xf32> to vector<8x32xf32>
    %491 = arith.addf %488, %490 : vector<8x32xf32>
    %492 = math.tanh %491 : vector<8x32xf32>
    %cst_486 = arith.constant 0.000000e+00 : f32
    %493 = vector.broadcast %cst_486 : f32 to vector<8x48xf32>
    %494 = tpu.concatenate %475, %480, %486, %492, %493 in 1 : vector<8x16xf32>, vector<8x16xf32>, vector<8x16xf32>, vector<8x32xf32>, vector<8x48xf32> -> vector<8x128xf32>
    %c0_487 = arith.constant 0 : index
    %c0_488 = arith.constant 0 : index
    %495 = vector.load %arg12[%c0_487, %c0_488] : memref<8x128xf32, #tpu.memory_space<vmem>>, vector<8x128xf32>
    tpu.vector_store %arg12[%c0_487, %c0_488], %494 {strides = array<i32>} : memref<8x128xf32, #tpu.memory_space<vmem>>, vector<8x128xf32>,
    return
  }
  func.func @transform_1(%arg0: i32, %arg1: memref<64xi32, #tpu.memory_space<smem>>) -> (i32, i32) {
    %c0_i32 = arith.constant 0 : i32
    %c0_i32_0 = arith.constant 0 : i32
    %c0_i32_1 = arith.constant 0 : i32
    return %c0_i32, %c0_i32_0 : i32, i32
  }
  func.func @transform_2(%arg0: i32, %arg1: memref<64xi32, #tpu.memory_space<smem>>) -> (i32, i32) {
    %c0_i32 = arith.constant 0 : i32
    %c0_i32_0 = arith.constant 0 : i32
    %c0_i32_1 = arith.constant 0 : i32
    return %c0_i32, %c0_i32_0 : i32, i32
  }
  func.func @transform_3(%arg0: i32, %arg1: memref<64xi32, #tpu.memory_space<smem>>) -> (i32, i32) {
    %c0_i32 = arith.constant 0 : i32
    %c0_i32_0 = arith.constant 0 : i32
    %c0_i32_1 = arith.constant 0 : i32
    return %c0_i32, %c0_i32_0 : i32, i32
  }
  func.func @transform_4(%arg0: i32, %arg1: memref<64xi32, #tpu.memory_space<smem>>) -> (i32, i32) {
    %c0_i32 = arith.constant 0 : i32
    %c0_i32_0 = arith.constant 0 : i32
    %c0_i32_1 = arith.constant 0 : i32
    return %c0_i32, %c0_i32_0 : i32, i32
  }
  func.func @transform_5(%arg0: i32, %arg1: memref<64xi32, #tpu.memory_space<smem>>) -> (i32, i32) {
    %c0_i32 = arith.constant 0 : i32
    %c0_i32_0 = arith.constant 0 : i32
    %c0_i32_1 = arith.constant 0 : i32
    return %c0_i32, %c0_i32_0 : i32, i32
  }
  func.func @transform_6(%arg0: i32, %arg1: memref<64xi32, #tpu.memory_space<smem>>) -> (i32, i32) {
    %c0_i32 = arith.constant 0 : i32
    %c0_i32_0 = arith.constant 0 : i32
    %c0_i32_1 = arith.constant 0 : i32
    return %c0_i32, %c0_i32_0 : i32, i32
  }
  func.func @transform_7(%arg0: i32, %arg1: memref<64xi32, #tpu.memory_space<smem>>) -> (i32, i32) {
    %c0_i32 = arith.constant 0 : i32
    %c0_i32_0 = arith.constant 0 : i32
    %c0_i32_1 = arith.constant 0 : i32
    return %c0_i32, %c0_i32_0 : i32, i32
  }
  func.func @transform_8(%arg0: i32, %arg1: memref<64xi32, #tpu.memory_space<smem>>) -> (i32, i32) {
    %c0_i32 = arith.constant 0 : i32
    %c0_i32_0 = arith.constant 0 : i32
    %c0_i32_1 = arith.constant 0 : i32
    return %c0_i32, %c0_i32_0 : i32, i32
  }
  func.func @transform_9(%arg0: i32, %arg1: memref<64xi32, #tpu.memory_space<smem>>) -> (i32, i32) {
    %c0_i32 = arith.constant 0 : i32
    %c0_i32_0 = arith.constant 0 : i32
    %c0_i32_1 = arith.constant 0 : i32
    return %c0_i32, %c0_i32_0 : i32, i32
  }
  func.func @transform_10(%arg0: i32, %arg1: memref<64xi32, #tpu.memory_space<smem>>) -> (i32, i32) {
    %c0_i32 = arith.constant 0 : i32
    %c0_i32_0 = arith.constant 0 : i32
    %c0_i32_1 = arith.constant 0 : i32
    return %c0_i32, %c0_i32_0 : i32, i32
  }
}

</mosaic_0001>

<bundles_post_ra>
// kernel: tpu_custom_call.1
= control target key start
LH: loop header
LB: loop body
LE: loop exit
PB: predicated region body
PF: predicated region fallthrough
CT: control target
= control target key end

     0   :  { %s5590_s0 = inlined_call_operand.vmem [shape: s32[64], index: 0, kind: input, shape index: {}]   ;;  %s5591_s1 = inlined_call_operand.vmem [shape: f32[512,32], index: 1, kind: input, shape index: {}]   ;;  %s5592_s2 = inlined_call_operand.vmem [shape: f32[8,16], index: 2, kind: input, shape index: {}]   ;;  %s5593_s3 = inlined_call_operand.vmem [shape: f32[32,32], index: 3, kind: input, shape index: {}]   ;;  %s5594_s4 = inlined_call_operand.vmem [shape: f32[1,32], index: 4, kind: input, shape index: {}]   ;;  %s5595_s5 = inlined_call_operand.vmem [shape: f32[32,16], index: 5, kind: input, shape index: {}]   ;;  %s5596_s6 = inlined_call_operand.vmem [shape: f32[1,16], index: 6, kind: input, shape index: {}]   ;;  %s5597_s7 = inlined_call_operand.vmem [shape: f32[32,16], index: 7, kind: input, shape index: {}]   ;;  %s5598_s8 = inlined_call_operand.vmem [shape: f32[1,16], index: 8, kind: input, shape index: {}]   ;;  %s5599_s9 = inlined_call_operand.vmem [shape: f32[16,32], index: 9, kind: input, shape index: {}]   ;;  %s5600_s10 = inlined_call_operand.vmem [shape: f32[1,32], index: 10, kind: input, shape index: {}]   ;;  %s5601_s11 = inlined_call_operand.hbm [shape: f32[8,128], index: 11, kind: output, shape index: {}]  }
   0x1   :  { %s16_s19 = sshll.u32 %s5590_s0, 4  ;;  %s17_s19 = int_to_ptr.vmem [resolvable:$true] %s16_s19 }
   0x2   :  { %s5208_s20 = scalar_lea.vmem %s17_s19, 16  ;;  %p5213_p1 = scmp.lt.s32.totalorder %s17_s19, %s17_s19 }
   0x3   :  { %p5209_p0 = scmp.ne.s32.totalorder %s17_s19, %s5208_s20  ;;  %p5214_p2 = scmp.lt.s32.totalorder %s5208_s20, %s5208_s20 }
   0x5   :  { %p5215_p3 = por %p5214_p2, %p5213_p1 }
   0x7   :  { %p5216_p4 = pnand %p5215_p3, %p5209_p0 }
   0x9   :  { %5219 = shalt.err (!%p5216_p4)  }
   0xa   :  { %s5248_s21 = smov [#allocation5]  }
   0xb   :  { %19 = dma.vmem_to_smem %s17_s19, 16, %s5248_s21, [#allocation4] }
   0xc   :  { %5242 = dma.done.wait [#allocation4], 16 }
   0xd   :  { %5243 = vsyncadd [#allocation4], 4294967280 }
   0xe   :  { %21 = sfence }
   0xf   :  { %22 = vsyncpa [#allocation7], 0  ;;  %s41_s22 = sld [smem:[#allocation5]] }
  0x15   :  { %p42_p5 = scmp.gt.s32.totalorder %s41_s22, 0  ;;  %p4595_p6 = scmp.lt.s32.totalorder %s41_s22, 511 }
  0x17   :  { %s5603_s22 = smov (!%p42_p5, %s41_s22), 0 }
  0x18   :  { %s5605_s22 = smov (!%p4595_p6, %s5603_s22), 511 }
  0x19   :  { %s46_s24 = scalar_lea.vmem %s5591_s1, %s5605_s22 }
  0x1a   :  { %v64_v0 = vld [vmem:[%s46_s24] sm:$0x1] }
  0x1b   :  { %65 = vst [vmem:[#allocation2] sm:$0x1] %v64_v0 }
  0x1c   :  { %90 = vsyncadd [#allocation3], 16  ;;  %s4600_s25 = sld [smem:[#allocation5 + $0x1]] }
  0x22   :  { %p92_p7 = scmp.gt.s32.totalorder %s4600_s25, 0  ;;  %p4601_p8 = scmp.lt.s32.totalorder %s4600_s25, 511 }
  0x24   :  { %s5607_s25 = smov (!%p92_p7, %s4600_s25), 0 }
  0x25   :  { %s5609_s25 = smov (!%p4601_p8, %s5607_s25), 511 }
  0x26   :  { %s96_s28 = scalar_lea.vmem %s5591_s1, %s5609_s25 }
  0x27   :  { %v115_v1 = vld [vmem:[%s96_s28] sm:$0x1] }
  0x28   :  { %116 = vst [vmem:[#allocation2 + $0x8] sm:$0x1] %v115_v1 }
  0x29   :  { %141 = vsyncadd [#allocation3], 16  ;;  %s4606_s29 = sld [smem:[#allocation5 + $0x2]] }
  0x2f   :  { %p143_p9 = scmp.gt.s32.totalorder %s4606_s29, 0  ;;  %p4607_p10 = scmp.lt.s32.totalorder %s4606_s29, 511 }
  0x31   :  { %s5611_s29 = smov (!%p143_p9, %s4606_s29), 0 }
  0x32   :  { %s5613_s29 = smov (!%p4607_p10, %s5611_s29), 511 }
  0x33   :  { %s147_s13 = scalar_lea.vmem %s5591_s1, %s5613_s29 }
  0x34   :  { %v166_v2 = vld [vmem:[%s147_s13] sm:$0x1] }
  0x35   :  { %167 = vst [vmem:[#allocation2 + $0x10] sm:$0x1] %v166_v2 }
  0x36   :  { %192 = vsyncadd [#allocation3], 16  ;;  %s4612_s14 = sld [smem:[#allocation5 + $0x3]] }
  0x3c   :  { %p194_p11 = scmp.gt.s32.totalorder %s4612_s14, 0  ;;  %p4613_p12 = scmp.lt.s32.totalorder %s4612_s14, 511 }
  0x3e   :  { %s5615_s14 = smov (!%p194_p11, %s4612_s14), 0 }
  0x3f   :  { %s5617_s14 = smov (!%p4613_p12, %s5615_s14), 511 }
  0x40   :  { %s198_s17 = scalar_lea.vmem %s5591_s1, %s5617_s14 }
  0x41   :  { %v217_v3 = vld [vmem:[%s198_s17] sm:$0x1] }
  0x42   :  { %218 = vst [vmem:[#allocation2 + $0x18] sm:$0x1] %v217_v3 }
  0x43   :  { %243 = vsyncadd [#allocation3], 16  ;;  %s4618_s18 = sld [smem:[#allocation5 + $0x4]] }
  0x49   :  { %p245_p13 = scmp.gt.s32.totalorder %s4618_s18, 0  ;;  %p4619_p0 = scmp.lt.s32.totalorder %s4618_s18, 511 }
  0x4b   :  { %s5619_s18 = smov (!%p245_p13, %s4618_s18), 0 }
  0x4c   :  { %s5621_s18 = smov (!%p4619_p0, %s5619_s18), 511 }
  0x4d   :  { %s249_s21 = scalar_lea.vmem %s5591_s1, %s5621_s18 }
  0x4e   :  { %v268_v4 = vld [vmem:[%s249_s21] sm:$0x1] }
  0x4f   :  { %269 = vst [vmem:[#allocation2 + $0x20] sm:$0x1] %v268_v4 }
  0x50   :  { %294 = vsyncadd [#allocation3], 16  ;;  %s4624_s22 = sld [smem:[#allocation5 + $0x5]] }
  0x56   :  { %p296_p1 = scmp.gt.s32.totalorder %s4624_s22, 0  ;;  %p4625_p2 = scmp.lt.s32.totalorder %s4624_s22, 511 }
  0x58   :  { %s5623_s22 = smov (!%p296_p1, %s4624_s22), 0 }
  0x59   :  { %s5625_s22 = smov (!%p4625_p2, %s5623_s22), 511 }
  0x5a   :  { %s300_s24 = scalar_lea.vmem %s5591_s1, %s5625_s22 }
  0x5b   :  { %v319_v5 = vld [vmem:[%s300_s24] sm:$0x1] }
  0x5c   :  { %320 = vst [vmem:[#allocation2 + $0x28] sm:$0x1] %v319_v5 }
  0x5d   :  { %345 = vsyncadd [#allocation3], 16  ;;  %s4630_s25 = sld [smem:[#allocation5 + $0x6]] }
  0x63   :  { %p347_p3 = scmp.gt.s32.totalorder %s4630_s25, 0  ;;  %p4631_p4 = scmp.lt.s32.totalorder %s4630_s25, 511 }
  0x65   :  { %s5627_s25 = smov (!%p347_p3, %s4630_s25), 0 }
  0x66   :  { %s5629_s25 = smov (!%p4631_p4, %s5627_s25), 511 }
  0x67   :  { %s351_s28 = scalar_lea.vmem %s5591_s1, %s5629_s25 }
  0x68   :  { %v370_v6 = vld [vmem:[%s351_s28] sm:$0x1] }
  0x69   :  { %371 = vst [vmem:[#allocation2 + $0x30] sm:$0x1] %v370_v6 }
  0x6a   :  { %396 = vsyncadd [#allocation3], 16  ;;  %s4636_s29 = sld [smem:[#allocation5 + $0x7]] }
  0x70   :  { %p398_p5 = scmp.gt.s32.totalorder %s4636_s29, 0  ;;  %p4637_p6 = scmp.lt.s32.totalorder %s4636_s29, 511 }
  0x72   :  { %s5631_s29 = smov (!%p398_p5, %s4636_s29), 0 }
  0x73   :  { %s5633_s29 = smov (!%p4637_p6, %s5631_s29), 511 }
  0x74   :  { %s402_s13 = scalar_lea.vmem %s5591_s1, %s5633_s29 }
  0x75   :  { %v421_v7 = vld [vmem:[%s402_s13] sm:$0x1] }
  0x76   :  { %422 = vst [vmem:[#allocation2 + $0x38] sm:$0x1] %v421_v7 }
  0x77   :  { %447 = vsyncadd [#allocation3], 16  ;;  %s4642_s14 = sld [smem:[#allocation5 + $0x8]] }
  0x7d   :  { %p449_p7 = scmp.gt.s32.totalorder %s4642_s14, 0  ;;  %p4643_p8 = scmp.lt.s32.totalorder %s4642_s14, 511 }
  0x7f   :  { %s5635_s14 = smov (!%p449_p7, %s4642_s14), 0 }
  0x80   :  { %s5637_s14 = smov (!%p4643_p8, %s5635_s14), 511 }
  0x81   :  { %s453_s17 = scalar_lea.vmem %s5591_s1, %s5637_s14 }
  0x82   :  { %v472_v8 = vld [vmem:[%s453_s17] sm:$0x1] }
  0x83   :  { %473 = vst [vmem:[#allocation2 + $0x1] sm:$0x1] %v472_v8 }
  0x84   :  { %498 = vsyncadd [#allocation3], 16  ;;  %s4648_s18 = sld [smem:[#allocation5 + $0x9]] }
  0x8a   :  { %p500_p9 = scmp.gt.s32.totalorder %s4648_s18, 0  ;;  %p4649_p10 = scmp.lt.s32.totalorder %s4648_s18, 511 }
  0x8c   :  { %s5639_s18 = smov (!%p500_p9, %s4648_s18), 0 }
  0x8d   :  { %s5641_s18 = smov (!%p4649_p10, %s5639_s18), 511 }
  0x8e   :  { %s504_s21 = scalar_lea.vmem %s5591_s1, %s5641_s18 }
  0x8f   :  { %v523_v9 = vld [vmem:[%s504_s21] sm:$0x1] }
  0x90   :  { %524 = vst [vmem:[#allocation2 + $0x9] sm:$0x1] %v523_v9 }
  0x91   :  { %549 = vsyncadd [#allocation3], 16  ;;  %s4654_s22 = sld [smem:[#allocation5 + $0xa]] }
  0x97   :  { %p551_p11 = scmp.gt.s32.totalorder %s4654_s22, 0  ;;  %p4655_p12 = scmp.lt.s32.totalorder %s4654_s22, 511 }
  0x99   :  { %s5643_s22 = smov (!%p551_p11, %s4654_s22), 0 }
  0x9a   :  { %s5645_s22 = smov (!%p4655_p12, %s5643_s22), 511 }
  0x9b   :  { %s555_s24 = scalar_lea.vmem %s5591_s1, %s5645_s22 }
  0x9c   :  { %v574_v10 = vld [vmem:[%s555_s24] sm:$0x1] }
  0x9d   :  { %575 = vst [vmem:[#allocation2 + $0x11] sm:$0x1] %v574_v10 }
  0x9e   :  { %600 = vsyncadd [#allocation3], 16  ;;  %s4660_s25 = sld [smem:[#allocation5 + $0xb]] }
  0xa4   :  { %p602_p13 = scmp.gt.s32.totalorder %s4660_s25, 0  ;;  %p4661_p0 = scmp.lt.s32.totalorder %s4660_s25, 511 }
  0xa6   :  { %s5647_s25 = smov (!%p602_p13, %s4660_s25), 0 }
  0xa7   :  { %s5649_s25 = smov (!%p4661_p0, %s5647_s25), 511 }
  0xa8   :  { %s606_s28 = scalar_lea.vmem %s5591_s1, %s5649_s25 }
  0xa9   :  { %v625_v11 = vld [vmem:[%s606_s28] sm:$0x1] }
  0xaa   :  { %626 = vst [vmem:[#allocation2 + $0x19] sm:$0x1] %v625_v11 }
  0xab   :  { %651 = vsyncadd [#allocation3], 16  ;;  %s4666_s29 = sld [smem:[#allocation5 + $0xc]] }
  0xb1   :  { %p653_p1 = scmp.gt.s32.totalorder %s4666_s29, 0  ;;  %p4667_p2 = scmp.lt.s32.totalorder %s4666_s29, 511 }
  0xb3   :  { %s5651_s29 = smov (!%p653_p1, %s4666_s29), 0 }
  0xb4   :  { %s5653_s29 = smov (!%p4667_p2, %s5651_s29), 511 }
  0xb5   :  { %s657_s13 = scalar_lea.vmem %s5591_s1, %s5653_s29 }
  0xb6   :  { %v676_v12 = vld [vmem:[%s657_s13] sm:$0x1] }
  0xb7   :  { %677 = vst [vmem:[#allocation2 + $0x21] sm:$0x1] %v676_v12 }
  0xb8   :  { %702 = vsyncadd [#allocation3], 16  ;;  %s4672_s14 = sld [smem:[#allocation5 + $0xd]] }
  0xbe   :  { %p704_p3 = scmp.gt.s32.totalorder %s4672_s14, 0  ;;  %p4673_p4 = scmp.lt.s32.totalorder %s4672_s14, 511 }
  0xc0   :  { %s5655_s14 = smov (!%p704_p3, %s4672_s14), 0 }
  0xc1   :  { %s5657_s14 = smov (!%p4673_p4, %s5655_s14), 511 }
  0xc2   :  { %s708_s17 = scalar_lea.vmem %s5591_s1, %s5657_s14 }
  0xc3   :  { %v727_v13 = vld [vmem:[%s708_s17] sm:$0x1] }
  0xc4   :  { %728 = vst [vmem:[#allocation2 + $0x29] sm:$0x1] %v727_v13 }
  0xc5   :  { %753 = vsyncadd [#allocation3], 16  ;;  %s4678_s18 = sld [smem:[#allocation5 + $0xe]] }
  0xcb   :  { %p755_p5 = scmp.gt.s32.totalorder %s4678_s18, 0  ;;  %p4679_p6 = scmp.lt.s32.totalorder %s4678_s18, 511 }
  0xcd   :  { %s5659_s18 = smov (!%p755_p5, %s4678_s18), 0 }
  0xce   :  { %s5661_s18 = smov (!%p4679_p6, %s5659_s18), 511 }
  0xcf   :  { %s759_s21 = scalar_lea.vmem %s5591_s1, %s5661_s18 }
  0xd0   :  { %v778_v14 = vld [vmem:[%s759_s21] sm:$0x1] }
  0xd1   :  { %779 = vst [vmem:[#allocation2 + $0x31] sm:$0x1] %v778_v14 }
  0xd2   :  { %804 = vsyncadd [#allocation3], 16  ;;  %s4684_s22 = sld [smem:[#allocation5 + $0xf]] }
  0xd8   :  { %p806_p7 = scmp.gt.s32.totalorder %s4684_s22, 0  ;;  %p4685_p8 = scmp.lt.s32.totalorder %s4684_s22, 511 }
  0xda   :  { %s5663_s22 = smov (!%p806_p7, %s4684_s22), 0 }
  0xdb   :  { %s5665_s22 = smov (!%p4685_p8, %s5663_s22), 511 }
  0xdc   :  { %s810_s24 = scalar_lea.vmem %s5591_s1, %s5665_s22 }
  0xdd   :  { %v829_v15 = vld [vmem:[%s810_s24] sm:$0x1] }
  0xde   :  { %830 = vst [vmem:[#allocation2 + $0x39] sm:$0x1] %v829_v15 }
  0xdf   :  { %855 = vsyncadd [#allocation3], 16  ;;  %s4690_s25 = sld [smem:[#allocation5 + $0x10]] }
  0xe5   :  { %p857_p9 = scmp.gt.s32.totalorder %s4690_s25, 0  ;;  %p4691_p10 = scmp.lt.s32.totalorder %s4690_s25, 511 }
  0xe7   :  { %s5667_s25 = smov (!%p857_p9, %s4690_s25), 0 }
  0xe8   :  { %s5669_s25 = smov (!%p4691_p10, %s5667_s25), 511 }
  0xe9   :  { %s861_s28 = scalar_lea.vmem %s5591_s1, %s5669_s25 }
  0xea   :  { %v880_v16 = vld [vmem:[%s861_s28] sm:$0x1] }
  0xeb   :  { %881 = vst [vmem:[#allocation2 + $0x2] sm:$0x1] %v880_v16 }
  0xec   :  { %906 = vsyncadd [#allocation3], 16  ;;  %s4696_s29 = sld [smem:[#allocation5 + $0x11]] }
  0xf2   :  { %p908_p11 = scmp.gt.s32.totalorder %s4696_s29, 0  ;;  %p4697_p12 = scmp.lt.s32.totalorder %s4696_s29, 511 }
  0xf4   :  { %s5671_s29 = smov (!%p908_p11, %s4696_s29), 0 }
  0xf5   :  { %s5673_s29 = smov (!%p4697_p12, %s5671_s29), 511 }
  0xf6   :  { %s912_s13 = scalar_lea.vmem %s5591_s1, %s5673_s29 }
  0xf7   :  { %v931_v17 = vld [vmem:[%s912_s13] sm:$0x1] }
  0xf8   :  { %932 = vst [vmem:[#allocation2 + $0xa] sm:$0x1] %v931_v17 }
  0xf9   :  { %957 = vsyncadd [#allocation3], 16  ;;  %s4702_s14 = sld [smem:[#allocation5 + $0x12]] }
  0xff   :  { %p959_p13 = scmp.gt.s32.totalorder %s4702_s14, 0  ;;  %p4703_p0 = scmp.lt.s32.totalorder %s4702_s14, 511 }
 0x101   :  { %s5675_s14 = smov (!%p959_p13, %s4702_s14), 0 }
 0x102   :  { %s5677_s14 = smov (!%p4703_p0, %s5675_s14), 511 }
 0x103   :  { %s963_s17 = scalar_lea.vmem %s5591_s1, %s5677_s14 }
 0x104   :  { %v982_v18 = vld [vmem:[%s963_s17] sm:$0x1] }
 0x105   :  { %983 = vst [vmem:[#allocation2 + $0x12] sm:$0x1] %v982_v18 }
 0x106   :  { %1008 = vsyncadd [#allocation3], 16  ;;  %s4708_s18 = sld [smem:[#allocation5 + $0x13]] }
 0x10c   :  { %p1010_p1 = scmp.gt.s32.totalorder %s4708_s18, 0  ;;  %p4709_p2 = scmp.lt.s32.totalorder %s4708_s18, 511 }
 0x10e   :  { %s5679_s18 = smov (!%p1010_p1, %s4708_s18), 0 }
 0x10f   :  { %s5681_s18 = smov (!%p4709_p2, %s5679_s18), 511 }
 0x110   :  { %s1014_s21 = scalar_lea.vmem %s5591_s1, %s5681_s18 }
 0x111   :  { %v1033_v19 = vld [vmem:[%s1014_s21] sm:$0x1] }
 0x112   :  { %1034 = vst [vmem:[#allocation2 + $0x1a] sm:$0x1] %v1033_v19 }
 0x113   :  { %1059 = vsyncadd [#allocation3], 16  ;;  %s4714_s22 = sld [smem:[#allocation5 + $0x14]] }
 0x119   :  { %p1061_p3 = scmp.gt.s32.totalorder %s4714_s22, 0  ;;  %p4715_p4 = scmp.lt.s32.totalorder %s4714_s22, 511 }
 0x11b   :  { %s5683_s22 = smov (!%p1061_p3, %s4714_s22), 0 }
 0x11c   :  { %s5685_s22 = smov (!%p4715_p4, %s5683_s22), 511 }
 0x11d   :  { %s1065_s24 = scalar_lea.vmem %s5591_s1, %s5685_s22 }
 0x11e   :  { %v1084_v20 = vld [vmem:[%s1065_s24] sm:$0x1] }
 0x11f   :  { %1085 = vst [vmem:[#allocation2 + $0x22] sm:$0x1] %v1084_v20 }
 0x120   :  { %1110 = vsyncadd [#allocation3], 16  ;;  %s4720_s25 = sld [smem:[#allocation5 + $0x15]] }
 0x126   :  { %p1112_p5 = scmp.gt.s32.totalorder %s4720_s25, 0  ;;  %p4721_p6 = scmp.lt.s32.totalorder %s4720_s25, 511 }
 0x128   :  { %s5687_s25 = smov (!%p1112_p5, %s4720_s25), 0 }
 0x129   :  { %s5689_s25 = smov (!%p4721_p6, %s5687_s25), 511 }
 0x12a   :  { %s1116_s28 = scalar_lea.vmem %s5591_s1, %s5689_s25 }
 0x12b   :  { %v1135_v21 = vld [vmem:[%s1116_s28] sm:$0x1] }
 0x12c   :  { %1136 = vst [vmem:[#allocation2 + $0x2a] sm:$0x1] %v1135_v21 }
 0x12d   :  { %1161 = vsyncadd [#allocation3], 16  ;;  %s4726_s29 = sld [smem:[#allocation5 + $0x16]] }
 0x133   :  { %p1163_p7 = scmp.gt.s32.totalorder %s4726_s29, 0  ;;  %p4727_p8 = scmp.lt.s32.totalorder %s4726_s29, 511 }
 0x135   :  { %s5691_s29 = smov (!%p1163_p7, %s4726_s29), 0 }
 0x136   :  { %s5693_s29 = smov (!%p4727_p8, %s5691_s29), 511 }
 0x137   :  { %s1167_s13 = scalar_lea.vmem %s5591_s1, %s5693_s29 }
 0x138   :  { %v1186_v22 = vld [vmem:[%s1167_s13] sm:$0x1] }
 0x139   :  { %1187 = vst [vmem:[#allocation2 + $0x32] sm:$0x1] %v1186_v22 }
 0x13a   :  { %1212 = vsyncadd [#allocation3], 16  ;;  %s4732_s14 = sld [smem:[#allocation5 + $0x17]] }
 0x140   :  { %p1214_p9 = scmp.gt.s32.totalorder %s4732_s14, 0  ;;  %p4733_p10 = scmp.lt.s32.totalorder %s4732_s14, 511 }
 0x142   :  { %s5695_s14 = smov (!%p1214_p9, %s4732_s14), 0 }
 0x143   :  { %s5697_s14 = smov (!%p4733_p10, %s5695_s14), 511 }
 0x144   :  { %s1218_s17 = scalar_lea.vmem %s5591_s1, %s5697_s14 }
 0x145   :  { %v1237_v23 = vld [vmem:[%s1218_s17] sm:$0x1] }
 0x146   :  { %1238 = vst [vmem:[#allocation2 + $0x3a] sm:$0x1] %v1237_v23 }
 0x147   :  { %1263 = vsyncadd [#allocation3], 16  ;;  %s4738_s18 = sld [smem:[#allocation5 + $0x18]] }
 0x14d   :  { %p1265_p11 = scmp.gt.s32.totalorder %s4738_s18, 0  ;;  %p4739_p12 = scmp.lt.s32.totalorder %s4738_s18, 511 }
 0x14f   :  { %s5699_s18 = smov (!%p1265_p11, %s4738_s18), 0 }
 0x150   :  { %s5701_s18 = smov (!%p4739_p12, %s5699_s18), 511 }
 0x151   :  { %s1269_s21 = scalar_lea.vmem %s5591_s1, %s5701_s18 }
 0x152   :  { %v1288_v24 = vld [vmem:[%s1269_s21] sm:$0x1] }
 0x153   :  { %1289 = vst [vmem:[#allocation2 + $0x3] sm:$0x1] %v1288_v24 }
 0x154   :  { %1314 = vsyncadd [#allocation3], 16  ;;  %s4744_s22 = sld [smem:[#allocation5 + $0x19]] }
 0x15a   :  { %p1316_p13 = scmp.gt.s32.totalorder %s4744_s22, 0  ;;  %p4745_p0 = scmp.lt.s32.totalorder %s4744_s22, 511 }
 0x15c   :  { %s5703_s22 = smov (!%p1316_p13, %s4744_s22), 0 }
 0x15d   :  { %s5705_s22 = smov (!%p4745_p0, %s5703_s22), 511 }
 0x15e   :  { %s1320_s24 = scalar_lea.vmem %s5591_s1, %s5705_s22 }
 0x15f   :  { %v1339_v25 = vld [vmem:[%s1320_s24] sm:$0x1] }
 0x160   :  { %1340 = vst [vmem:[#allocation2 + $0xb] sm:$0x1] %v1339_v25 }
 0x161   :  { %1365 = vsyncadd [#allocation3], 16  ;;  %s4750_s25 = sld [smem:[#allocation5 + $0x1a]] }
 0x167   :  { %p1367_p1 = scmp.gt.s32.totalorder %s4750_s25, 0  ;;  %p4751_p2 = scmp.lt.s32.totalorder %s4750_s25, 511 }
 0x169   :  { %s5707_s25 = smov (!%p1367_p1, %s4750_s25), 0 }
 0x16a   :  { %s5709_s25 = smov (!%p4751_p2, %s5707_s25), 511 }
 0x16b   :  { %s1371_s28 = scalar_lea.vmem %s5591_s1, %s5709_s25 }
 0x16c   :  { %v1390_v26 = vld [vmem:[%s1371_s28] sm:$0x1] }
 0x16d   :  { %1391 = vst [vmem:[#allocation2 + $0x13] sm:$0x1] %v1390_v26 }
 0x16e   :  { %1416 = vsyncadd [#allocation3], 16  ;;  %s4756_s29 = sld [smem:[#allocation5 + $0x1b]] }
 0x174   :  { %p1418_p3 = scmp.gt.s32.totalorder %s4756_s29, 0  ;;  %p4757_p4 = scmp.lt.s32.totalorder %s4756_s29, 511 }
 0x176   :  { %s5711_s29 = smov (!%p1418_p3, %s4756_s29), 0 }
 0x177   :  { %s5713_s29 = smov (!%p4757_p4, %s5711_s29), 511 }
 0x178   :  { %s1422_s13 = scalar_lea.vmem %s5591_s1, %s5713_s29 }
 0x179   :  { %v1441_v27 = vld [vmem:[%s1422_s13] sm:$0x1] }
 0x17a   :  { %1442 = vst [vmem:[#allocation2 + $0x1b] sm:$0x1] %v1441_v27 }
 0x17b   :  { %1467 = vsyncadd [#allocation3], 16  ;;  %s4762_s14 = sld [smem:[#allocation5 + $0x1c]] }
 0x181   :  { %p1469_p5 = scmp.gt.s32.totalorder %s4762_s14, 0  ;;  %p4763_p6 = scmp.lt.s32.totalorder %s4762_s14, 511 }
 0x183   :  { %s5715_s14 = smov (!%p1469_p5, %s4762_s14), 0 }
 0x184   :  { %s5717_s14 = smov (!%p4763_p6, %s5715_s14), 511 }
 0x185   :  { %s1473_s17 = scalar_lea.vmem %s5591_s1, %s5717_s14 }
 0x186   :  { %v1492_v28 = vld [vmem:[%s1473_s17] sm:$0x1] }
 0x187   :  { %1493 = vst [vmem:[#allocation2 + $0x23] sm:$0x1] %v1492_v28 }
 0x188   :  { %1518 = vsyncadd [#allocation3], 16  ;;  %s4768_s18 = sld [smem:[#allocation5 + $0x1d]] }
 0x18e   :  { %p1520_p7 = scmp.gt.s32.totalorder %s4768_s18, 0  ;;  %p4769_p8 = scmp.lt.s32.totalorder %s4768_s18, 511 }
 0x190   :  { %s5719_s18 = smov (!%p1520_p7, %s4768_s18), 0 }
 0x191   :  { %s5721_s18 = smov (!%p4769_p8, %s5719_s18), 511 }
 0x192   :  { %s1524_s21 = scalar_lea.vmem %s5591_s1, %s5721_s18 }
 0x193   :  { %v1543_v29 = vld [vmem:[%s1524_s21] sm:$0x1] }
 0x194   :  { %1544 = vst [vmem:[#allocation2 + $0x2b] sm:$0x1] %v1543_v29 }
 0x195   :  { %1569 = vsyncadd [#allocation3], 16  ;;  %s4774_s22 = sld [smem:[#allocation5 + $0x1e]] }
 0x19b   :  { %p1571_p9 = scmp.gt.s32.totalorder %s4774_s22, 0  ;;  %p4775_p10 = scmp.lt.s32.totalorder %s4774_s22, 511 }
 0x19d   :  { %s5723_s22 = smov (!%p1571_p9, %s4774_s22), 0 }
 0x19e   :  { %s5725_s22 = smov (!%p4775_p10, %s5723_s22), 511 }
 0x19f   :  { %s1575_s24 = scalar_lea.vmem %s5591_s1, %s5725_s22 }
 0x1a0   :  { %v1594_v30 = vld [vmem:[%s1575_s24] sm:$0x1] }
 0x1a1   :  { %1595 = vst [vmem:[#allocation2 + $0x33] sm:$0x1] %v1594_v30 }
 0x1a2   :  { %1620 = vsyncadd [#allocation3], 16  ;;  %s4780_s25 = sld [smem:[#allocation5 + $0x1f]] }
 0x1a8   :  { %p1622_p11 = scmp.gt.s32.totalorder %s4780_s25, 0  ;;  %p4781_p12 = scmp.lt.s32.totalorder %s4780_s25, 511 }
 0x1aa   :  { %s5727_s25 = smov (!%p1622_p11, %s4780_s25), 0 }
 0x1ab   :  { %s5729_s25 = smov (!%p4781_p12, %s5727_s25), 511 }
 0x1ac   :  { %s1626_s28 = scalar_lea.vmem %s5591_s1, %s5729_s25 }
 0x1ad   :  { %v1645_v31 = vld [vmem:[%s1626_s28] sm:$0x1] }
 0x1ae   :  { %1646 = vst [vmem:[#allocation2 + $0x3b] sm:$0x1] %v1645_v31 }
 0x1af   :  { %1671 = vsyncadd [#allocation3], 16  ;;  %s4786_s29 = sld [smem:[#allocation5 + $0x20]] }
 0x1b5   :  { %p1673_p13 = scmp.gt.s32.totalorder %s4786_s29, 0  ;;  %p4787_p0 = scmp.lt.s32.totalorder %s4786_s29, 511 }
 0x1b7   :  { %s5731_s29 = smov (!%p1673_p13, %s4786_s29), 0 }
 0x1b8   :  { %s5733_s29 = smov (!%p4787_p0, %s5731_s29), 511 }
 0x1b9   :  { %s1677_s13 = scalar_lea.vmem %s5591_s1, %s5733_s29 }
 0x1ba   :  { %v1696_v32 = vld [vmem:[%s1677_s13] sm:$0x1] }
 0x1bb   :  { %1697 = vst [vmem:[#allocation2 + $0x4] sm:$0x1] %v1696_v32 }
 0x1bc   :  { %1722 = vsyncadd [#allocation3], 16  ;;  %s4792_s14 = sld [smem:[#allocation5 + $0x21]] }
 0x1c2   :  { %p1724_p1 = scmp.gt.s32.totalorder %s4792_s14, 0  ;;  %p4793_p2 = scmp.lt.s32.totalorder %s4792_s14, 511 }
 0x1c4   :  { %s5735_s14 = smov (!%p1724_p1, %s4792_s14), 0 }
 0x1c5   :  { %s5737_s14 = smov (!%p4793_p2, %s5735_s14), 511 }
 0x1c6   :  { %s1728_s17 = scalar_lea.vmem %s5591_s1, %s5737_s14 }
 0x1c7   :  { %v1747_v33 = vld [vmem:[%s1728_s17] sm:$0x1] }
 0x1c8   :  { %1748 = vst [vmem:[#allocation2 + $0xc] sm:$0x1] %v1747_v33 }
 0x1c9   :  { %1773 = vsyncadd [#allocation3], 16  ;;  %s4798_s18 = sld [smem:[#allocation5 + $0x22]] }
 0x1cf   :  { %p1775_p3 = scmp.gt.s32.totalorder %s4798_s18, 0  ;;  %p4799_p4 = scmp.lt.s32.totalorder %s4798_s18, 511 }
 0x1d1   :  { %s5739_s18 = smov (!%p1775_p3, %s4798_s18), 0 }
 0x1d2   :  { %s5741_s18 = smov (!%p4799_p4, %s5739_s18), 511 }
 0x1d3   :  { %s1779_s21 = scalar_lea.vmem %s5591_s1, %s5741_s18 }
 0x1d4   :  { %v1798_v34 = vld [vmem:[%s1779_s21] sm:$0x1] }
 0x1d5   :  { %1799 = vst [vmem:[#allocation2 + $0x14] sm:$0x1] %v1798_v34 }
 0x1d6   :  { %1824 = vsyncadd [#allocation3], 16  ;;  %s4804_s22 = sld [smem:[#allocation5 + $0x23]] }
 0x1dc   :  { %p1826_p5 = scmp.gt.s32.totalorder %s4804_s22, 0  ;;  %p4805_p6 = scmp.lt.s32.totalorder %s4804_s22, 511 }
 0x1de   :  { %s5743_s22 = smov (!%p1826_p5, %s4804_s22), 0 }
 0x1df   :  { %s5745_s22 = smov (!%p4805_p6, %s5743_s22), 511 }
 0x1e0   :  { %s1830_s24 = scalar_lea.vmem %s5591_s1, %s5745_s22 }
 0x1e1   :  { %v1849_v35 = vld [vmem:[%s1830_s24] sm:$0x1] }
 0x1e2   :  { %1850 = vst [vmem:[#allocation2 + $0x1c] sm:$0x1] %v1849_v35 }
 0x1e3   :  { %1875 = vsyncadd [#allocation3], 16  ;;  %s4810_s25 = sld [smem:[#allocation5 + $0x24]] }
 0x1e9   :  { %p1877_p7 = scmp.gt.s32.totalorder %s4810_s25, 0  ;;  %p4811_p8 = scmp.lt.s32.totalorder %s4810_s25, 511 }
 0x1eb   :  { %s5747_s25 = smov (!%p1877_p7, %s4810_s25), 0 }
 0x1ec   :  { %s5749_s25 = smov (!%p4811_p8, %s5747_s25), 511 }
 0x1ed   :  { %s1881_s28 = scalar_lea.vmem %s5591_s1, %s5749_s25 }
 0x1ee   :  { %v1900_v36 = vld [vmem:[%s1881_s28] sm:$0x1] }
 0x1ef   :  { %1901 = vst [vmem:[#allocation2 + $0x24] sm:$0x1] %v1900_v36 }
 0x1f0   :  { %1926 = vsyncadd [#allocation3], 16  ;;  %s4816_s29 = sld [smem:[#allocation5 + $0x25]] }
 0x1f6   :  { %p1928_p9 = scmp.gt.s32.totalorder %s4816_s29, 0  ;;  %p4817_p10 = scmp.lt.s32.totalorder %s4816_s29, 511 }
 0x1f8   :  { %s5751_s29 = smov (!%p1928_p9, %s4816_s29), 0 }
 0x1f9   :  { %s5753_s29 = smov (!%p4817_p10, %s5751_s29), 511 }
 0x1fa   :  { %s1932_s13 = scalar_lea.vmem %s5591_s1, %s5753_s29 }
 0x1fb   :  { %v1951_v37 = vld [vmem:[%s1932_s13] sm:$0x1] }
 0x1fc   :  { %1952 = vst [vmem:[#allocation2 + $0x2c] sm:$0x1] %v1951_v37 }
 0x1fd   :  { %1977 = vsyncadd [#allocation3], 16  ;;  %s4822_s14 = sld [smem:[#allocation5 + $0x26]] }
 0x203   :  { %p1979_p11 = scmp.gt.s32.totalorder %s4822_s14, 0  ;;  %p4823_p12 = scmp.lt.s32.totalorder %s4822_s14, 511 }
 0x205   :  { %s5755_s14 = smov (!%p1979_p11, %s4822_s14), 0 }
 0x206   :  { %s5757_s14 = smov (!%p4823_p12, %s5755_s14), 511 }
 0x207   :  { %s1983_s17 = scalar_lea.vmem %s5591_s1, %s5757_s14 }
 0x208   :  { %v2002_v38 = vld [vmem:[%s1983_s17] sm:$0x1] }
 0x209   :  { %2003 = vst [vmem:[#allocation2 + $0x34] sm:$0x1] %v2002_v38 }
 0x20a   :  { %2028 = vsyncadd [#allocation3], 16  ;;  %s4828_s18 = sld [smem:[#allocation5 + $0x27]] }
 0x210   :  { %p2030_p13 = scmp.gt.s32.totalorder %s4828_s18, 0  ;;  %p4829_p0 = scmp.lt.s32.totalorder %s4828_s18, 511 }
 0x212   :  { %s5759_s18 = smov (!%p2030_p13, %s4828_s18), 0 }
 0x213   :  { %s5761_s18 = smov (!%p4829_p0, %s5759_s18), 511 }
 0x214   :  { %s2034_s21 = scalar_lea.vmem %s5591_s1, %s5761_s18 }
 0x215   :  { %v2053_v39 = vld [vmem:[%s2034_s21] sm:$0x1] }
 0x216   :  { %2054 = vst [vmem:[#allocation2 + $0x3c] sm:$0x1] %v2053_v39 }
 0x217   :  { %2079 = vsyncadd [#allocation3], 16  ;;  %s4834_s22 = sld [smem:[#allocation5 + $0x28]] }
 0x21d   :  { %p2081_p1 = scmp.gt.s32.totalorder %s4834_s22, 0  ;;  %p4835_p2 = scmp.lt.s32.totalorder %s4834_s22, 511 }
 0x21f   :  { %s5763_s22 = smov (!%p2081_p1, %s4834_s22), 0 }
 0x220   :  { %s5765_s22 = smov (!%p4835_p2, %s5763_s22), 511 }
 0x221   :  { %s2085_s24 = scalar_lea.vmem %s5591_s1, %s5765_s22 }
 0x222   :  { %v2104_v40 = vld [vmem:[%s2085_s24] sm:$0x1] }
 0x223   :  { %2105 = vst [vmem:[#allocation2 + $0x5] sm:$0x1] %v2104_v40 }
 0x224   :  { %2130 = vsyncadd [#allocation3], 16  ;;  %s4840_s25 = sld [smem:[#allocation5 + $0x29]] }
 0x22a   :  { %p2132_p3 = scmp.gt.s32.totalorder %s4840_s25, 0  ;;  %p4841_p4 = scmp.lt.s32.totalorder %s4840_s25, 511 }
 0x22c   :  { %s5767_s25 = smov (!%p2132_p3, %s4840_s25), 0 }
 0x22d   :  { %s5769_s25 = smov (!%p4841_p4, %s5767_s25), 511 }
 0x22e   :  { %s2136_s28 = scalar_lea.vmem %s5591_s1, %s5769_s25 }
 0x22f   :  { %v2155_v41 = vld [vmem:[%s2136_s28] sm:$0x1] }
 0x230   :  { %2156 = vst [vmem:[#allocation2 + $0xd] sm:$0x1] %v2155_v41 }
 0x231   :  { %2181 = vsyncadd [#allocation3], 16  ;;  %s4846_s29 = sld [smem:[#allocation5 + $0x2a]] }
 0x237   :  { %p2183_p5 = scmp.gt.s32.totalorder %s4846_s29, 0  ;;  %p4847_p6 = scmp.lt.s32.totalorder %s4846_s29, 511 }
 0x239   :  { %s5771_s29 = smov (!%p2183_p5, %s4846_s29), 0 }
 0x23a   :  { %s5773_s29 = smov (!%p4847_p6, %s5771_s29), 511 }
 0x23b   :  { %s2187_s13 = scalar_lea.vmem %s5591_s1, %s5773_s29 }
 0x23c   :  { %v2206_v42 = vld [vmem:[%s2187_s13] sm:$0x1] }
 0x23d   :  { %2207 = vst [vmem:[#allocation2 + $0x15] sm:$0x1] %v2206_v42 }
 0x23e   :  { %2232 = vsyncadd [#allocation3], 16  ;;  %s4852_s14 = sld [smem:[#allocation5 + $0x2b]] }
 0x244   :  { %p2234_p7 = scmp.gt.s32.totalorder %s4852_s14, 0  ;;  %p4853_p8 = scmp.lt.s32.totalorder %s4852_s14, 511 }
 0x246   :  { %s5775_s14 = smov (!%p2234_p7, %s4852_s14), 0 }
 0x247   :  { %s5777_s14 = smov (!%p4853_p8, %s5775_s14), 511 }
 0x248   :  { %s2238_s17 = scalar_lea.vmem %s5591_s1, %s5777_s14 }
 0x249   :  { %v2257_v43 = vld [vmem:[%s2238_s17] sm:$0x1] }
 0x24a   :  { %2258 = vst [vmem:[#allocation2 + $0x1d] sm:$0x1] %v2257_v43 }
 0x24b   :  { %2283 = vsyncadd [#allocation3], 16  ;;  %s4858_s18 = sld [smem:[#allocation5 + $0x2c]] }
 0x251   :  { %p2285_p9 = scmp.gt.s32.totalorder %s4858_s18, 0  ;;  %p4859_p10 = scmp.lt.s32.totalorder %s4858_s18, 511 }
 0x253   :  { %s5779_s18 = smov (!%p2285_p9, %s4858_s18), 0 }
 0x254   :  { %s5781_s18 = smov (!%p4859_p10, %s5779_s18), 511 }
 0x255   :  { %s2289_s21 = scalar_lea.vmem %s5591_s1, %s5781_s18 }
 0x256   :  { %v2308_v44 = vld [vmem:[%s2289_s21] sm:$0x1] }
 0x257   :  { %2309 = vst [vmem:[#allocation2 + $0x25] sm:$0x1] %v2308_v44 }
 0x258   :  { %2334 = vsyncadd [#allocation3], 16  ;;  %s4864_s22 = sld [smem:[#allocation5 + $0x2d]] }
 0x25e   :  { %p2336_p11 = scmp.gt.s32.totalorder %s4864_s22, 0  ;;  %p4865_p12 = scmp.lt.s32.totalorder %s4864_s22, 511 }
 0x260   :  { %s5783_s22 = smov (!%p2336_p11, %s4864_s22), 0 }
 0x261   :  { %s5785_s22 = smov (!%p4865_p12, %s5783_s22), 511 }
 0x262   :  { %s2340_s24 = scalar_lea.vmem %s5591_s1, %s5785_s22 }
 0x263   :  { %v2359_v45 = vld [vmem:[%s2340_s24] sm:$0x1] }
 0x264   :  { %2360 = vst [vmem:[#allocation2 + $0x2d] sm:$0x1] %v2359_v45 }
 0x265   :  { %2385 = vsyncadd [#allocation3], 16  ;;  %s4870_s25 = sld [smem:[#allocation5 + $0x2e]] }
 0x26b   :  { %p2387_p13 = scmp.gt.s32.totalorder %s4870_s25, 0  ;;  %p4871_p0 = scmp.lt.s32.totalorder %s4870_s25, 511 }
 0x26d   :  { %s5787_s25 = smov (!%p2387_p13, %s4870_s25), 0 }
 0x26e   :  { %s5789_s25 = smov (!%p4871_p0, %s5787_s25), 511 }
 0x26f   :  { %s2391_s28 = scalar_lea.vmem %s5591_s1, %s5789_s25 }
 0x270   :  { %v2410_v46 = vld [vmem:[%s2391_s28] sm:$0x1] }
 0x271   :  { %2411 = vst [vmem:[#allocation2 + $0x35] sm:$0x1] %v2410_v46 }
 0x272   :  { %2436 = vsyncadd [#allocation3], 16  ;;  %s4876_s29 = sld [smem:[#allocation5 + $0x2f]] }
 0x278   :  { %p2438_p1 = scmp.gt.s32.totalorder %s4876_s29, 0  ;;  %p4877_p2 = scmp.lt.s32.totalorder %s4876_s29, 511 }
 0x27a   :  { %s5791_s29 = smov (!%p2438_p1, %s4876_s29), 0 }
 0x27b   :  { %s5793_s29 = smov (!%p4877_p2, %s5791_s29), 511 }
 0x27c   :  { %s2442_s13 = scalar_lea.vmem %s5591_s1, %s5793_s29 }
 0x27d   :  { %v2461_v47 = vld [vmem:[%s2442_s13] sm:$0x1] }
 0x27e   :  { %2462 = vst [vmem:[#allocation2 + $0x3d] sm:$0x1] %v2461_v47 }
 0x27f   :  { %2487 = vsyncadd [#allocation3], 16  ;;  %s4882_s14 = sld [smem:[#allocation5 + $0x30]] }
 0x285   :  { %p2489_p3 = scmp.gt.s32.totalorder %s4882_s14, 0  ;;  %p4883_p4 = scmp.lt.s32.totalorder %s4882_s14, 511 }
 0x287   :  { %s5795_s14 = smov (!%p2489_p3, %s4882_s14), 0 }
 0x288   :  { %s5797_s14 = smov (!%p4883_p4, %s5795_s14), 511 }
 0x289   :  { %s2493_s17 = scalar_lea.vmem %s5591_s1, %s5797_s14 }
 0x28a   :  { %v2512_v48 = vld [vmem:[%s2493_s17] sm:$0x1] }
 0x28b   :  { %2513 = vst [vmem:[#allocation2 + $0x6] sm:$0x1] %v2512_v48 }
 0x28c   :  { %2538 = vsyncadd [#allocation3], 16  ;;  %s4888_s18 = sld [smem:[#allocation5 + $0x31]] }
 0x292   :  { %p2540_p5 = scmp.gt.s32.totalorder %s4888_s18, 0  ;;  %p4889_p6 = scmp.lt.s32.totalorder %s4888_s18, 511 }
 0x294   :  { %s5799_s18 = smov (!%p2540_p5, %s4888_s18), 0 }
 0x295   :  { %s5801_s18 = smov (!%p4889_p6, %s5799_s18), 511 }
 0x296   :  { %s2544_s21 = scalar_lea.vmem %s5591_s1, %s5801_s18 }
 0x297   :  { %v2563_v49 = vld [vmem:[%s2544_s21] sm:$0x1] }
 0x298   :  { %2564 = vst [vmem:[#allocation2 + $0xe] sm:$0x1] %v2563_v49 }
 0x299   :  { %2589 = vsyncadd [#allocation3], 16  ;;  %s4894_s22 = sld [smem:[#allocation5 + $0x32]] }
 0x29f   :  { %p2591_p7 = scmp.gt.s32.totalorder %s4894_s22, 0  ;;  %p4895_p8 = scmp.lt.s32.totalorder %s4894_s22, 511 }
 0x2a1   :  { %s5803_s22 = smov (!%p2591_p7, %s4894_s22), 0 }
 0x2a2   :  { %s5805_s22 = smov (!%p4895_p8, %s5803_s22), 511 }
 0x2a3   :  { %s2595_s24 = scalar_lea.vmem %s5591_s1, %s5805_s22 }
 0x2a4   :  { %v2614_v50 = vld [vmem:[%s2595_s24] sm:$0x1] }
 0x2a5   :  { %2615 = vst [vmem:[#allocation2 + $0x16] sm:$0x1] %v2614_v50 }
 0x2a6   :  { %2640 = vsyncadd [#allocation3], 16  ;;  %s4900_s25 = sld [smem:[#allocation5 + $0x33]] }
 0x2ac   :  { %p2642_p9 = scmp.gt.s32.totalorder %s4900_s25, 0  ;;  %p4901_p10 = scmp.lt.s32.totalorder %s4900_s25, 511 }
 0x2ae   :  { %s5807_s25 = smov (!%p2642_p9, %s4900_s25), 0 }
 0x2af   :  { %s5809_s25 = smov (!%p4901_p10, %s5807_s25), 511 }
 0x2b0   :  { %s2646_s28 = scalar_lea.vmem %s5591_s1, %s5809_s25 }
 0x2b1   :  { %v2665_v51 = vld [vmem:[%s2646_s28] sm:$0x1] }
 0x2b2   :  { %2666 = vst [vmem:[#allocation2 + $0x1e] sm:$0x1] %v2665_v51 }
 0x2b3   :  { %2691 = vsyncadd [#allocation3], 16  ;;  %s4906_s29 = sld [smem:[#allocation5 + $0x34]] }
 0x2b9   :  { %p2693_p11 = scmp.gt.s32.totalorder %s4906_s29, 0  ;;  %p4907_p12 = scmp.lt.s32.totalorder %s4906_s29, 511 }
 0x2bb   :  { %s5811_s29 = smov (!%p2693_p11, %s4906_s29), 0 }
 0x2bc   :  { %s5813_s29 = smov (!%p4907_p12, %s5811_s29), 511 }
 0x2bd   :  { %s2697_s13 = scalar_lea.vmem %s5591_s1, %s5813_s29 }
 0x2be   :  { %v2716_v52 = vld [vmem:[%s2697_s13] sm:$0x1] }
 0x2bf   :  { %2717 = vst [vmem:[#allocation2 + $0x26] sm:$0x1] %v2716_v52 }
 0x2c0   :  { %2742 = vsyncadd [#allocation3], 16  ;;  %s4912_s14 = sld [smem:[#allocation5 + $0x35]] }
 0x2c6   :  { %p2744_p13 = scmp.gt.s32.totalorder %s4912_s14, 0  ;;  %p4913_p0 = scmp.lt.s32.totalorder %s4912_s14, 511 }
 0x2c8   :  { %s5815_s14 = smov (!%p2744_p13, %s4912_s14), 0 }
 0x2c9   :  { %s5817_s14 = smov (!%p4913_p0, %s5815_s14), 511 }
 0x2ca   :  { %s2748_s17 = scalar_lea.vmem %s5591_s1, %s5817_s14 }
 0x2cb   :  { %v2767_v53 = vld [vmem:[%s2748_s17] sm:$0x1] }
 0x2cc   :  { %2768 = vst [vmem:[#allocation2 + $0x2e] sm:$0x1] %v2767_v53 }
 0x2cd   :  { %2793 = vsyncadd [#allocation3], 16  ;;  %s4918_s18 = sld [smem:[#allocation5 + $0x36]] }
 0x2d3   :  { %p2795_p1 = scmp.gt.s32.totalorder %s4918_s18, 0  ;;  %p4919_p2 = scmp.lt.s32.totalorder %s4918_s18, 511 }
 0x2d5   :  { %s5819_s18 = smov (!%p2795_p1, %s4918_s18), 0 }
 0x2d6   :  { %s5821_s18 = smov (!%p4919_p2, %s5819_s18), 511 }
 0x2d7   :  { %s2799_s21 = scalar_lea.vmem %s5591_s1, %s5821_s18 }
 0x2d8   :  { %v2818_v54 = vld [vmem:[%s2799_s21] sm:$0x1] }
 0x2d9   :  { %2819 = vst [vmem:[#allocation2 + $0x36] sm:$0x1] %v2818_v54 }
 0x2da   :  { %2844 = vsyncadd [#allocation3], 16  ;;  %s4924_s22 = sld [smem:[#allocation5 + $0x37]] }
 0x2e0   :  { %p2846_p3 = scmp.gt.s32.totalorder %s4924_s22, 0  ;;  %p4925_p4 = scmp.lt.s32.totalorder %s4924_s22, 511 }
 0x2e2   :  { %s5823_s22 = smov (!%p2846_p3, %s4924_s22), 0 }
 0x2e3   :  { %s5825_s22 = smov (!%p4925_p4, %s5823_s22), 511 }
 0x2e4   :  { %s2850_s24 = scalar_lea.vmem %s5591_s1, %s5825_s22 }
 0x2e5   :  { %v2869_v55 = vld [vmem:[%s2850_s24] sm:$0x1] }
 0x2e6   :  { %2870 = vst [vmem:[#allocation2 + $0x3e] sm:$0x1] %v2869_v55 }
 0x2e7   :  { %2895 = vsyncadd [#allocation3], 16  ;;  %s4930_s25 = sld [smem:[#allocation5 + $0x38]] }
 0x2ed   :  { %p2897_p5 = scmp.gt.s32.totalorder %s4930_s25, 0  ;;  %p4931_p6 = scmp.lt.s32.totalorder %s4930_s25, 511 }
 0x2ef   :  { %s5827_s25 = smov (!%p2897_p5, %s4930_s25), 0 }
 0x2f0   :  { %s5829_s25 = smov (!%p4931_p6, %s5827_s25), 511 }
 0x2f1   :  { %s2901_s28 = scalar_lea.vmem %s5591_s1, %s5829_s25 }
 0x2f2   :  { %v2920_v56 = vld [vmem:[%s2901_s28] sm:$0x1] }
 0x2f3   :  { %2921 = vst [vmem:[#allocation2 + $0x7] sm:$0x1] %v2920_v56 }
 0x2f4   :  { %2946 = vsyncadd [#allocation3], 16  ;;  %s4936_s29 = sld [smem:[#allocation5 + $0x39]] }
 0x2fa   :  { %p2948_p7 = scmp.gt.s32.totalorder %s4936_s29, 0  ;;  %p4937_p8 = scmp.lt.s32.totalorder %s4936_s29, 511 }
 0x2fc   :  { %s5831_s29 = smov (!%p2948_p7, %s4936_s29), 0 }
 0x2fd   :  { %s5833_s29 = smov (!%p4937_p8, %s5831_s29), 511 }
 0x2fe   :  { %s2952_s13 = scalar_lea.vmem %s5591_s1, %s5833_s29 }
 0x2ff   :  { %v2971_v57 = vld [vmem:[%s2952_s13] sm:$0x1] }
 0x300   :  { %2972 = vst [vmem:[#allocation2 + $0xf] sm:$0x1] %v2971_v57 }
 0x301   :  { %2997 = vsyncadd [#allocation3], 16  ;;  %s4942_s14 = sld [smem:[#allocation5 + $0x3a]] }
 0x307   :  { %p2999_p9 = scmp.gt.s32.totalorder %s4942_s14, 0  ;;  %p4943_p10 = scmp.lt.s32.totalorder %s4942_s14, 511 }
 0x309   :  { %s5835_s14 = smov (!%p2999_p9, %s4942_s14), 0 }
 0x30a   :  { %s5837_s14 = smov (!%p4943_p10, %s5835_s14), 511 }
 0x30b   :  { %s3003_s17 = scalar_lea.vmem %s5591_s1, %s5837_s14 }
 0x30c   :  { %v3022_v58 = vld [vmem:[%s3003_s17] sm:$0x1] }
 0x30d   :  { %3023 = vst [vmem:[#allocation2 + $0x17] sm:$0x1] %v3022_v58 }
 0x30e   :  { %3048 = vsyncadd [#allocation3], 16  ;;  %s4948_s18 = sld [smem:[#allocation5 + $0x3b]] }
 0x314   :  { %p3050_p11 = scmp.gt.s32.totalorder %s4948_s18, 0  ;;  %p4949_p12 = scmp.lt.s32.totalorder %s4948_s18, 511 }
 0x316   :  { %s5839_s18 = smov (!%p3050_p11, %s4948_s18), 0 }
 0x317   :  { %s5841_s18 = smov (!%p4949_p12, %s5839_s18), 511 }
 0x318   :  { %s3054_s21 = scalar_lea.vmem %s5591_s1, %s5841_s18 }
 0x319   :  { %v3073_v59 = vld [vmem:[%s3054_s21] sm:$0x1] }
 0x31a   :  { %3074 = vst [vmem:[#allocation2 + $0x1f] sm:$0x1] %v3073_v59 }
 0x31b   :  { %3099 = vsyncadd [#allocation3], 16  ;;  %s4954_s22 = sld [smem:[#allocation5 + $0x3c]] }
 0x321   :  { %p3101_p13 = scmp.gt.s32.totalorder %s4954_s22, 0  ;;  %p4955_p0 = scmp.lt.s32.totalorder %s4954_s22, 511 }
 0x323   :  { %s5843_s22 = smov (!%p3101_p13, %s4954_s22), 0 }
 0x324   :  { %s5845_s22 = smov (!%p4955_p0, %s5843_s22), 511 }
 0x325   :  { %s3105_s24 = scalar_lea.vmem %s5591_s1, %s5845_s22 }
 0x326   :  { %v3124_v60 = vld [vmem:[%s3105_s24] sm:$0x1] }
 0x327   :  { %3125 = vst [vmem:[#allocation2 + $0x27] sm:$0x1] %v3124_v60 }
 0x328   :  { %3150 = vsyncadd [#allocation3], 16  ;;  %s4960_s25 = sld [smem:[#allocation5 + $0x3d]] }
 0x32e   :  { %p3152_p1 = scmp.gt.s32.totalorder %s4960_s25, 0  ;;  %p4961_p2 = scmp.lt.s32.totalorder %s4960_s25, 511 }
 0x330   :  { %s5847_s25 = smov (!%p3152_p1, %s4960_s25), 0 }
 0x331   :  { %s5849_s25 = smov (!%p4961_p2, %s5847_s25), 511 }
 0x332   :  { %s3156_s28 = scalar_lea.vmem %s5591_s1, %s5849_s25 }
 0x333   :  { %v3175_v61 = vld [vmem:[%s3156_s28] sm:$0x1] }
 0x334   :  { %3176 = vst [vmem:[#allocation2 + $0x2f] sm:$0x1] %v3175_v61 }
 0x335   :  { %3201 = vsyncadd [#allocation3], 16  ;;  %s4966_s29 = sld [smem:[#allocation5 + $0x3e]] }
 0x33b   :  { %p3203_p3 = scmp.gt.s32.totalorder %s4966_s29, 0  ;;  %p4967_p4 = scmp.lt.s32.totalorder %s4966_s29, 511 }
 0x33d   :  { %s5851_s29 = smov (!%p3203_p3, %s4966_s29), 0 }
 0x33e   :  { %s5853_s29 = smov (!%p4967_p4, %s5851_s29), 511 }
 0x33f   :  { %s3207_s13 = scalar_lea.vmem %s5591_s1, %s5853_s29 }
 0x340   :  { %v3226_v62 = vld [vmem:[%s3207_s13] sm:$0x1] }
 0x341   :  { %3227 = vst [vmem:[#allocation2 + $0x37] sm:$0x1] %v3226_v62 }
 0x342   :  { %3252 = vsyncadd [#allocation3], 16  ;;  %s4972_s14 = sld [smem:[#allocation5 + $0x3f]] }
 0x348   :  { %p3254_p5 = scmp.gt.s32.totalorder %s4972_s14, 0  ;;  %p4973_p6 = scmp.lt.s32.totalorder %s4972_s14, 511 }
 0x34a   :  { %s5855_s14 = smov (!%p3254_p5, %s4972_s14), 0 }
 0x34b   :  { %s5857_s14 = smov (!%p4973_p6, %s5855_s14), 511 }
 0x34c   :  { %s3258_s17 = scalar_lea.vmem %s5591_s1, %s5857_s14 }
 0x34d   :  { %v3277_v63 = vld [vmem:[%s3258_s17] sm:$0x1] }
 0x34e   :  { %3278 = vst [vmem:[#allocation2 + $0x3f] sm:$0x1] %v3277_v63 }
 0x34f   :  { %3303 = vsyncadd [#allocation3], 16 }
 0x350   :  { %5244 = dma.done.wait [#allocation3], 1024 }
 0x351   :  { %5245 = vsyncadd [#allocation3], 4294966272  ;;  %v5249_v0 = vmov 0.0|0.0   ;;  %vm5250_vm0 = vmmov 0   ;;  %v5251_v1 = vmov 0.0   ;;  %v3449_v2 = vld [vmem:[%s5593_s3] sm:$0xff] }
 0x352   :  { %5173 = vmatprep.subr.bf16.mxu0 %v5249_v0  ;;  %5141 = vmatprep.mubr.msk.f32.mxu0 %vm5250_vm0, %v5251_v1  ;;  %v3450_v3 = vld [vmem:[%s5593_s3 + $0x8] sm:$0xff]  ;;  %v3451_v4 = vld [vmem:[%s5593_s3 + $0x10] sm:$0xff]  ;;  %v3452_v6 = vld [vmem:[%s5593_s3 + $0x18] sm:$0xff]  ;;  %vm3460_vm1 = vcmask 261120   ;;  %s5252_s23 = smov 16   ;;  %vm3715_vm2 = vcmask 130048  }
 0x353   :  { %5179 = vmatprep.subr.bf16.mxu1 %v5249_v0  ;;  %5152 = vmatprep.mubr.msk.f32.mxu1 %vm5250_vm0, %v5251_v1  ;;  %v5174_v5 = vpack.c.bf16 %v3450_v3, %v3449_v2  ;;  %v3433_v7 = vld [vmem:[#allocation2] sm:$0xff]  ;;  %v3434_v8 = vld [vmem:[#allocation2 + $0x8] sm:$0xff]  ;;  %v3436_v10 = vld [vmem:[#allocation2 + $0x10] sm:$0xff]  ;;  %v5177_v11 = vpack.c.bf16 %v3452_v6, %v3451_v4  ;;  %vm3803_vm3 = vcmask 392192   ;;  %vm3805_vm4 = vcmask 654336  }
 0x354   :  { %v3435_v9 = vadd.f32 %v3434_v8, %v3433_v7  ;;  %v3438_v12 = vld [vmem:[#allocation2 + $0x18] sm:$0xff]  ;;  %v3440_v14 = vld [vmem:[#allocation2 + $0x20] sm:$0xff]  ;;  %v3442_v16 = vld [vmem:[#allocation2 + $0x28] sm:$0xff] }
 0x355   :  { %5175 = vmatpush3.bf16.msra.mxu0 %v5174_v5  ;;  %v3444_v18 = vld [vmem:[#allocation2 + $0x30] sm:$0xff]  ;;  %v3446_v20 = vld [vmem:[#allocation2 + $0x38] sm:$0xff]  ;;  %v3535_v24 = vld [vmem:[%s5595_s5] sm:$0xff] }
 0x356   :  { %5176 = vmatprep.subr.bf16.mxu0 %v5249_v0  ;;  %v3437_v13 = vadd.f32 %v3436_v10, %v3435_v9  ;;  %v3536_v25 = vld [vmem:[%s5595_s5 + $0x8] sm:$0xff]  ;;  %v3619_v26 = vld [vmem:[%s5597_s7] sm:$0xff]  ;;  %v3537_v29 = vld [vmem:[%s5595_s5 + $0x10] sm:$0xff] }
 0x357   :  { %v5180_v27 = vpack.c.bf16 %v3536_v25, %v3535_v24  ;;  %v3620_v28 = vld [vmem:[%s5597_s7 + $0x8] sm:$0xff]  ;;  %v3538_v30 = vld [vmem:[%s5595_s5 + $0x18] sm:$0xff]  ;;  %v3621_v32 = vld [vmem:[%s5597_s7 + $0x10] sm:$0xff] }
 0x358   :  { %v3439_v15 = vadd.f32 %v3438_v12, %v3437_v13  ;;  %v5186_v31 = vpack.c.bf16 %v3620_v28, %v3619_v26  ;;  %v3622_v33 = vld [vmem:[%s5597_s7 + $0x18] sm:$0xff]  ;;  %v5183_v34 = vpack.c.bf16 %v3538_v30, %v3537_v29  ;;  %v4978_v36 = vld [vmem:[%s5594_s4] ss:$0 sm:$0xff]  ;;  %v3707_v42 = vld [vmem:[%s5599_s9 + $0x8] sm:$0xff] }
 0x359   :  { %5178 = vmatpush3.bf16.msra.mxu0 %v5177_v11  ;;  %5181 = vmatpush3.bf16.msra.mxu1 %v5180_v27  ;;  %v5189_v35 = vpack.c.bf16 %v3622_v33, %v3621_v32  ;;  %v3706_v41 = vld [vmem:[%s5599_s9] sm:$0xff] }
 0x35a   :  { %v3441_v17 = vadd.f32 %v3440_v14, %v3439_v15  ;;  %5185 = vmatprep.subr.bf16.mxu0 %v5249_v0  ;;  %5182 = vmatprep.subr.bf16.mxu1 %v5249_v0  ;;  %v5192_v43 = vpack.c.bf16 %v3707_v42, %v3706_v41  ;;  %v4982_v44 = vld [vmem:[%s5598_s8] ss:$0 sm:$0xff]  ;;  %s5253_s8 = smov 32  }
 0x35b   :  { %v4980_v52 = vld [vmem:[%s5596_s6] ss:$0 sm:$0xff]  ;;  %s5254_s6 = smov 48  }
 0x35c   :  { %v3443_v19 = vadd.f32 %v3442_v16, %v3441_v17  ;;  %v3700_v53 = vld [vmem:[%s5592_s2] sm:$0xff]  ;;  %s5255_s2 = smov [#allocation6]  }
 0x35d   :  { %5184 = vmatpush3.bf16.msra.mxu1 %v5183_v34  ;;  %v4984_v58 = vld [vmem:[%s5600_s10] ss:$0 sm:$0xff]  ;;  %s3814_s28 = sshll.u32 %s5255_s2, 4  ;;  %s3815_s28 = int_to_ptr.vmem [resolvable:$true] %s3814_s28 }
 0x35e   :  { %v3445_v21 = vadd.f32 %v3444_v18, %v3443_v19  ;;  %5191 = vmatprep.subr.bf16.mxu1 %v5249_v0  ;;  %s5220_s10 = scalar_lea.vmem %s3815_s28, 128  ;;  %p5225_p8 = scmp.lt.s32.totalorder %s3815_s28, %s3815_s28 }
 0x35f   :  { %p5221_p7 = scmp.ne.s32.totalorder %s3815_s28, %s5220_s10  ;;  %p5226_p9 = scmp.lt.s32.totalorder %s5220_s10, %s5220_s10 }
 0x360   :  { %v3447_v22 = vadd.f32 %v3446_v20, %v3445_v21 }
 0x361   :  { %p5227_p10 = por %p5226_p9, %p5225_p8 }
 0x362   :  { %v3448_v23 = vmul.f32 0.125, %v3447_v22 }
 0x363   :  { %p5228_p11 = pnand %p5227_p10, %p5221_p7 }
 0x364   :  { %5142 = vmatmul.mubr.msk.f32.vlgmr.msra.gmra.mrb[0].mxu0 %vm3460_vm1, %v3448_v23 }
 0x365   :  { %5163 = vmatprep.mubr.msk.f32.mxu0 %vm5250_vm0, %v5251_v1  ;;  %5187 = vmatpush3.bf16.msra.mxu0 %v5186_v31 }
 0x366   :  { %5188 = vmatprep.subr.bf16.mxu0 %v5249_v0 }
 0x369   :  { %5190 = vmatpush3.bf16.msra.mxu0 %v5189_v35 }
 0x437   :  { %v3530_v37 = vpop.f32.mrb[0].mxu0 }
 0x438   :  { %v3531_v38 = vadd.f32 %v4978_v36, %v3530_v37  ;;  %v5143_v39 = vpop.f32.mrb[1].mxu0 }
 0x43a   :  { %5202 = vtanh.f32 %v3531_v38 }
 0x444   :  { %v5203_v40 = vpop.eup %5202 }
 0x445   :  { %5153 = vmatmul.mubr.msk.f32.vlgmr.msra.gmra.mrb[0].mxu1 %vm3460_vm1, %v5203_v40  ;;  %5164 = vmatmul.mubr.msk.f32.vlgmr.msra.gmra.mrb[2].mxu0 %vm3460_vm1, %v5203_v40 }
 0x446   :  { %5170 = vmatprep.mubr.msk.f32.mxu1 %vm5250_vm0, %v5251_v1  ;;  %5193 = vmatpush3.bf16.msra.mxu1 %v5192_v43 }
 0x518   :  { %v3615_v45 = vpop.f32.mrb[0].mxu1  ;;  %v3696_v46 = vpop.f32.mrb[2].mxu0 }
 0x519   :  { %v3697_v47 = vadd.f32 %v4982_v44, %v3696_v46  ;;  %v5154_v48 = vpop.f32.mrb[1].mxu1  ;;  %v5165_v49 = vpop.f32.mrb[3].mxu0  ;;  %v3616_v55 = vadd.f32 %v4980_v52, %v3615_v45 }
 0x51b   :  { %v3701_v50 = vmul.f32 0.5, %v3697_v47  ;;  %3791 = vrot.lane.b32.xlu0 %v3697_v47, %s5252_s23 }
 0x51d   :  { %v3702_v51 = vmul.f32 1.442695, %v3701_v50 }
 0x51f   :  { %5204 = vpow2.f32 %v3702_v51 }
 0x529   :  { %v5205_v54 = vpop.eup %5204 }
 0x52a   :  { %v3704_v56 = vmul.f32 %v5205_v54, %v3700_v53 }
 0x52c   :  { %v3705_v57 = vadd.f32 %v3704_v56, %v3616_v55 }
 0x52e   :  { %3794 = vrot.lane.b32.xlu0 %v3705_v57, %s5253_s8  ;;  %5171 = vmatmul.mubr.msk.f32.vlgmr.msra.gmra.mrb[2].mxu1 %vm3715_vm2, %v3705_v57 }
 0x58d   :  { %v3792_v63 = vpop.permute.xlu0 %3791 }
 0x58e   :  { %v3801_v1 = vsel %vm3715_vm2, %v3616_v55, %v3792_v63 }
 0x5a0   :  { %v3795_v0 = vpop.permute.xlu0 %3794 }
 0x5a1   :  { %v3802_v2 = vsel %vm3460_vm1, %v3801_v1, %v3795_v0 }
 0x601   :  { %v3785_v59 = vpop.f32.mrb[2].mxu1 }
 0x602   :  { %v3786_v60 = vadd.f32 %v4984_v58, %v3785_v59  ;;  %v5172_v61 = vpop.f32.mrb[3].mxu1 }
 0x604   :  { %5206 = vtanh.f32 %v3786_v60 }
 0x60e   :  { %v5207_v62 = vpop.eup %5206 }
 0x60f   :  { %3798 = vrot.lane.b32.xlu1 %v5207_v62, %s5254_s6 }
 0x681   :  { %v3799_v3 = vpop.permute.xlu1 %3798 }
 0x682   :  { %v3804_v4 = vsel %vm3803_vm3, %v3802_v2, %v3799_v3 }
 0x683   :  { %v3806_v5 = vsel %vm3805_vm4, %v3804_v4, 0.0 }
 0x684   :  { %3807 = vst [vmem:[#allocation6] sm:$0xff] %v3806_v5 }
 0x685   :  { %5231 = shalt.err (!%p5228_p11)
}
 0x686   :  { %s5232_s12 = scalar_lea.hbm %s5601_s11, 128 }
 0x687   :  { %p5233_p12 = scmp.ne.s32.totalorder %s5601_s11, %s5232_s12  ;;  %p5236_p13 = scmp.lt.u32.totalorder %s5232_s12, %s5601_s11 }
 0x689   :  { %p5238_p0 = pnand %p5236_p13, %p5233_p12 }
 0x68b   :  { %5241 = shalt.err (!%p5238_p0)
}
 0x68c   :  { %3817 = dma.vmem_to_hbm [thread:$0]  %s3815_s28, 128, %s5601_s11, [#allocation7]  }
 0x68d   :  { %5246 = dma.done.wait [#allocation7], 128  }
 0x68e   :  { %5247 = vsyncadd [#allocation7], 4294967168 }
 0x68f   :  { %3821 = vsyncpa [#allocation7], 1 }
 0x690   :  { %3822 = vsyncmov [#allocation3] }
 0x693   :  { %s3823_s19 = vpop.sfrf %3822 }
 0x694   :  { %p4986_p1 = scmp.ne.s32.totalorder %s3823_s19, 0 }
 0x696   :  { %3827 = shalt.err (%p4986_p1)  }

</bundles_post_ra>
